<compile_context>
chip_gen: v7x
topology: tpu7x:2x2x1
jax: 0.10.0
libtpu: 0.0.40
codegen_flags: <defaults>
</compile_context>

<pallas_src>
import jax
import jax.numpy as jnp
import numpy as np
from jax.experimental import pallas as pl
from jax.experimental.pallas import tpu as pltpu


# ---------------------------------------------------------------------------
# Fused Pallas kernel: conv1 -> conv2 -> conv3 -> FC, each followed by ReLU.
# ---------------------------------------------------------------------------
def _nature_fused_kernel(x_ref, w1_ref, b1_ref, w2_ref, b2_ref, w3_ref, b3_ref,
                         wfc_ref, bfc_ref, o_ref,
                         l1_ref, a1_ref, l2_ref, a2_ref, l3_ref, a3_ref, lfc_ref):
    """Everything VMEM-resident; 4 MXU matmuls total.

    x_ref  : (B*8, 8*W0*Cin) f32   input, rows pre-grouped by 8 (conv1 kernel)
    w1_ref : (1536, 512)     bf16  K-merged dense conv1 weight (lane-padded 480->512)
    w2_ref : (2048, 384)     bf16  K-merged dense conv2 weight
    w3_ref : (1152, 256)     bf16  K-merged dense conv3 weight
    wfc_ref: (1024, F)       bf16  FC weight, PyTorch-flatten order folded in
    b*_ref : (1, N)          f32   lane-tiled biases
    o_ref  : (B, F)          f32   output
    l*_ref / a*_ref          f32   VMEM scratch: per-layer GEMM LHS / activations
    """
    f32, bf16 = jnp.float32, jnp.bfloat16
    B, F = o_ref.shape

    G = x_ref.shape[0] // B          # 8  input row-groups per image (H0 / k1)
    GW = x_ref.shape[1]              # k1*W0*Cin = 1536
    half = GW // 2                   # 768  (= stride1 * W0 * Cin, stride1 = k1/2)

    H1, N1 = a1_ref.shape[0] // B, a1_ref.shape[1]   # 15, 512
    H2, N2 = a2_ref.shape[0] // B, a2_ref.shape[1]   # 6, 384
    H3, N3 = a3_ref.shape[0] // B, a3_ref.shape[1]   # 4, 256
    K2 = w2_ref.shape[0] // N1                       # 4
    K3 = w3_ref.shape[0] // N2                       # 3
    E = B * G                        # row offset of the "odd conv1 rows" block

    def gemm_bias_relu(lhs_f32, w_ref, b_ref):
        # bf16 operands on the MXU, f32 accumulation; f32 bias + ReLU epilogue.
        y = jnp.dot(lhs_f32.astype(bf16), w_ref[...], preferred_element_type=f32)
        return jnp.maximum(y + b_ref[...], 0.0)

    # ---- conv1 (k=8, s=4): one matmul (B*15, 1536) x (1536, 512) ------------
    # a1 row layout: [b0 even rows 0,2,..,14 | b1 even | b0 odd 1,3,..,13 | b1 odd]
    for b in range(B):
        # even output row g uses input rows 8g..8g+7 == one pre-grouped x row.
        l1_ref[b * G:(b + 1) * G, :] = x_ref[b * G:(b + 1) * G, :]
        # odd output row g uses input rows 8g+4..8g+11 (two contiguous halves).
        o0 = E + b * (G - 1)
        l1_ref[o0:o0 + G - 1, 0:half] = x_ref[b * G:(b + 1) * G - 1, half:GW]
        l1_ref[o0:o0 + G - 1, half:GW] = x_ref[b * G + 1:(b + 1) * G, 0:half]
    a1_ref[...] = gemm_bias_relu(l1_ref[...], w1_ref, b1_ref)

    # ---- conv2 (k=4, s=2): one matmul (B*6, 2048) x (2048, 384) -------------
    # LHS row ho = [a1(2ho) | a1(2ho+1) | a1(2ho+2) | a1(2ho+3)]
    for b in range(B):
        r = b * H2
        e0 = b * G               # a1 even rows: row 2j lives at e0 + j
        o0 = E + b * (G - 1)     # a1 odd rows:  row 2j+1 lives at o0 + j
        for dh in range(K2):
            src = (e0 if dh % 2 == 0 else o0) + dh // 2
            l2_ref[r:r + H2, dh * N1:(dh + 1) * N1] = a1_ref[src:src + H2, :]
    a2_ref[...] = gemm_bias_relu(l2_ref[...], w2_ref, b2_ref)

    # ---- conv3 (k=3, s=1): one matmul (B*4, 1152) x (1152, 256) -------------
    for b in range(B):
        r = b * H3
        s0 = b * H2
        for dh in range(K3):
            l3_ref[r:r + H3, dh * N2:(dh + 1) * N2] = a2_ref[s0 + dh:s0 + dh + H3, :]
    a3_ref[...] = gemm_bias_relu(l3_ref[...], w3_ref, b3_ref)

    # ---- FC (+ReLU): flatten per batch to one 1024-lane row -> one matmul ----
    for b in range(B):
        for h in range(H3):
            lfc_ref[b:b + 1, h * N3:(h + 1) * N3] = a3_ref[b * H3 + h:b * H3 + h + 1, :]
    o_ref[...] = gemm_bias_relu(lfc_ref[...], wfc_ref, bfc_ref)   # single full store


# ---------------------------------------------------------------------------
# Host-side (one-time) parameter preparation.
# ---------------------------------------------------------------------------
def _dense_conv_weight(w_oihw, w_in, stride, in_pad=0, out_pad=0):
    """K-merged dense conv weight.

    Returns D of shape (k*(w_in*cin + in_pad), w_out*cout + out_pad) such that
    for an activation row laid out as x_row[w*cin + c] (with `in_pad` trailing
    zero lanes), conv output row r = sum over the lane-concatenation of the k
    input rows (stride*r + dh, dh=0..k-1) times D.  ~85-90% zeros (horizontal
    window folded in), so FLOP rooflines based on these GEMMs over-count.
    """
    w = np.asarray(w_oihw, np.float32)                     # (Cout, Cin, K, K)
    cout, cin, k, _ = w.shape
    w_out = (w_in - k) // stride + 1
    kin = w_in * cin + in_pad
    nout = w_out * cout + out_pad
    dense = np.zeros((k, kin, nout), np.float32)
    for dh in range(k):
        for wo in range(w_out):
            for dw in range(k):
                wi = stride * wo + dw
                dense[dh, wi * cin:(wi + 1) * cin,
                      wo * cout:(wo + 1) * cout] = w[:, :, dh, dw].T
    return dense.reshape(k * kin, nout)


def prepare_params(params, spatial=64):
    """Dense-ify + K-merge conv weights, lane-pad conv1 to 512, tile biases,
    fold PyTorch flatten + W.T into the FC weight, cast MXU operands to bf16."""
    w1, w2, w3 = params["w1"], params["w2"], params["w3"]
    c1, c3 = w1.shape[0], w3.shape[0]                       # 32, 64
    k1, k2, k3 = w1.shape[2], w2.shape[2], w3.shape[2]      # 8, 4, 3
    w1_out = (spatial - k1) // 4 + 1                        # 15
    w2_out = (w1_out - k2) // 2 + 1                         # 6
    w3_out = (w2_out - k3) // 1 + 1                         # 4

    n1 = w1_out * c1                                        # 480
    n1p = ((n1 + 127) // 128) * 128                         # 512 (lane-dense)
    pad1 = n1p - n1

    d1 = _dense_conv_weight(w1, spatial, 4, out_pad=pad1)   # (1536, 512)
    d2 = _dense_conv_weight(w2, w1_out, 2, in_pad=pad1)     # (2048, 384)
    d3 = _dense_conv_weight(w3, w2_out, 1)                  # (1152, 256)

    # FC: PyTorch flatten index = c*(H3*W3) + h*W3 + w  ->  row h*256 + w*64 + c
    wfc = np.asarray(params["w_fc"], np.float32)            # (F, 1024)
    feat = wfc.shape[0]
    wfc2 = (wfc.reshape(feat, c3, w3_out, w3_out)
               .transpose(2, 3, 1, 0)
               .reshape(w3_out * w3_out * c3, feat))        # (1024, F)

    def tile_bias(b, reps, pad=0):
        t = np.tile(np.asarray(b, np.float32), reps)
        if pad:
            t = np.concatenate([t, np.zeros((pad,), np.float32)])
        return jnp.asarray(t[None, :])

    return {
        "w1": jnp.asarray(d1, jnp.bfloat16),
        "w2": jnp.asarray(d2, jnp.bfloat16),
        "w3": jnp.asarray(d3, jnp.bfloat16),
        "w_fc": jnp.asarray(wfc2, jnp.bfloat16),
        "b1": tile_bias(params["b1"], w1_out, pad=pad1),
        "b2": tile_bias(params["b2"], w2_out),
        "b3": tile_bias(params["b3"], w3_out),
        "b_fc": jnp.asarray(np.asarray(params["b_fc"], np.float32)[None, :]),
    }


# ---------------------------------------------------------------------------
# Forward wrapper: single fused pallas_call (no grid, everything in VMEM).
# ---------------------------------------------------------------------------
def nature_forward(x_nchw, prep):
    B, C, H, W = x_nchw.shape
    feat = prep["b_fc"].shape[1]
    N1, N2, N3 = prep["b1"].shape[1], prep["b2"].shape[1], prep["b3"].shape[1]
    k1 = prep["w1"].shape[0] // (W * C)          # 8
    k2 = prep["w2"].shape[0] // N1               # 4
    k3 = prep["w3"].shape[0] // N2               # 3
    assert H == W and H % k1 == 0
    G = H // k1                                  # 8
    H1 = (H - k1) // 4 + 1                       # 15
    H2 = (H1 - k2) // 2 + 1                      # 6
    H3 = (H2 - k3) // 1 + 1                      # 4
    KFC = prep["w_fc"].shape[0]                  # 1024 == H3 * N3

    # Input layout plumbing only: NCHW -> (B*G, k1*W*C) with rows pre-grouped
    # by k1 so every in-kernel slice is unit-stride.
    x_rows = jnp.transpose(x_nchw, (0, 2, 3, 1)).reshape(B * G, k1 * W * C)

    vmem = pl.BlockSpec(memory_space=pltpu.MemorySpace.VMEM)
    return pl.pallas_call(
        _nature_fused_kernel,
        out_shape=jax.ShapeDtypeStruct((B, feat), jnp.float32),
        in_specs=[vmem] * 9,
        out_specs=vmem,
        scratch_shapes=[
            pltpu.VMEM((B * H1, k1 * W * C), jnp.float32),   # l1: conv1 GEMM LHS
            pltpu.VMEM((B * H1, N1), jnp.float32),           # a1
            pltpu.VMEM((B * H2, k2 * N1), jnp.float32),      # l2
            pltpu.VMEM((B * H2, N2), jnp.float32),           # a2
            pltpu.VMEM((B * H3, k3 * N2), jnp.float32),      # l3
            pltpu.VMEM((B * H3, N3), jnp.float32),           # a3
            pltpu.VMEM((B, KFC), jnp.float32),               # lfc
        ],
    )(x_rows, prep["w1"], prep["b1"], prep["w2"], prep["b2"],
      prep["w3"], prep["b3"], prep["w_fc"], prep["b_fc"])


# ---------------------------------------------------------------------------
# Deterministic synthetic parameters (shapes from Nature.__init__).
# TODO(synk): module uses orthogonal_init; scaled-normal init used instead
# (init-time only, forward-pass semantics are unchanged).
# ---------------------------------------------------------------------------
def init_params(key, in_channels, feature_dim):
    k1, k2, k3, k4, kb = jax.random.split(key, 5)
    b1k, b2k, b3k, bfk = jax.random.split(kb, 4)

    def w(k, shape):
        fan_in = int(np.prod(shape[1:]))
        return jax.random.normal(k, shape, jnp.float32) * (2.0 / fan_in) ** 0.5

    def b(k, n):
        return 0.01 * jax.random.normal(k, (n,), jnp.float32)

    return {
        "w1": w(k1, (32, in_channels, 8, 8)), "b1": b(b1k, 32),
        "w2": w(k2, (64, 32, 4, 4)),          "b2": b(b2k, 64),
        "w3": w(k3, (64, 64, 3, 3)),          "b3": b(b3k, 64),
        "w_fc": w(k4, (feature_dim, 1024)),   "b_fc": b(bfk, feature_dim),
    }


# Pure-JAX reference.  mimic_bf16=True rounds every MXU operand (inputs to each
# conv/FC and the weights) to bf16 exactly like the kernel does, so the compare
# only sees accumulation-order noise.
def reference_forward(x_nchw, params, mimic_bf16=False):
    def rnd(a):
        return a.astype(jnp.bfloat16).astype(jnp.float32) if mimic_bf16 else a

    def conv(x, w, b, s):
        y = jax.lax.conv_general_dilated(
            rnd(x), rnd(w), (s, s), "VALID",
            dimension_numbers=("NCHW", "OIHW", "NCHW"),
            precision=jax.lax.Precision.HIGHEST)
        return jnp.maximum(y + b[None, :, None, None], 0.0)

    x = conv(x_nchw, params["w1"], params["b1"], 4)
    x = conv(x, params["w2"], params["b2"], 2)
    x = conv(x, params["w3"], params["b3"], 1)
    flat = x.reshape(x.shape[0], -1)
    out = jnp.dot(rnd(flat), rnd(params["w_fc"]).T,
                  precision=jax.lax.Precision.HIGHEST) + params["b_fc"]
    return jnp.maximum(out, 0.0)


if __name__ == "__main__":
    # Linear(in_features=1024) pins the input: 64x64 -> 15 -> 6 -> 4 (64*4*4=1024).
    batch, in_channels, spatial, feature_dim = 2, 3, 64, 256

    key = jax.random.PRNGKey(0)
    kx, kp = jax.random.split(key)
    x = jax.random.normal(kx, (batch, in_channels, spatial, spatial), jnp.float32)
    params = init_params(kp, in_channels, feature_dim)
    prep = prepare_params(params, spatial=spatial)      # host-side, once

    fwd = jax.jit(nature_forward)
    out = jax.block_until_ready(fwd(x, prep))
    assert out.shape == (batch, feature_dim), out.shape

    ref = reference_forward(x, params, mimic_bf16=True)
    err = float(jnp.max(jnp.abs(out - ref)))
    assert jnp.allclose(out, ref, atol=1e-2, rtol=1e-2), err

    print("KERNEL_OK")
</pallas_src>

<mosaic_0001>
module attributes {stable_mosaic.version = 11 : i64} {
  func.func @_nature_fused_kernel(%arg0: memref<16x1536xf32, #tpu.memory_space<vmem>>, %arg1: memref<1536x512xbf16, #tpu.memory_space<vmem>>, %arg2: memref<1x512xf32, #tpu.memory_space<vmem>>, %arg3: memref<2048x384xbf16, #tpu.memory_space<vmem>>, %arg4: memref<1x384xf32, #tpu.memory_space<vmem>>, %arg5: memref<1152x256xbf16, #tpu.memory_space<vmem>>, %arg6: memref<1x256xf32, #tpu.memory_space<vmem>>, %arg7: memref<1024x256xbf16, #tpu.memory_space<vmem>>, %arg8: memref<1x256xf32, #tpu.memory_space<vmem>>, %arg9: memref<2x256xf32, #tpu.memory_space<vmem>>, %arg10: memref<30x1536xf32, #tpu.memory_space<vmem>>, %arg11: memref<30x512xf32, #tpu.memory_space<vmem>>, %arg12: memref<12x2048xf32, #tpu.memory_space<vmem>>, %arg13: memref<12x384xf32, #tpu.memory_space<vmem>>, %arg14: memref<8x1152xf32, #tpu.memory_space<vmem>>, %arg15: memref<8x256xf32, #tpu.memory_space<vmem>>, %arg16: memref<2x1024xf32, #tpu.memory_space<vmem>>) attributes {dimension_semantics = [], scalar_prefetch = 0 : i64, scratch_operands = 7 : i64, tpu.core_type = #tpu.core_type<tc>} {
    %c0 = arith.constant 0 : index
    %c0_0 = arith.constant 0 : index
    %0 = vector.load %arg0[%c0, %c0_0] : memref<16x1536xf32, #tpu.memory_space<vmem>>, vector<8x1536xf32>
    %c0_1 = arith.constant 0 : index
    %c0_2 = arith.constant 0 : index
    %1 = vector.load %arg10[%c0_1, %c0_2] : memref<30x1536xf32, #tpu.memory_space<vmem>>, vector<8x1536xf32>
    tpu.vector_store %arg10[%c0_1, %c0_2], %0 {strides = array<i32>} : memref<30x1536xf32, #tpu.memory_space<vmem>>, vector<8x1536xf32>,
    %c0_3 = arith.constant 0 : index
    %c768 = arith.constant 768 : index
    %2 = vector.load %arg0[%c0_3, %c768] : memref<16x1536xf32, #tpu.memory_space<vmem>>, vector<7x768xf32>
    %c16 = arith.constant 16 : index
    %c0_4 = arith.constant 0 : index
    %3 = vector.load %arg10[%c16, %c0_4] : memref<30x1536xf32, #tpu.memory_space<vmem>>, vector<7x768xf32>
    tpu.vector_store %arg10[%c16, %c0_4], %2 {strides = array<i32>} : memref<30x1536xf32, #tpu.memory_space<vmem>>, vector<7x768xf32>,
    %c1 = arith.constant 1 : index
    %c0_5 = arith.constant 0 : index
    %4 = vector.load %arg0[%c1, %c0_5] : memref<16x1536xf32, #tpu.memory_space<vmem>>, vector<7x768xf32>
    %c16_6 = arith.constant 16 : index
    %c768_7 = arith.constant 768 : index
    %5 = vector.load %arg10[%c16_6, %c768_7] : memref<30x1536xf32, #tpu.memory_space<vmem>>, vector<7x768xf32>
    tpu.vector_store %arg10[%c16_6, %c768_7], %4 {strides = array<i32>} : memref<30x1536xf32, #tpu.memory_space<vmem>>, vector<7x768xf32>,
    %c8 = arith.constant 8 : index
    %c0_8 = arith.constant 0 : index
    %6 = vector.load %arg0[%c8, %c0_8] : memref<16x1536xf32, #tpu.memory_space<vmem>>, vector<8x1536xf32>
    %c8_9 = arith.constant 8 : index
    %c0_10 = arith.constant 0 : index
    %7 = vector.load %arg10[%c8_9, %c0_10] : memref<30x1536xf32, #tpu.memory_space<vmem>>, vector<8x1536xf32>
    tpu.vector_store %arg10[%c8_9, %c0_10], %6 {strides = array<i32>} : memref<30x1536xf32, #tpu.memory_space<vmem>>, vector<8x1536xf32>,
    %c8_11 = arith.constant 8 : index
    %c768_12 = arith.constant 768 : index
    %8 = vector.load %arg0[%c8_11, %c768_12] : memref<16x1536xf32, #tpu.memory_space<vmem>>, vector<7x768xf32>
    %c23 = arith.constant 23 : index
    %c0_13 = arith.constant 0 : index
    %9 = vector.load %arg10[%c23, %c0_13] : memref<30x1536xf32, #tpu.memory_space<vmem>>, vector<7x768xf32>
    tpu.vector_store %arg10[%c23, %c0_13], %8 {strides = array<i32>} : memref<30x1536xf32, #tpu.memory_space<vmem>>, vector<7x768xf32>,
    %c9 = arith.constant 9 : index
    %c0_14 = arith.constant 0 : index
    %10 = vector.load %arg0[%c9, %c0_14] : memref<16x1536xf32, #tpu.memory_space<vmem>>, vector<7x768xf32>
    %c23_15 = arith.constant 23 : index
    %c768_16 = arith.constant 768 : index
    %11 = vector.load %arg10[%c23_15, %c768_16] : memref<30x1536xf32, #tpu.memory_space<vmem>>, vector<7x768xf32>
    tpu.vector_store %arg10[%c23_15, %c768_16], %10 {strides = array<i32>} : memref<30x1536xf32, #tpu.memory_space<vmem>>, vector<7x768xf32>,
    %c0_17 = arith.constant 0 : index
    %c0_18 = arith.constant 0 : index
    %12 = vector.load %arg10[%c0_17, %c0_18] : memref<30x1536xf32, #tpu.memory_space<vmem>>, vector<30x1536xf32>
    %13 = arith.truncf %12 : vector<30x1536xf32> to vector<30x1536xbf16>
    %c0_19 = arith.constant 0 : index
    %c0_20 = arith.constant 0 : index
    %14 = vector.load %arg1[%c0_19, %c0_20] : memref<1536x512xbf16, #tpu.memory_space<vmem>>, vector<1536x512xbf16>
    %cst = arith.constant dense<0.000000e+00> : vector<30x512xf32>
    %15 = tpu.matmul %13, %14, %cst {dimension_numbers = #tpu.dot_dimension_numbers<[1], [0], [0], [1], [0, 0, 1, 1], [], []>} : vector<30x1536xbf16>, vector<1536x512xbf16>, vector<30x512xf32> -> vector<30x512xf32>
    %c0_21 = arith.constant 0 : index
    %c0_22 = arith.constant 0 : index
    %16 = vector.load %arg2[%c0_21, %c0_22] : memref<1x512xf32, #tpu.memory_space<vmem>>, vector<1x512xf32>
    %17 = vector.broadcast %16 : vector<1x512xf32> to vector<30x512xf32>
    %18 = arith.addf %15, %17 : vector<30x512xf32>
    %cst_23 = arith.constant 0.000000e+00 : f32
    %19 = vector.broadcast %cst_23 : f32 to vector<30x512xf32>
    %20 = arith.maximumf %18, %19 : vector<30x512xf32>
    %c0_24 = arith.constant 0 : index
    %c0_25 = arith.constant 0 : index
    %21 = vector.load %arg11[%c0_24, %c0_25] : memref<30x512xf32, #tpu.memory_space<vmem>>, vector<30x512xf32>
    tpu.vector_store %arg11[%c0_24, %c0_25], %20 {strides = array<i32>} : memref<30x512xf32, #tpu.memory_space<vmem>>, vector<30x512xf32>,
    %c0_26 = arith.constant 0 : index
    %c0_27 = arith.constant 0 : index
    %22 = vector.load %arg11[%c0_26, %c0_27] : memref<30x512xf32, #tpu.memory_space<vmem>>, vector<6x512xf32>
    %c0_28 = arith.constant 0 : index
    %c0_29 = arith.constant 0 : index
    %23 = vector.load %arg12[%c0_28, %c0_29] : memref<12x2048xf32, #tpu.memory_space<vmem>>, vector<6x512xf32>
    tpu.vector_store %arg12[%c0_28, %c0_29], %22 {strides = array<i32>} : memref<12x2048xf32, #tpu.memory_space<vmem>>, vector<6x512xf32>,
    %c16_30 = arith.constant 16 : index
    %c0_31 = arith.constant 0 : index
    %24 = vector.load %arg11[%c16_30, %c0_31] : memref<30x512xf32, #tpu.memory_space<vmem>>, vector<6x512xf32>
    %c0_32 = arith.constant 0 : index
    %c512 = arith.constant 512 : index
    %25 = vector.load %arg12[%c0_32, %c512] : memref<12x2048xf32, #tpu.memory_space<vmem>>, vector<6x512xf32>
    tpu.vector_store %arg12[%c0_32, %c512], %24 {strides = array<i32>} : memref<12x2048xf32, #tpu.memory_space<vmem>>, vector<6x512xf32>,
    %c1_33 = arith.constant 1 : index
    %c0_34 = arith.constant 0 : index
    %26 = vector.load %arg11[%c1_33, %c0_34] : memref<30x512xf32, #tpu.memory_space<vmem>>, vector<6x512xf32>
    %c0_35 = arith.constant 0 : index
    %c1024 = arith.constant 1024 : index
    %27 = vector.load %arg12[%c0_35, %c1024] : memref<12x2048xf32, #tpu.memory_space<vmem>>, vector<6x512xf32>
    tpu.vector_store %arg12[%c0_35, %c1024], %26 {strides = array<i32>} : memref<12x2048xf32, #tpu.memory_space<vmem>>, vector<6x512xf32>,
    %c17 = arith.constant 17 : index
    %c0_36 = arith.constant 0 : index
    %28 = vector.load %arg11[%c17, %c0_36] : memref<30x512xf32, #tpu.memory_space<vmem>>, vector<6x512xf32>
    %c0_37 = arith.constant 0 : index
    %c1536 = arith.constant 1536 : index
    %29 = vector.load %arg12[%c0_37, %c1536] : memref<12x2048xf32, #tpu.memory_space<vmem>>, vector<6x512xf32>
    tpu.vector_store %arg12[%c0_37, %c1536], %28 {strides = array<i32>} : memref<12x2048xf32, #tpu.memory_space<vmem>>, vector<6x512xf32>,
    %c8_38 = arith.constant 8 : index
    %c0_39 = arith.constant 0 : index
    %30 = vector.load %arg11[%c8_38, %c0_39] : memref<30x512xf32, #tpu.memory_space<vmem>>, vector<6x512xf32>
    %c6 = arith.constant 6 : index
    %c0_40 = arith.constant 0 : index
    %31 = vector.load %arg12[%c6, %c0_40] : memref<12x2048xf32, #tpu.memory_space<vmem>>, vector<6x512xf32>
    tpu.vector_store %arg12[%c6, %c0_40], %30 {strides = array<i32>} : memref<12x2048xf32, #tpu.memory_space<vmem>>, vector<6x512xf32>,
    %c23_41 = arith.constant 23 : index
    %c0_42 = arith.constant 0 : index
    %32 = vector.load %arg11[%c23_41, %c0_42] : memref<30x512xf32, #tpu.memory_space<vmem>>, vector<6x512xf32>
    %c6_43 = arith.constant 6 : index
    %c512_44 = arith.constant 512 : index
    %33 = vector.load %arg12[%c6_43, %c512_44] : memref<12x2048xf32, #tpu.memory_space<vmem>>, vector<6x512xf32>
    tpu.vector_store %arg12[%c6_43, %c512_44], %32 {strides = array<i32>} : memref<12x2048xf32, #tpu.memory_space<vmem>>, vector<6x512xf32>,
    %c9_45 = arith.constant 9 : index
    %c0_46 = arith.constant 0 : index
    %34 = vector.load %arg11[%c9_45, %c0_46] : memref<30x512xf32, #tpu.memory_space<vmem>>, vector<6x512xf32>
    %c6_47 = arith.constant 6 : index
    %c1024_48 = arith.constant 1024 : index
    %35 = vector.load %arg12[%c6_47, %c1024_48] : memref<12x2048xf32, #tpu.memory_space<vmem>>, vector<6x512xf32>
    tpu.vector_store %arg12[%c6_47, %c1024_48], %34 {strides = array<i32>} : memref<12x2048xf32, #tpu.memory_space<vmem>>, vector<6x512xf32>,
    %c24 = arith.constant 24 : index
    %c0_49 = arith.constant 0 : index
    %36 = vector.load %arg11[%c24, %c0_49] : memref<30x512xf32, #tpu.memory_space<vmem>>, vector<6x512xf32>
    %c6_50 = arith.constant 6 : index
    %c1536_51 = arith.constant 1536 : index
    %37 = vector.load %arg12[%c6_50, %c1536_51] : memref<12x2048xf32, #tpu.memory_space<vmem>>, vector<6x512xf32>
    tpu.vector_store %arg12[%c6_50, %c1536_51], %36 {strides = array<i32>} : memref<12x2048xf32, #tpu.memory_space<vmem>>, vector<6x512xf32>,
    %c0_52 = arith.constant 0 : index
    %c0_53 = arith.constant 0 : index
    %38 = vector.load %arg12[%c0_52, %c0_53] : memref<12x2048xf32, #tpu.memory_space<vmem>>, vector<12x2048xf32>
    %39 = arith.truncf %38 : vector<12x2048xf32> to vector<12x2048xbf16>
    %c0_54 = arith.constant 0 : index
    %c0_55 = arith.constant 0 : index
    %40 = vector.load %arg3[%c0_54, %c0_55] : memref<2048x384xbf16, #tpu.memory_space<vmem>>, vector<2048x384xbf16>
    %cst_56 = arith.constant dense<0.000000e+00> : vector<12x384xf32>
    %41 = tpu.matmul %39, %40, %cst_56 {dimension_numbers = #tpu.dot_dimension_numbers<[1], [0], [0], [1], [0, 0, 1, 1], [], []>} : vector<12x2048xbf16>, vector<2048x384xbf16>, vector<12x384xf32> -> vector<12x384xf32>
    %c0_57 = arith.constant 0 : index
    %c0_58 = arith.constant 0 : index
    %42 = vector.load %arg4[%c0_57, %c0_58] : memref<1x384xf32, #tpu.memory_space<vmem>>, vector<1x384xf32>
    %43 = vector.broadcast %42 : vector<1x384xf32> to vector<12x384xf32>
    %44 = arith.addf %41, %43 : vector<12x384xf32>
    %cst_59 = arith.constant 0.000000e+00 : f32
    %45 = vector.broadcast %cst_59 : f32 to vector<12x384xf32>
    %46 = arith.maximumf %44, %45 : vector<12x384xf32>
    %c0_60 = arith.constant 0 : index
    %c0_61 = arith.constant 0 : index
    %47 = vector.load %arg13[%c0_60, %c0_61] : memref<12x384xf32, #tpu.memory_space<vmem>>, vector<12x384xf32>
    tpu.vector_store %arg13[%c0_60, %c0_61], %46 {strides = array<i32>} : memref<12x384xf32, #tpu.memory_space<vmem>>, vector<12x384xf32>,
    %c0_62 = arith.constant 0 : index
    %c0_63 = arith.constant 0 : index
    %48 = vector.load %arg13[%c0_62, %c0_63] : memref<12x384xf32, #tpu.memory_space<vmem>>, vector<4x384xf32>
    %c0_64 = arith.constant 0 : index
    %c0_65 = arith.constant 0 : index
    %49 = vector.load %arg14[%c0_64, %c0_65] : memref<8x1152xf32, #tpu.memory_space<vmem>>, vector<4x384xf32>
    tpu.vector_store %arg14[%c0_64, %c0_65], %48 {strides = array<i32>} : memref<8x1152xf32, #tpu.memory_space<vmem>>, vector<4x384xf32>,
    %c1_66 = arith.constant 1 : index
    %c0_67 = arith.constant 0 : index
    %50 = vector.load %arg13[%c1_66, %c0_67] : memref<12x384xf32, #tpu.memory_space<vmem>>, vector<4x384xf32>
    %c0_68 = arith.constant 0 : index
    %c384 = arith.constant 384 : index
    %51 = vector.load %arg14[%c0_68, %c384] : memref<8x1152xf32, #tpu.memory_space<vmem>>, vector<4x384xf32>
    tpu.vector_store %arg14[%c0_68, %c384], %50 {strides = array<i32>} : memref<8x1152xf32, #tpu.memory_space<vmem>>, vector<4x384xf32>,
    %c2 = arith.constant 2 : index
    %c0_69 = arith.constant 0 : index
    %52 = vector.load %arg13[%c2, %c0_69] : memref<12x384xf32, #tpu.memory_space<vmem>>, vector<4x384xf32>
    %c0_70 = arith.constant 0 : index
    %c768_71 = arith.constant 768 : index
    %53 = vector.load %arg14[%c0_70, %c768_71] : memref<8x1152xf32, #tpu.memory_space<vmem>>, vector<4x384xf32>
    tpu.vector_store %arg14[%c0_70, %c768_71], %52 {strides = array<i32>} : memref<8x1152xf32, #tpu.memory_space<vmem>>, vector<4x384xf32>,
    %c6_72 = arith.constant 6 : index
    %c0_73 = arith.constant 0 : index
    %54 = vector.load %arg13[%c6_72, %c0_73] : memref<12x384xf32, #tpu.memory_space<vmem>>, vector<4x384xf32>
    %c4 = arith.constant 4 : index
    %c0_74 = arith.constant 0 : index
    %55 = vector.load %arg14[%c4, %c0_74] : memref<8x1152xf32, #tpu.memory_space<vmem>>, vector<4x384xf32>
    tpu.vector_store %arg14[%c4, %c0_74], %54 {strides = array<i32>} : memref<8x1152xf32, #tpu.memory_space<vmem>>, vector<4x384xf32>,
    %c7 = arith.constant 7 : index
    %c0_75 = arith.constant 0 : index
    %56 = vector.load %arg13[%c7, %c0_75] : memref<12x384xf32, #tpu.memory_space<vmem>>, vector<4x384xf32>
    %c4_76 = arith.constant 4 : index
    %c384_77 = arith.constant 384 : index
    %57 = vector.load %arg14[%c4_76, %c384_77] : memref<8x1152xf32, #tpu.memory_space<vmem>>, vector<4x384xf32>
    tpu.vector_store %arg14[%c4_76, %c384_77], %56 {strides = array<i32>} : memref<8x1152xf32, #tpu.memory_space<vmem>>, vector<4x384xf32>,
    %c8_78 = arith.constant 8 : index
    %c0_79 = arith.constant 0 : index
    %58 = vector.load %arg13[%c8_78, %c0_79] : memref<12x384xf32, #tpu.memory_space<vmem>>, vector<4x384xf32>
    %c4_80 = arith.constant 4 : index
    %c768_81 = arith.constant 768 : index
    %59 = vector.load %arg14[%c4_80, %c768_81] : memref<8x1152xf32, #tpu.memory_space<vmem>>, vector<4x384xf32>
    tpu.vector_store %arg14[%c4_80, %c768_81], %58 {strides = array<i32>} : memref<8x1152xf32, #tpu.memory_space<vmem>>, vector<4x384xf32>,
    %c0_82 = arith.constant 0 : index
    %c0_83 = arith.constant 0 : index
    %60 = vector.load %arg14[%c0_82, %c0_83] : memref<8x1152xf32, #tpu.memory_space<vmem>>, vector<8x1152xf32>
    %61 = arith.truncf %60 : vector<8x1152xf32> to vector<8x1152xbf16>
    %c0_84 = arith.constant 0 : index
    %c0_85 = arith.constant 0 : index
    %62 = vector.load %arg5[%c0_84, %c0_85] : memref<1152x256xbf16, #tpu.memory_space<vmem>>, vector<1152x256xbf16>
    %cst_86 = arith.constant dense<0.000000e+00> : vector<8x256xf32>
    %63 = tpu.matmul %61, %62, %cst_86 {dimension_numbers = #tpu.dot_dimension_numbers<[1], [0], [0], [1], [0, 0, 1, 1], [], []>} : vector<8x1152xbf16>, vector<1152x256xbf16>, vector<8x256xf32> -> vector<8x256xf32>
    %c0_87 = arith.constant 0 : index
    %c0_88 = arith.constant 0 : index
    %64 = vector.load %arg6[%c0_87, %c0_88] : memref<1x256xf32, #tpu.memory_space<vmem>>, vector<1x256xf32>
    %65 = vector.broadcast %64 : vector<1x256xf32> to vector<8x256xf32>
    %66 = arith.addf %63, %65 : vector<8x256xf32>
    %cst_89 = arith.constant 0.000000e+00 : f32
    %67 = vector.broadcast %cst_89 : f32 to vector<8x256xf32>
    %68 = arith.maximumf %66, %67 : vector<8x256xf32>
    %c0_90 = arith.constant 0 : index
    %c0_91 = arith.constant 0 : index
    %69 = vector.load %arg15[%c0_90, %c0_91] : memref<8x256xf32, #tpu.memory_space<vmem>>, vector<8x256xf32>
    tpu.vector_store %arg15[%c0_90, %c0_91], %68 {strides = array<i32>} : memref<8x256xf32, #tpu.memory_space<vmem>>, vector<8x256xf32>,
    %c0_92 = arith.constant 0 : index
    %c0_93 = arith.constant 0 : index
    %70 = vector.load %arg15[%c0_92, %c0_93] : memref<8x256xf32, #tpu.memory_space<vmem>>, vector<1x256xf32>
    %c0_94 = arith.constant 0 : index
    %c0_95 = arith.constant 0 : index
    %71 = vector.load %arg16[%c0_94, %c0_95] : memref<2x1024xf32, #tpu.memory_space<vmem>>, vector<1x256xf32>
    tpu.vector_store %arg16[%c0_94, %c0_95], %70 {strides = array<i32>} : memref<2x1024xf32, #tpu.memory_space<vmem>>, vector<1x256xf32>,
    %c1_96 = arith.constant 1 : index
    %c0_97 = arith.constant 0 : index
    %72 = vector.load %arg15[%c1_96, %c0_97] : memref<8x256xf32, #tpu.memory_space<vmem>>, vector<1x256xf32>
    %c0_98 = arith.constant 0 : index
    %c256 = arith.constant 256 : index
    %73 = vector.load %arg16[%c0_98, %c256] : memref<2x1024xf32, #tpu.memory_space<vmem>>, vector<1x256xf32>
    tpu.vector_store %arg16[%c0_98, %c256], %72 {strides = array<i32>} : memref<2x1024xf32, #tpu.memory_space<vmem>>, vector<1x256xf32>,
    %c2_99 = arith.constant 2 : index
    %c0_100 = arith.constant 0 : index
    %74 = vector.load %arg15[%c2_99, %c0_100] : memref<8x256xf32, #tpu.memory_space<vmem>>, vector<1x256xf32>
    %c0_101 = arith.constant 0 : index
    %c512_102 = arith.constant 512 : index
    %75 = vector.load %arg16[%c0_101, %c512_102] : memref<2x1024xf32, #tpu.memory_space<vmem>>, vector<1x256xf32>
    tpu.vector_store %arg16[%c0_101, %c512_102], %74 {strides = array<i32>} : memref<2x1024xf32, #tpu.memory_space<vmem>>, vector<1x256xf32>,
    %c3 = arith.constant 3 : index
    %c0_103 = arith.constant 0 : index
    %76 = vector.load %arg15[%c3, %c0_103] : memref<8x256xf32, #tpu.memory_space<vmem>>, vector<1x256xf32>
    %c0_104 = arith.constant 0 : index
    %c768_105 = arith.constant 768 : index
    %77 = vector.load %arg16[%c0_104, %c768_105] : memref<2x1024xf32, #tpu.memory_space<vmem>>, vector<1x256xf32>
    tpu.vector_store %arg16[%c0_104, %c768_105], %76 {strides = array<i32>} : memref<2x1024xf32, #tpu.memory_space<vmem>>, vector<1x256xf32>,
    %c4_106 = arith.constant 4 : index
    %c0_107 = arith.constant 0 : index
    %78 = vector.load %arg15[%c4_106, %c0_107] : memref<8x256xf32, #tpu.memory_space<vmem>>, vector<1x256xf32>
    %c1_108 = arith.constant 1 : index
    %c0_109 = arith.constant 0 : index
    %79 = vector.load %arg16[%c1_108, %c0_109] : memref<2x1024xf32, #tpu.memory_space<vmem>>, vector<1x256xf32>
    tpu.vector_store %arg16[%c1_108, %c0_109], %78 {strides = array<i32>} : memref<2x1024xf32, #tpu.memory_space<vmem>>, vector<1x256xf32>,
    %c5 = arith.constant 5 : index
    %c0_110 = arith.constant 0 : index
    %80 = vector.load %arg15[%c5, %c0_110] : memref<8x256xf32, #tpu.memory_space<vmem>>, vector<1x256xf32>
    %c1_111 = arith.constant 1 : index
    %c256_112 = arith.constant 256 : index
    %81 = vector.load %arg16[%c1_111, %c256_112] : memref<2x1024xf32, #tpu.memory_space<vmem>>, vector<1x256xf32>
    tpu.vector_store %arg16[%c1_111, %c256_112], %80 {strides = array<i32>} : memref<2x1024xf32, #tpu.memory_space<vmem>>, vector<1x256xf32>,
    %c6_113 = arith.constant 6 : index
    %c0_114 = arith.constant 0 : index
    %82 = vector.load %arg15[%c6_113, %c0_114] : memref<8x256xf32, #tpu.memory_space<vmem>>, vector<1x256xf32>
    %c1_115 = arith.constant 1 : index
    %c512_116 = arith.constant 512 : index
    %83 = vector.load %arg16[%c1_115, %c512_116] : memref<2x1024xf32, #tpu.memory_space<vmem>>, vector<1x256xf32>
    tpu.vector_store %arg16[%c1_115, %c512_116], %82 {strides = array<i32>} : memref<2x1024xf32, #tpu.memory_space<vmem>>, vector<1x256xf32>,
    %c7_117 = arith.constant 7 : index
    %c0_118 = arith.constant 0 : index
    %84 = vector.load %arg15[%c7_117, %c0_118] : memref<8x256xf32, #tpu.memory_space<vmem>>, vector<1x256xf32>
    %c1_119 = arith.constant 1 : index
    %c768_120 = arith.constant 768 : index
    %85 = vector.load %arg16[%c1_119, %c768_120] : memref<2x1024xf32, #tpu.memory_space<vmem>>, vector<1x256xf32>
    tpu.vector_store %arg16[%c1_119, %c768_120], %84 {strides = array<i32>} : memref<2x1024xf32, #tpu.memory_space<vmem>>, vector<1x256xf32>,
    %c0_121 = arith.constant 0 : index
    %c0_122 = arith.constant 0 : index
    %86 = vector.load %arg16[%c0_121, %c0_122] : memref<2x1024xf32, #tpu.memory_space<vmem>>, vector<2x1024xf32>
    %87 = arith.truncf %86 : vector<2x1024xf32> to vector<2x1024xbf16>
    %c0_123 = arith.constant 0 : index
    %c0_124 = arith.constant 0 : index
    %88 = vector.load %arg7[%c0_123, %c0_124] : memref<1024x256xbf16, #tpu.memory_space<vmem>>, vector<1024x256xbf16>
    %cst_125 = arith.constant dense<0.000000e+00> : vector<2x256xf32>
    %89 = tpu.matmul %87, %88, %cst_125 {dimension_numbers = #tpu.dot_dimension_numbers<[1], [0], [0], [1], [0, 0, 1, 1], [], []>} : vector<2x1024xbf16>, vector<1024x256xbf16>, vector<2x256xf32> -> vector<2x256xf32>
    %c0_126 = arith.constant 0 : index
    %c0_127 = arith.constant 0 : index
    %90 = vector.load %arg8[%c0_126, %c0_127] : memref<1x256xf32, #tpu.memory_space<vmem>>, vector<1x256xf32>
    %91 = vector.broadcast %90 : vector<1x256xf32> to vector<2x256xf32>
    %92 = arith.addf %89, %91 : vector<2x256xf32>
    %cst_128 = arith.constant 0.000000e+00 : f32
    %93 = vector.broadcast %cst_128 : f32 to vector<2x256xf32>
    %94 = arith.maximumf %92, %93 : vector<2x256xf32>
    %c0_129 = arith.constant 0 : index
    %c0_130 = arith.constant 0 : index
    %95 = vector.load %arg9[%c0_129, %c0_130] : memref<2x256xf32, #tpu.memory_space<vmem>>, vector<2x256xf32>
    tpu.vector_store %arg9[%c0_129, %c0_130], %94 {strides = array<i32>} : memref<2x256xf32, #tpu.memory_space<vmem>>, vector<2x256xf32>,
    return
  }
}

</mosaic_0001>

<bundles_post_ra>
// kernel: nature_forward.1
= control target key start
LH: loop header
LB: loop body
LE: loop exit
PB: predicated region body
PF: predicated region fallthrough
CT: control target
= control target key end

     0   :  { %vm3358_vm0 = vcmask 1046528   ;;  %s15546_s0 = inlined_call_operand.vmem [shape: f32[16,1536], index: 0, kind: input, shape index: {}]   ;;  %s15547_s1 = inlined_call_operand.vmem [shape: bf16[1536,512], index: 1, kind: input, shape index: {}]   ;;  %s15548_s2 = inlined_call_operand.vmem [shape: f32[1,512], index: 2, kind: input, shape index: {}]   ;;  %s15549_s3 = inlined_call_operand.vmem [shape: bf16[2048,384], index: 3, kind: input, shape index: {}]   ;;  %s15550_s4 = inlined_call_operand.vmem [shape: f32[1,384], index: 4, kind: input, shape index: {}]   ;;  %s15551_s5 = inlined_call_operand.vmem [shape: bf16[1152,256], index: 5, kind: input, shape index: {}]   ;;  %s15552_s6 = inlined_call_operand.vmem [shape: f32[1,256], index: 6, kind: input, shape index: {}]   ;;  %s15553_s7 = inlined_call_operand.vmem [shape: bf16[1024,256], index: 7, kind: input, shape index: {}]   ;;  %s15554_s8 = inlined_call_operand.vmem [shape: f32[1,256], index: 8, kind: input, shape index: {}]   ;;  %s15555_s9 = inlined_call_operand.hbm [shape: f32[2,256], index: 9, kind: output, shape index: {}]  }
   0x1   :  { %v10394_v0 = vld [vmem:[%s15547_s1 + $0x4] ss:$16 sps:$4 sm:$0xff]   ;;  %v10398_v2 = vld [vmem:[%s15547_s1] ss:$16 sps:$4 sm:$0xff]   ;;  %v35_v48 = vld [vmem:[%s15546_s0 + $0x8] sm:$0xff] }
   0x2   :  { %v10396_v1 = vld [vmem:[%s15547_s1 + $0x404] ss:$16 sps:$4 sm:$0xff]   ;;  %2594 = vmatprep.subr.bf16.mxu1 %v10394_v0  ;;  %v10399_v3 = vld [vmem:[%s15547_s1 + $0x400] ss:$16 sps:$4 sm:$0xff]   ;;  %v101_v49 = vld [vmem:[%s15546_s0 + $0x68] sm:$0xff] }
   0x3   :  { %2700 = vmatprep.subr.bf16.mxu0 %v10396_v1  ;;  %v10400_v4 = vld [vmem:[%s15547_s1 + $0x24] ss:$16 sps:$4 sm:$0xff]   ;;  %2595 = vmatpush1.bf16.msra.mxu1 %v10398_v2  ;;  %v10404_v6 = vld [vmem:[%s15547_s1 + $0x20] ss:$16 sps:$4 sm:$0xff]   ;;  %v12126_v52 = vpack.c.bf16 %v101_v49, %v35_v48  ;;  %v39_v53 = vld [vmem:[%s15546_s0 + $0x28] sm:$0xff] }
   0x4   :  { %2701 = vmatpush1.bf16.msra.mxu0 %v10399_v3  ;;  %v10402_v5 = vld [vmem:[%s15547_s1 + $0x424] ss:$16 sps:$4 sm:$0xff]   ;;  %2596 = vmatprep.subr.bf16.mxu1 %v10400_v4  ;;  %v10405_v7 = vld [vmem:[%s15547_s1 + $0x420] ss:$16 sps:$4 sm:$0xff]   ;;  %v105_v54 = vld [vmem:[%s15546_s0 + $0x88] sm:$0xff] }
   0x5   :  { %2702 = vmatprep.subr.bf16.mxu0 %v10402_v5  ;;  %v10406_v8 = vld [vmem:[%s15547_s1 + $0x44] ss:$16 sps:$4 sm:$0xff]   ;;  %v10410_v10 = vld [vmem:[%s15547_s1 + $0x40] ss:$16 sps:$4 sm:$0xff]   ;;  %2626 = vmatprep.mubr.bf16.mxu1 %v12126_v52  ;;  %v12141_v57 = vpack.c.bf16 %v105_v54, %v39_v53 }
   0x6   :  { %v10408_v9 = vld [vmem:[%s15547_s1 + $0x444] ss:$16 sps:$4 sm:$0xff]   ;;  %v10411_v11 = vld [vmem:[%s15547_s1 + $0x440] ss:$16 sps:$4 sm:$0xff]  }
   0x7   :  { %2597 = vmatpush1.bf16.msra.mxu1 %v10404_v6  ;;  %v10412_v12 = vld [vmem:[%s15547_s1 + $0x64] ss:$16 sps:$4 sm:$0xff]   ;;  %v10416_v14 = vld [vmem:[%s15547_s1 + $0x60] ss:$16 sps:$4 sm:$0xff]   ;;  %2732 = vmatprep.mubr.bf16.mxu0 %v12141_v57 }
   0x8   :  { %2703 = vmatpush1.bf16.msra.mxu0 %v10405_v7  ;;  %2598 = vmatprep.subr.bf16.mxu1 %v10406_v8  ;;  %v10414_v13 = vld [vmem:[%s15547_s1 + $0x464] ss:$16 sps:$4 sm:$0xff]   ;;  %v10417_v15 = vld [vmem:[%s15547_s1 + $0x460] ss:$16 sps:$4 sm:$0xff]  }
   0x9   :  { %2704 = vmatprep.subr.bf16.mxu0 %v10408_v9  ;;  %v10418_v16 = vld [vmem:[%s15547_s1 + $0x84] ss:$16 sps:$4 sm:$0xff]   ;;  %v10422_v18 = vld [vmem:[%s15547_s1 + $0x80] ss:$16 sps:$4 sm:$0xff]  }
   0xa   :  { %v10420_v17 = vld [vmem:[%s15547_s1 + $0x484] ss:$16 sps:$4 sm:$0xff]   ;;  %v10423_v19 = vld [vmem:[%s15547_s1 + $0x480] ss:$16 sps:$4 sm:$0xff]  }
   0xb   :  { %2599 = vmatpush1.bf16.msra.mxu1 %v10410_v10  ;;  %v10424_v20 = vld [vmem:[%s15547_s1 + $0xa4] ss:$16 sps:$4 sm:$0xff]   ;;  %v10428_v22 = vld [vmem:[%s15547_s1 + $0xa0] ss:$16 sps:$4 sm:$0xff]  }
   0xc   :  { %2705 = vmatpush1.bf16.msra.mxu0 %v10411_v11  ;;  %2600 = vmatprep.subr.bf16.mxu1 %v10412_v12  ;;  %v10426_v21 = vld [vmem:[%s15547_s1 + $0x4a4] ss:$16 sps:$4 sm:$0xff]   ;;  %v10429_v23 = vld [vmem:[%s15547_s1 + $0x4a0] ss:$16 sps:$4 sm:$0xff]  }
   0xd   :  { %2706 = vmatprep.subr.bf16.mxu0 %v10414_v13  ;;  %v10430_v24 = vld [vmem:[%s15547_s1 + $0xc4] ss:$16 sps:$4 sm:$0xff]   ;;  %v10434_v26 = vld [vmem:[%s15547_s1 + $0xc0] ss:$16 sps:$4 sm:$0xff]  }
   0xe   :  { %v10432_v25 = vld [vmem:[%s15547_s1 + $0x4c4] ss:$16 sps:$4 sm:$0xff]   ;;  %v10435_v27 = vld [vmem:[%s15547_s1 + $0x4c0] ss:$16 sps:$4 sm:$0xff]  }
   0xf   :  { %2601 = vmatpush1.bf16.msra.mxu1 %v10416_v14  ;;  %v10436_v28 = vld [vmem:[%s15547_s1 + $0xe4] ss:$16 sps:$4 sm:$0xff]   ;;  %v10440_v30 = vld [vmem:[%s15547_s1 + $0xe0] ss:$16 sps:$4 sm:$0xff]  }
  0x10   :  { %2707 = vmatpush1.bf16.msra.mxu0 %v10417_v15  ;;  %2602 = vmatprep.subr.bf16.mxu1 %v10418_v16  ;;  %v10438_v29 = vld [vmem:[%s15547_s1 + $0x4e4] ss:$16 sps:$4 sm:$0xff]   ;;  %v10441_v31 = vld [vmem:[%s15547_s1 + $0x4e0] ss:$16 sps:$4 sm:$0xff]  }
  0x11   :  { %2708 = vmatprep.subr.bf16.mxu0 %v10420_v17  ;;  %v10442_v32 = vld [vmem:[%s15547_s1 + $0x104] ss:$16 sps:$4 sm:$0xff]   ;;  %v10446_v34 = vld [vmem:[%s15547_s1 + $0x100] ss:$16 sps:$4 sm:$0xff]  }
  0x12   :  { %v10444_v33 = vld [vmem:[%s15547_s1 + $0x504] ss:$16 sps:$4 sm:$0xff]   ;;  %v10447_v35 = vld [vmem:[%s15547_s1 + $0x500] ss:$16 sps:$4 sm:$0xff]  }
  0x13   :  { %2603 = vmatpush1.bf16.msra.mxu1 %v10422_v18  ;;  %v10448_v36 = vld [vmem:[%s15547_s1 + $0x124] ss:$16 sps:$4 sm:$0xff]   ;;  %v10452_v38 = vld [vmem:[%s15547_s1 + $0x120] ss:$16 sps:$4 sm:$0xff]  }
  0x14   :  { %2709 = vmatpush1.bf16.msra.mxu0 %v10423_v19  ;;  %2604 = vmatprep.subr.bf16.mxu1 %v10424_v20  ;;  %v10450_v37 = vld [vmem:[%s15547_s1 + $0x524] ss:$16 sps:$4 sm:$0xff]   ;;  %v10453_v39 = vld [vmem:[%s15547_s1 + $0x520] ss:$16 sps:$4 sm:$0xff]  }
  0x15   :  { %2710 = vmatprep.subr.bf16.mxu0 %v10426_v21  ;;  %v10454_v40 = vld [vmem:[%s15547_s1 + $0x144] ss:$16 sps:$4 sm:$0xff]   ;;  %v10458_v42 = vld [vmem:[%s15547_s1 + $0x140] ss:$16 sps:$4 sm:$0xff]  }
  0x16   :  { %v10456_v41 = vld [vmem:[%s15547_s1 + $0x544] ss:$16 sps:$4 sm:$0xff]   ;;  %v10459_v43 = vld [vmem:[%s15547_s1 + $0x540] ss:$16 sps:$4 sm:$0xff]  }
  0x17   :  { %2605 = vmatpush1.bf16.msra.mxu1 %v10428_v22  ;;  %v10460_v44 = vld [vmem:[%s15547_s1 + $0x164] ss:$16 sps:$4 sm:$0xff]   ;;  %v10464_v46 = vld [vmem:[%s15547_s1 + $0x160] ss:$16 sps:$4 sm:$0xff]  }
  0x18   :  { %2711 = vmatpush1.bf16.msra.mxu0 %v10429_v23  ;;  %2606 = vmatprep.subr.bf16.mxu1 %v10430_v24  ;;  %v10462_v45 = vld [vmem:[%s15547_s1 + $0x564] ss:$16 sps:$4 sm:$0xff]   ;;  %v10465_v47 = vld [vmem:[%s15547_s1 + $0x560] ss:$16 sps:$4 sm:$0xff]  }
  0x19   :  { %2712 = vmatprep.subr.bf16.mxu0 %v10432_v25  ;;  %v10466_v50 = vld [vmem:[%s15547_s1 + $0x184] ss:$16 sps:$4 sm:$0xff]   ;;  %v10470_v55 = vld [vmem:[%s15547_s1 + $0x180] ss:$16 sps:$4 sm:$0xff]  }
  0x1a   :  { %v10468_v51 = vld [vmem:[%s15547_s1 + $0x584] ss:$16 sps:$4 sm:$0xff]   ;;  %v10471_v56 = vld [vmem:[%s15547_s1 + $0x580] ss:$16 sps:$4 sm:$0xff]  }
  0x1b   :  { %2607 = vmatpush1.bf16.msra.mxu1 %v10434_v26  ;;  %v34_v58 = vld [vmem:[%s15546_s0] sm:$0xff]  ;;  %v62_v49 = vld [vmem:[%s15546_s0 + $0x50] sm:$0x7f] }
  0x1c   :  { %2713 = vmatpush1.bf16.msra.mxu0 %v10435_v27  ;;  %2608 = vmatprep.subr.bf16.mxu1 %v10436_v28  ;;  %v100_v59 = vld [vmem:[%s15546_s0 + $0x60] sm:$0xff]  ;;  %68 = vst [vmem:[#allocation2 + $0xe0] sm:$0x7f] %v62_v49 }
  0x1d   :  { %2714 = vmatprep.subr.bf16.mxu0 %v10438_v29  ;;  %v38_v60 = vld [vmem:[%s15546_s0 + $0x20] sm:$0xff]  ;;  %v12204_v14 = vpack.c.bf16 %v100_v59, %v34_v58  ;;  %v37_v58 = vld [vmem:[%s15546_s0 + $0x18] sm:$0xff] }
  0x1e   :  { %v104_v61 = vld [vmem:[%s15546_s0 + $0x80] sm:$0xff] }
  0x1f   :  { %2609 = vmatpush1.bf16.msra.mxu1 %v10440_v30  ;;  %v10472_v62 = vld [vmem:[%s15547_s1 + $0x1a4] ss:$16 sps:$4 sm:$0xff]   ;;  %v10476_v0 = vld [vmem:[%s15547_s1 + $0x1a0] ss:$16 sps:$4 sm:$0xff]   ;;  %v12206_v15 = vpack.c.bf16 %v104_v61, %v38_v60  ;;  %v103_v61 = vld [vmem:[%s15546_s0 + $0x78] sm:$0xff] }
  0x20   :  { %2715 = vmatpush1.bf16.msra.mxu0 %v10441_v31  ;;  %2610 = vmatprep.subr.bf16.mxu1 %v10442_v32  ;;  %v10474_v63 = vld [vmem:[%s15547_s1 + $0x5a4] ss:$16 sps:$4 sm:$0xff]   ;;  %v10477_v1 = vld [vmem:[%s15547_s1 + $0x5a0] ss:$16 sps:$4 sm:$0xff]  }
  0x21   :  { %2716 = vmatprep.subr.bf16.mxu0 %v10444_v33  ;;  %v10478_v2 = vld [vmem:[%s15547_s1 + $0x1c4] ss:$16 sps:$4 sm:$0xff]   ;;  %v10482_v4 = vld [vmem:[%s15547_s1 + $0x1c0] ss:$16 sps:$4 sm:$0xff]  }
  0x22   :  { %v10480_v3 = vld [vmem:[%s15547_s1 + $0x5c4] ss:$16 sps:$4 sm:$0xff]   ;;  %v10483_v5 = vld [vmem:[%s15547_s1 + $0x5c0] ss:$16 sps:$4 sm:$0xff]  }
  0x23   :  { %2611 = vmatpush1.bf16.msra.mxu1 %v10446_v34  ;;  %v10484_v6 = vld [vmem:[%s15547_s1 + $0x1e4] ss:$16 sps:$4 sm:$0xff]   ;;  %v10488_v8 = vld [vmem:[%s15547_s1 + $0x1e0] ss:$16 sps:$4 sm:$0xff]  }
  0x24   :  { %2717 = vmatpush1.bf16.msra.mxu0 %v10447_v35  ;;  %2612 = vmatprep.subr.bf16.mxu1 %v10448_v36  ;;  %v10486_v7 = vld [vmem:[%s15547_s1 + $0x5e4] ss:$16 sps:$4 sm:$0xff]   ;;  %v10489_v9 = vld [vmem:[%s15547_s1 + $0x5e0] ss:$16 sps:$4 sm:$0xff]   ;;  %v59_v36 = vld [vmem:[%s15546_s0 + $0x38] sm:$0x7f] }
  0x25   :  { %2718 = vmatprep.subr.bf16.mxu0 %v10450_v37  ;;  %v10492_v10 = vld [vmem:[%s15547_s1 + $0x204] ss:$16 sps:$4 sm:$0xff]   ;;  %v10490_v12 = vld [vmem:[%s15547_s1 + $0x200] ss:$16 sps:$4 sm:$0xff]   ;;  %65 = vst [vmem:[#allocation2 + $0xc8] sm:$0x7f] %v59_v36 }
  0x26   :  { %v10495_v11 = vld [vmem:[%s15547_s1 + $0x604] ss:$16 sps:$4 sm:$0xff]   ;;  %v10493_v13 = vld [vmem:[%s15547_s1 + $0x600] ss:$16 sps:$4 sm:$0xff]   ;;  %v125_v37 = vld [vmem:[%s15546_s0 + $0x98] sm:$0x7f] }
  0x27   :  { %2613 = vmatpush1.bf16.msra.mxu1 %v10452_v38  ;;  %v10498_v16 = vld [vmem:[%s15547_s1 + $0x224] ss:$16 sps:$4 sm:$0xff]   ;;  %v10496_v18 = vld [vmem:[%s15547_s1 + $0x220] ss:$16 sps:$4 sm:$0xff]  }
  0x28   :  { %2719 = vmatpush1.bf16.msra.mxu0 %v10453_v39  ;;  %2614 = vmatprep.subr.bf16.mxu1 %v10454_v40  ;;  %v10501_v17 = vld [vmem:[%s15547_s1 + $0x624] ss:$16 sps:$4 sm:$0xff]   ;;  %v10499_v19 = vld [vmem:[%s15547_s1 + $0x620] ss:$16 sps:$4 sm:$0xff]  }
  0x29   :  { %2720 = vmatprep.subr.bf16.mxu0 %v10456_v41  ;;  %v10504_v20 = vld [vmem:[%s15547_s1 + $0x244] ss:$16 sps:$4 sm:$0xff]   ;;  %v10502_v22 = vld [vmem:[%s15547_s1 + $0x240] ss:$16 sps:$4 sm:$0xff]   ;;  %v137_v41 = vrot.slane %v125_v37, 1 }
  0x2a   :  { %v10507_v21 = vld [vmem:[%s15547_s1 + $0x644] ss:$16 sps:$4 sm:$0xff]   ;;  %v10505_v23 = vld [vmem:[%s15547_s1 + $0x640] ss:$16 sps:$4 sm:$0xff]  }
  0x2b   :  { %2615 = vmatpush1.bf16.msra.mxu1 %v10458_v42  ;;  %v10510_v24 = vld [vmem:[%s15547_s1 + $0x264] ss:$16 sps:$4 sm:$0xff]   ;;  %v10508_v26 = vld [vmem:[%s15547_s1 + $0x260] ss:$16 sps:$4 sm:$0xff]   ;;  %149 = vst [vmem:[#allocation2 + $0xc8] sm:$0x80] %v137_v41 }
  0x2c   :  { %2721 = vmatpush1.bf16.msra.mxu0 %v10459_v43  ;;  %2616 = vmatprep.subr.bf16.mxu1 %v10460_v44  ;;  %v10513_v25 = vld [vmem:[%s15547_s1 + $0x664] ss:$16 sps:$4 sm:$0xff]   ;;  %v10511_v27 = vld [vmem:[%s15547_s1 + $0x660] ss:$16 sps:$4 sm:$0xff]   ;;  %v63_v44 = vld [vmem:[%s15546_s0 + $0x58] sm:$0x7f] }
  0x2d   :  { %2722 = vmatprep.subr.bf16.mxu0 %v10462_v45  ;;  %v10516_v28 = vld [vmem:[%s15547_s1 + $0x284] ss:$16 sps:$4 sm:$0xff]   ;;  %v10514_v30 = vld [vmem:[%s15547_s1 + $0x280] ss:$16 sps:$4 sm:$0xff]   ;;  %v129_v45 = vld [vmem:[%s15546_s0 + $0xb8] sm:$0x7f] }
  0x2e   :  { %v10519_v29 = vld [vmem:[%s15547_s1 + $0x684] ss:$16 sps:$4 sm:$0xff]   ;;  %v10517_v31 = vld [vmem:[%s15547_s1 + $0x680] ss:$16 sps:$4 sm:$0xff]   ;;  %155 = vst [vmem:[#allocation2 + $0x128] sm:$0x3f] %v137_v41 }
  0x2f   :  { %2617 = vmatpush1.bf16.msra.mxu1 %v10464_v46  ;;  %v10522_v32 = vld [vmem:[%s15547_s1 + $0x2a4] ss:$16 sps:$4 sm:$0xff]   ;;  %v10520_v34 = vld [vmem:[%s15547_s1 + $0x2a0] ss:$16 sps:$4 sm:$0xff]   ;;  %69 = vst [vmem:[#allocation2 + $0xe8] sm:$0x7f] %v63_v44 }
  0x30   :  { %2723 = vmatpush1.bf16.msra.mxu0 %v10465_v47  ;;  %2618 = vmatprep.subr.bf16.mxu1 %v10466_v50  ;;  %v10525_v33 = vld [vmem:[%s15547_s1 + $0x6a4] ss:$16 sps:$4 sm:$0xff]   ;;  %v10523_v35 = vld [vmem:[%s15547_s1 + $0x6a0] ss:$16 sps:$4 sm:$0xff]   ;;  %v141_v47 = vrot.slane %v129_v45, 1 }
  0x31   :  { %2724 = vmatprep.subr.bf16.mxu0 %v10468_v51  ;;  %v58_v38 = vld [vmem:[%s15546_s0 + $0x30] sm:$0x7f] }
  0x32   :  { %v124_v39 = vld [vmem:[%s15546_s0 + $0x90] sm:$0x7f]  ;;  %64 = vst [vmem:[#allocation2 + $0xc0] sm:$0x7f] %v58_v38  ;;  %153 = vst [vmem:[#allocation2 + $0xe8] sm:$0x80] %v141_v47 }
  0x33   :  { %2619 = vmatpush1.bf16.msra.mxu1 %v10470_v55  ;;  %v10528_v40 = vld [vmem:[%s15547_s1 + $0x2c4] ss:$16 sps:$4 sm:$0xff]   ;;  %v136_v42 = vrot.slane %v124_v39, 1  ;;  %v10526_v46 = vld [vmem:[%s15547_s1 + $0x2c0] ss:$16 sps:$4 sm:$0xff]  }
  0x34   :  { %2725 = vmatpush1.bf16.msra.mxu0 %v10471_v56  ;;  %2620 = vmatprep.subr.bf16.mxu1 %v10472_v62  ;;  %v10531_v43 = vld [vmem:[%s15547_s1 + $0x6c4] ss:$16 sps:$4 sm:$0xff]   ;;  %v10529_v48 = vld [vmem:[%s15547_s1 + $0x6c0] ss:$16 sps:$4 sm:$0xff]   ;;  %159 = vst [vmem:[#allocation2 + $0x148] sm:$0x3f] %v141_v47 }
  0x35   :  { %2726 = vmatprep.subr.bf16.mxu0 %v10474_v63  ;;  %148 = vst [vmem:[#allocation2 + $0xc0] sm:$0x80] %v136_v42  ;;  %154 = vst [vmem:[#allocation2 + $0x120] sm:$0x3f] %v136_v42  ;;  %v128_v50 = vld [vmem:[%s15546_s0 + $0xb0] sm:$0x7f] }
  0x36   :  { %v10534_v51 = vld [vmem:[%s15547_s1 + $0x2e4] ss:$16 sps:$4 sm:$0xff]   ;;  %v140_v53 = vrot.slane %v128_v50, 1  ;;  %v10532_v55 = vld [vmem:[%s15547_s1 + $0x2e0] ss:$16 sps:$4 sm:$0xff]  }
  0x37   :  { %2621 = vmatpush1.bf16.msra.mxu1 %v10476_v0  ;;  %v10537_v54 = vld [vmem:[%s15547_s1 + $0x6e4] ss:$16 sps:$4 sm:$0xff]   ;;  %v10535_v56 = vld [vmem:[%s15547_s1 + $0x6e0] ss:$16 sps:$4 sm:$0xff]   ;;  %v41_v0 = vld [vmem:[%s15546_s0 + $0x38] sm:$0xff] }
  0x38   :  { %2727 = vmatpush1.bf16.msra.mxu0 %v10477_v1  ;;  %2622 = vmatprep.subr.bf16.mxu1 %v10478_v2  ;;  %152 = vst [vmem:[#allocation2 + $0xe0] sm:$0x80] %v140_v53  ;;  %158 = vst [vmem:[#allocation2 + $0x140] sm:$0x3f] %v140_v53  ;;  %v10540_v59 = vld [vmem:[%s15547_s1 + $0x304] ss:$16 sps:$4 sm:$0xff]  }
  0x39   :  { %2728 = vmatprep.subr.bf16.mxu0 %v10480_v3  ;;  %v10543_v60 = vld [vmem:[%s15547_s1 + $0x704] ss:$16 sps:$4 sm:$0xff]   ;;  %v107_v1 = vld [vmem:[%s15546_s0 + $0x98] sm:$0xff]  ;;  %v221_v2 = vld [vmem:[#allocation2 + $0xc8] sm:$0xff] }
  0x3a   :  { %v12333_v62 = vld [vmem:[%s15546_s0 + $0x10] sm:$0xff]  ;;  %v233_v3 = vld [vmem:[#allocation2 + $0x128] sm:$0x3f] }
  0x3b   :  { %2623 = vmatpush1.bf16.msra.mxu1 %v10482_v4  ;;  %v12338_v63 = vld [vmem:[%s15546_s0 + $0x70] sm:$0xff] }
  0x3c   :  { %2729 = vmatpush1.bf16.msra.mxu0 %v10483_v5  ;;  %2624 = vmatprep.subr.bf16.mxu1 %v10484_v6  ;;  %v220_v4 = vld [vmem:[#allocation2 + $0xc0] sm:$0xff]  ;;  %v12349_v6 = vpack.c.bf16 %v233_v3, %v221_v2 }
  0x3d   :  { %2730 = vmatprep.subr.bf16.mxu0 %v10486_v7  ;;  %v10538_v5 = vld [vmem:[%s15547_s1 + $0x300] ss:$16 sps:$4 sm:$0xff]   ;;  %v10558_v36 = vld [vmem:[%s15547_s1 + $0x364] ss:$16 sps:$4 sm:$0xff]  }
  0x3e   :  { %v232_v7 = vld [vmem:[#allocation2 + $0x120] sm:$0x3f] }
  0x3f   :  { %2625 = vmatpush1.bf16.msra.mxu1 %v10488_v8  ;;  %v10541_v8 = vld [vmem:[%s15547_s1 + $0x700] ss:$16 sps:$4 sm:$0xff]   ;;  %v10561_v37 = vld [vmem:[%s15547_s1 + $0x764] ss:$16 sps:$4 sm:$0xff]  }
  0x40   :  { %2731 = vmatpush1.bf16.msra.mxu0 %v10489_v9  ;;  %2647 = vmatprep.subr.bf16.mxu1 %v10492_v10  ;;  %v12354_v9 = vpack.c.bf16 %v232_v7, %v220_v4  ;;  %v225_v10 = vld [vmem:[#allocation2 + $0xe8] sm:$0xff]  ;;  %v10556_v38 = vld [vmem:[%s15547_s1 + $0x360] ss:$16 sps:$4 sm:$0xff]   ;;  %v10567_v41 = vld [vmem:[%s15547_s1 + $0x784] ss:$16 sps:$4 sm:$0xff]  }
  0x41   :  { %2753 = vmatprep.subr.bf16.mxu0 %v10495_v11  ;;  %v237_v11 = vld [vmem:[#allocation2 + $0x148] sm:$0x3f]  ;;  %v10559_v39 = vld [vmem:[%s15547_s1 + $0x760] ss:$16 sps:$4 sm:$0xff]   ;;  %v10570_v44 = vld [vmem:[%s15547_s1 + $0x3a4] ss:$16 sps:$4 sm:$0xff]  }
  0x42   :  { %2627 = vmatmul.mubr.bf16.vlgmr.msra.gmra.mrb[0].mxu1 %v12204_v14  ;;  %v10562_v42 = vld [vmem:[%s15547_s1 + $0x380] ss:$16 sps:$4 sm:$0xff]   ;;  %v10573_v45 = vld [vmem:[%s15547_s1 + $0x7a4] ss:$16 sps:$4 sm:$0xff]  }
  0x43   :  { %2733 = vmatmul.mubr.bf16.vlgmr.msra.gmra.mrb[0].mxu0 %v12206_v15  ;;  %2648 = vmatpush1.bf16.msra.mxu1 %v10490_v12  ;;  %v10546_v12 = vld [vmem:[%s15547_s1 + $0x324] ss:$16 sps:$4 sm:$0xff]   ;;  %v10571_v47 = vld [vmem:[%s15547_s1 + $0x7a0] ss:$16 sps:$4 sm:$0xff]  }
  0x44   :  { %2754 = vmatpush1.bf16.msra.mxu0 %v10493_v13  ;;  %2649 = vmatprep.subr.bf16.mxu1 %v10498_v16  ;;  %v12359_v13 = vpack.c.bf16 %v237_v11, %v225_v10  ;;  %v10549_v16 = vld [vmem:[%s15547_s1 + $0x724] ss:$16 sps:$4 sm:$0xff]   ;;  %v10574_v50 = vld [vmem:[%s15547_s1 + $0x3c0] ss:$16 sps:$4 sm:$0xff]  }
  0x45   :  { %2755 = vmatprep.subr.bf16.mxu0 %v10501_v17  ;;  %v224_v17 = vld [vmem:[#allocation2 + $0xe0] sm:$0xff]  ;;  %2636 = vmatprep.mubr.bf16.mxu1 %v12349_v6 }
  0x46   :  { %2742 = vmatprep.mubr.bf16.mxu0 %v12359_v13  ;;  %v10579_v49 = vld [vmem:[%s15547_s1 + $0x7c4] ss:$16 sps:$4 sm:$0xff]  }
  0x47   :  { %2650 = vmatpush1.bf16.msra.mxu1 %v10496_v18  ;;  %v236_v18 = vld [vmem:[#allocation2 + $0x140] sm:$0x3f] }
  0x48   :  { %2756 = vmatpush1.bf16.msra.mxu0 %v10499_v19  ;;  %2651 = vmatprep.subr.bf16.mxu1 %v10504_v20  ;;  %v12366_v19 = vpack.c.bf16 %v236_v18, %v224_v17  ;;  %v12368_v20 = vpack.c.bf16 %v103_v61, %v37_v58  ;;  %v10582_v53 = vld [vmem:[%s15547_s1 + $0x3e4] ss:$16 sps:$4 sm:$0xff]   ;;  %v10589_v61 = vld [vmem:[%s15547_s1 + $0x8] ss:$16 sps:$4 sm:$0xff]  }
  0x49   :  { %2757 = vmatprep.subr.bf16.mxu0 %v10507_v21  ;;  %v12373_v21 = vld [vmem:[%s15546_s0 + $0x30] sm:$0xff]  ;;  %v10601_v18 = vld [vmem:[%s15547_s1 + $0x48] ss:$16 sps:$4 sm:$0xff]  }
  0x4a   :  { %2637 = vmatmul.mubr.bf16.gmra.mrb[4].mxu1 %v12354_v9  ;;  %v10588_v58 = vld [vmem:[%s15547_s1 + $0x804] ss:$16 sps:$4 sm:$0xff]  }
  0x4b   :  { %2652 = vmatpush1.bf16.msra.mxu1 %v10502_v22  ;;  %v12378_v22 = vld [vmem:[%s15546_s0 + $0x90] sm:$0xff]  ;;  %2743 = vmatmul.mubr.bf16.gmra.mrb[4].mxu0 %v12366_v19 }
  0x4c   :  { %2758 = vmatpush1.bf16.msra.mxu0 %v10505_v23  ;;  %2653 = vmatprep.subr.bf16.mxu1 %v10510_v24  ;;  %v10544_v23 = vld [vmem:[%s15547_s1 + $0x320] ss:$16 sps:$4 sm:$0xff]   ;;  %v10594_v4 = vld [vmem:[%s15547_s1 + $0x824] ss:$16 sps:$4 sm:$0xff]  }
  0x4d   :  { %2759 = vmatprep.subr.bf16.mxu0 %v10513_v25  ;;  %v10547_v24 = vld [vmem:[%s15547_s1 + $0x720] ss:$16 sps:$4 sm:$0xff]   ;;  %v12387_v25 = vpack.c.bf16 %v107_v1, %v41_v0  ;;  %2679 = vmatprep.mubr.bf16.mxu1 %v12368_v20  ;;  %v12490_v0 = vpack.c.bf16 %v12338_v63, %v12333_v62  ;;  %v12494_v1 = vpack.c.bf16 %v12378_v22, %v12373_v21  ;;  %v10595_v63 = vld [vmem:[%s15547_s1 + $0x28] ss:$16 sps:$4 sm:$0xff]   ;;  %v10600_v10 = vld [vmem:[%s15547_s1 + $0x844] ss:$16 sps:$4 sm:$0xff]  }
  0x4e   :  { %v10592_v62 = vld [vmem:[%s15547_s1 + $0x820] ss:$16 sps:$4 sm:$0xff]   ;;  %v10606_v21 = vld [vmem:[%s15547_s1 + $0x864] ss:$16 sps:$4 sm:$0xff]   ;;  %v71_v22 = vld [vmem:[%s15546_s0 + $0x8] sm:$0xfe] }
  0x4f   :  { %2654 = vmatpush1.bf16.msra.mxu1 %v10508_v26  ;;  %v10552_v26 = vld [vmem:[%s15547_s1 + $0x344] ss:$16 sps:$4 sm:$0xff]   ;;  %2785 = vmatprep.mubr.bf16.mxu0 %v12387_v25 }
  0x50   :  { %2760 = vmatpush1.bf16.msra.mxu0 %v10511_v27  ;;  %2655 = vmatprep.subr.bf16.mxu1 %v10516_v28  ;;  %v10555_v27 = vld [vmem:[%s15547_s1 + $0x744] ss:$16 sps:$4 sm:$0xff]   ;;  %v61_v28 = vld [vmem:[%s15546_s0 + $0x48] sm:$0x7f] }
  0x51   :  { %2761 = vmatprep.subr.bf16.mxu0 %v10519_v29  ;;  %v127_v29 = vld [vmem:[%s15546_s0 + $0xa8] sm:$0x7f]  ;;  %67 = vst [vmem:[#allocation2 + $0xd8] sm:$0x7f] %v61_v28  ;;  %v10604_v28 = vld [vmem:[%s15547_s1 + $0x860] ss:$16 sps:$4 sm:$0xff]  }
  0x53   :  { %2656 = vmatpush1.bf16.msra.mxu1 %v10514_v30  ;;  %v139_v30 = vrot.slane %v127_v29, 1  ;;  %v10607_v29 = vld [vmem:[%s15547_s1 + $0x68] ss:$16 sps:$4 sm:$0xff]  }
  0x54   :  { %2762 = vmatpush1.bf16.msra.mxu0 %v10517_v31  ;;  %2657 = vmatprep.subr.bf16.mxu1 %v10522_v32  ;;  %v60_v31 = vld [vmem:[%s15546_s0 + $0x40] sm:$0x7f] }
  0x55   :  { %2763 = vmatprep.subr.bf16.mxu0 %v10525_v33  ;;  %v126_v32 = vld [vmem:[%s15546_s0 + $0xa0] sm:$0x7f]  ;;  %66 = vst [vmem:[#allocation2 + $0xd0] sm:$0x7f] %v60_v31  ;;  %151 = vst [vmem:[#allocation2 + $0xd8] sm:$0x80] %v139_v30 }
  0x56   :  { %v10550_v33 = vld [vmem:[%s15547_s1 + $0x340] ss:$16 sps:$4 sm:$0xff]   ;;  %157 = vst [vmem:[#allocation2 + $0x138] sm:$0x3f] %v139_v30 }
  0x57   :  { %2658 = vmatpush1.bf16.msra.mxu1 %v10520_v34  ;;  %v10553_v34 = vld [vmem:[%s15547_s1 + $0x740] ss:$16 sps:$4 sm:$0xff]  }
  0x58   :  { %2764 = vmatpush1.bf16.msra.mxu0 %v10523_v35  ;;  %2659 = vmatprep.subr.bf16.mxu1 %v10528_v40  ;;  %v138_v35 = vrot.slane %v126_v32, 1  ;;  %v10564_v40 = vld [vmem:[%s15547_s1 + $0x384] ss:$16 sps:$4 sm:$0xff]  }
  0x59   :  { %2765 = vmatprep.subr.bf16.mxu0 %v10531_v43  ;;  %v10565_v43 = vld [vmem:[%s15547_s1 + $0x780] ss:$16 sps:$4 sm:$0xff]   ;;  %v10612_v32 = vld [vmem:[%s15547_s1 + $0x884] ss:$16 sps:$4 sm:$0xff]  }
  0x5a   :  { %150 = vst [vmem:[#allocation2 + $0xd0] sm:$0x80] %v138_v35  ;;  %156 = vst [vmem:[#allocation2 + $0x130] sm:$0x3f] %v138_v35  ;;  %v70_v30 = vld [vmem:[%s15546_s0] sm:$0xfe] }
  0x5b   :  { %2660 = vmatpush1.bf16.msra.mxu1 %v10526_v46  ;;  %v10568_v46 = vld [vmem:[%s15547_s1 + $0x3a0] ss:$16 sps:$4 sm:$0xff]   ;;  %v10615_v35 = vld [vmem:[%s15547_s1 + $0x8c] ss:$16 sps:$4 sm:$0xff]  }
  0x5c   :  { %2766 = vmatpush1.bf16.msra.mxu0 %v10529_v48  ;;  %2661 = vmatprep.subr.bf16.mxu1 %v10534_v51  ;;  %v10576_v48 = vld [vmem:[%s15547_s1 + $0x3c4] ss:$16 sps:$4 sm:$0xff]   ;;  %v10577_v51 = vld [vmem:[%s15547_s1 + $0x7c0] ss:$16 sps:$4 sm:$0xff]   ;;  %v223_v2 = vld [vmem:[#allocation2 + $0xd8] sm:$0xff] }
  0x5d   :  { %2767 = vmatprep.subr.bf16.mxu0 %v10537_v54  ;;  %v10585_v54 = vld [vmem:[%s15547_s1 + $0x7e4] ss:$16 sps:$4 sm:$0xff]   ;;  %v235_v3 = vld [vmem:[#allocation2 + $0x138] sm:$0x3f] }
  0x5e   :  { %v12508_v7 = vpack.c.bf16 %v235_v3, %v223_v2  ;;  %v160_v31 = vld [vmem:[%s15546_s0 + $0x60] sm:$0xfe]  ;;  %v10639_v3 = vld [vmem:[%s15547_s1 + $0x10c] ss:$16 sps:$4 sm:$0xff]  }
  0x5f   :  { %2662 = vmatpush1.bf16.msra.mxu1 %v10532_v55  ;;  %v10580_v55 = vld [vmem:[%s15547_s1 + $0x3e0] ss:$16 sps:$4 sm:$0xff]   ;;  %v10636_v2 = vld [vmem:[%s15547_s1 + $0x904] ss:$16 sps:$4 sm:$0xff]  }
  0x60   :  { %2768 = vmatpush1.bf16.msra.mxu0 %v10535_v56  ;;  %2663 = vmatprep.subr.bf16.mxu1 %v10540_v59  ;;  %v10583_v56 = vld [vmem:[%s15547_s1 + $0x7e0] ss:$16 sps:$4 sm:$0xff]   ;;  %v10591_v59 = vld [vmem:[%s15547_s1 + $0xc] ss:$16 sps:$4 sm:$0xff]  }
  0x61   :  { %2769 = vmatprep.subr.bf16.mxu0 %v10543_v60  ;;  %v10586_v60 = vld [vmem:[%s15547_s1 + $0x800] ss:$16 sps:$4 sm:$0xff]  }
  0x62   :  { %v234_v11 = vld [vmem:[#allocation2 + $0x130] sm:$0x3f] }
  0x63   :  { %2664 = vmatpush1.bf16.msra.mxu1 %v10538_v5  ;;  %v10597_v5 = vld [vmem:[%s15547_s1 + $0x2c] ss:$16 sps:$4 sm:$0xff]  }
  0x64   :  { %2770 = vmatpush1.bf16.msra.mxu0 %v10541_v8  ;;  %2665 = vmatprep.subr.bf16.mxu1 %v10546_v12  ;;  %v222_v8 = vld [vmem:[#allocation2 + $0xd0] sm:$0xff]  ;;  %v10603_v12 = vld [vmem:[%s15547_s1 + $0x4c] ss:$16 sps:$4 sm:$0xff]  }
  0x65   :  { %2771 = vmatprep.subr.bf16.mxu0 %v10549_v16  ;;  %v10598_v16 = vld [vmem:[%s15547_s1 + $0x840] ss:$16 sps:$4 sm:$0xff]   ;;  %v12522_v17 = vpack.c.bf16 %v234_v11, %v222_v8  ;;  %v10648_v11 = vld [vmem:[%s15547_s1 + $0x944] ss:$16 sps:$4 sm:$0xff]  }
  0x66   :  { %v10640_v8 = vld [vmem:[%s15547_s1 + $0x920] ss:$16 sps:$4 sm:$0xff]  }
  0x67   :  { %2666 = vmatpush1.bf16.msra.mxu1 %v10544_v23  ;;  %v161_v23 = vld [vmem:[%s15546_s0 + $0x68] sm:$0xfe] }
  0x68   :  { %2772 = vmatpush1.bf16.msra.mxu0 %v10547_v24  ;;  %2667 = vmatprep.subr.bf16.mxu1 %v10552_v26  ;;  %v10609_v24 = vld [vmem:[%s15547_s1 + $0x6c] ss:$16 sps:$4 sm:$0xff]   ;;  %v83_v26 = vrot.slane %v71_v22, 1 }
  0x69   :  { %2773 = vmatprep.subr.bf16.mxu0 %v10555_v27  ;;  %v173_v27 = vrot.slane %v161_v23, 2  ;;  %v10657_v22 = vld [vmem:[%s15547_s1 + $0x16c] ss:$16 sps:$4 sm:$0xff]   ;;  %v10652_v23 = vld [vmem:[%s15547_s1 + $0x960] ss:$16 sps:$4 sm:$0xff]  }
  0x6a   :  { %95 = vst [vmem:[#allocation2 + $0xf8] sm:$0x7f] %v83_v26  ;;  %v10660_v26 = vld [vmem:[%s15547_s1 + $0x984] ss:$16 sps:$4 sm:$0xff]  }
  0x6b   :  { %2668 = vmatpush1.bf16.msra.mxu1 %v10550_v33  ;;  %185 = vst [vmem:[#allocation2 + $0xf8] sm:$0x80] %v173_v27  ;;  %191 = vst [vmem:[#allocation2 + $0x158] sm:$0x3f] %v173_v27  ;;  %v82_v33 = vrot.slane %v70_v30, 1 }
  0x6c   :  { %2774 = vmatpush1.bf16.msra.mxu0 %v10553_v34  ;;  %2669 = vmatprep.subr.bf16.mxu1 %v10558_v36  ;;  %v172_v34 = vrot.slane %v160_v31, 2  ;;  %v43_v36 = vld [vmem:[%s15546_s0 + $0x48] sm:$0xff]  ;;  %v10666_v30 = vld [vmem:[%s15547_s1 + $0x9a4] ss:$16 sps:$4 sm:$0xff]  }
  0x6d   :  { %2775 = vmatprep.subr.bf16.mxu0 %v10561_v37  ;;  %94 = vst [vmem:[#allocation2 + $0xf0] sm:$0x7f] %v82_v33  ;;  %v109_v37 = vld [vmem:[%s15546_s0 + $0xa8] sm:$0xff] }
  0x6e   :  { %184 = vst [vmem:[#allocation2 + $0xf0] sm:$0x80] %v172_v34  ;;  %190 = vst [vmem:[#allocation2 + $0x150] sm:$0x3f] %v172_v34  ;;  %v10663_v27 = vld [vmem:[%s15547_s1 + $0x18c] ss:$16 sps:$4 sm:$0xff]  }
  0x6f   :  { %2670 = vmatpush1.bf16.msra.mxu1 %v10556_v38  ;;  %v10610_v38 = vld [vmem:[%s15547_s1 + $0x880] ss:$16 sps:$4 sm:$0xff]   ;;  %v10669_v31 = vld [vmem:[%s15547_s1 + $0x1ac] ss:$16 sps:$4 sm:$0xff]   ;;  %v10667_v33 = vld [vmem:[%s15547_s1 + $0x1a8] ss:$16 sps:$4 sm:$0xff]  }
  0x70   :  { %2776 = vmatpush1.bf16.msra.mxu0 %v10559_v39  ;;  %2671 = vmatprep.subr.bf16.mxu1 %v10564_v40  ;;  %v10613_v39 = vld [vmem:[%s15547_s1 + $0x88] ss:$16 sps:$4 sm:$0xff]   ;;  %v10621_v40 = vld [vmem:[%s15547_s1 + $0xac] ss:$16 sps:$4 sm:$0xff]   ;;  %v10672_v34 = vld [vmem:[%s15547_s1 + $0x9c4] ss:$16 sps:$4 sm:$0xff]  }
  0x71   :  { %2777 = vmatprep.subr.bf16.mxu0 %v10567_v41  ;;  %v10616_v41 = vld [vmem:[%s15547_s1 + $0x8a0] ss:$16 sps:$4 sm:$0xff]  }
  0x73   :  { %2672 = vmatpush1.bf16.msra.mxu1 %v10562_v42  ;;  %v10619_v42 = vld [vmem:[%s15547_s1 + $0xa8] ss:$16 sps:$4 sm:$0xff]  }
  0x74   :  { %2778 = vmatpush1.bf16.msra.mxu0 %v10565_v43  ;;  %2673 = vmatprep.subr.bf16.mxu1 %v10570_v44  ;;  %v227_v43 = vld [vmem:[#allocation2 + $0xf8] sm:$0xff] }
  0x75   :  { %2779 = vmatprep.subr.bf16.mxu0 %v10573_v45  ;;  %v239_v44 = vld [vmem:[#allocation2 + $0x158] sm:$0x3f]  ;;  %v12586_v45 = vld [vmem:[%s15546_s0 + $0x40] sm:$0xff] }
  0x77   :  { %2674 = vmatpush1.bf16.msra.mxu1 %v10568_v46  ;;  %v12588_v46 = vpack.c.bf16 %v239_v44, %v227_v43  ;;  %v162_v43 = vld [vmem:[%s15546_s0 + $0x70] sm:$0xfe] }
  0x78   :  { %2780 = vmatpush1.bf16.msra.mxu0 %v10571_v47  ;;  %2675 = vmatprep.subr.bf16.mxu1 %v10576_v48  ;;  %v12593_v47 = vld [vmem:[%s15546_s0 + $0xa0] sm:$0xff] }
  0x79   :  { %2781 = vmatprep.subr.bf16.mxu0 %v10579_v49  ;;  %v10624_v48 = vld [vmem:[%s15547_s1 + $0x8c4] ss:$16 sps:$4 sm:$0xff]   ;;  %v10627_v49 = vld [vmem:[%s15547_s1 + $0xcc] ss:$16 sps:$4 sm:$0xff]  }
  0x7a   :  { %v10678_v44 = vld [vmem:[%s15547_s1 + $0x9e4] ss:$16 sps:$4 sm:$0xff]  }
  0x7b   :  { %2676 = vmatpush1.bf16.msra.mxu1 %v10574_v50  ;;  %v226_v50 = vld [vmem:[#allocation2 + $0xf0] sm:$0xff] }
  0x7c   :  { %2782 = vmatpush1.bf16.msra.mxu0 %v10577_v51  ;;  %2677 = vmatprep.subr.bf16.mxu1 %v10582_v53  ;;  %v238_v51 = vld [vmem:[#allocation2 + $0x150] sm:$0x3f] }
  0x7d   :  { %2783 = vmatprep.subr.bf16.mxu0 %v10585_v54  ;;  %v12602_v53 = vpack.c.bf16 %v238_v51, %v226_v50  ;;  %v10622_v54 = vld [vmem:[%s15547_s1 + $0x8c0] ss:$16 sps:$4 sm:$0xff]   ;;  %v10679_v51 = vld [vmem:[%s15547_s1 + $0x1e8] ss:$16 sps:$4 sm:$0xff]  }
  0x7e   :  { %v10676_v50 = vld [vmem:[%s15547_s1 + $0x9e0] ss:$16 sps:$4 sm:$0xff]  }
  0x7f   :  { %2678 = vmatpush1.bf16.msra.mxu1 %v10580_v55  ;;  %v10625_v55 = vld [vmem:[%s15547_s1 + $0xc8] ss:$16 sps:$4 sm:$0xff]  }
  0x80   :  { %2784 = vmatpush1.bf16.msra.mxu0 %v10583_v56  ;;  %2912 = vmatprep.subr.bf16.mxu1 %v10591_v59  ;;  %v12610_v56 = vpack.c.bf16 %v109_v37, %v43_v36  ;;  %v10633_v59 = vld [vmem:[%s15547_s1 + $0xec] ss:$16 sps:$4 sm:$0xff]   ;;  %v10670_v36 = vld [vmem:[%s15547_s1 + $0x9c0] ss:$16 sps:$4 sm:$0xff]   ;;  %v10673_v37 = vld [vmem:[%s15547_s1 + $0x1c8] ss:$16 sps:$4 sm:$0xff]  }
  0x81   :  { %2806 = vmatprep.subr.bf16.mxu0 %v10588_v58  ;;  %v10630_v58 = vld [vmem:[%s15547_s1 + $0x8e4] ss:$16 sps:$4 sm:$0xff]  }
  0x82   :  { %2680 = vmatmul.mubr.bf16.vlgmr.msra.gmra.mrb[0].mxu1 %v12490_v0 }
  0x83   :  { %2786 = vmatmul.mubr.bf16.vlgmr.msra.gmra.mrb[0].mxu0 %v12494_v1  ;;  %2913 = vmatpush1.bf16.msra.mxu1 %v10589_v61  ;;  %v10631_v61 = vld [vmem:[%s15547_s1 + $0xe8] ss:$16 sps:$4 sm:$0xff]  }
  0x84   :  { %2807 = vmatpush1.bf16.msra.mxu0 %v10586_v60  ;;  %2914 = vmatprep.subr.bf16.mxu1 %v10597_v5  ;;  %v10628_v60 = vld [vmem:[%s15547_s1 + $0x8e0] ss:$16 sps:$4 sm:$0xff]   ;;  %v10637_v5 = vld [vmem:[%s15547_s1 + $0x108] ss:$16 sps:$4 sm:$0xff]  }
  0x85   :  { %2808 = vmatprep.subr.bf16.mxu0 %v10594_v4  ;;  %2689 = vmatprep.mubr.bf16.mxu1 %v12508_v7  ;;  %v10634_v4 = vld [vmem:[%s15547_s1 + $0x900] ss:$16 sps:$4 sm:$0xff]  }
  0x86   :  { %2795 = vmatprep.mubr.bf16.mxu0 %v12588_v46 }
  0x87   :  { %2915 = vmatpush1.bf16.msra.mxu1 %v10595_v63  ;;  %v10645_v63 = vld [vmem:[%s15547_s1 + $0x12c] ss:$16 sps:$4 sm:$0xff]  }
  0x88   :  { %2809 = vmatpush1.bf16.msra.mxu0 %v10592_v62  ;;  %2916 = vmatprep.subr.bf16.mxu1 %v10603_v12  ;;  %v10642_v62 = vld [vmem:[%s15547_s1 + $0x924] ss:$16 sps:$4 sm:$0xff]   ;;  %v10651_v12 = vld [vmem:[%s15547_s1 + $0x14c] ss:$16 sps:$4 sm:$0xff]  }
  0x89   :  { %2810 = vmatprep.subr.bf16.mxu0 %v10600_v10  ;;  %v10643_v10 = vld [vmem:[%s15547_s1 + $0x128] ss:$16 sps:$4 sm:$0xff]  }
  0x8a   :  { %2690 = vmatmul.mubr.bf16.gmra.mrb[4].mxu1 %v12522_v17 }
  0x8b   :  { %2917 = vmatpush1.bf16.msra.mxu1 %v10601_v18  ;;  %2944 = vmatprep.mubr.bf16.mxu1 %v12126_v52  ;;  %v10618_v52 = vld [vmem:[%s15547_s1 + $0x8a4] ss:$16 sps:$4 sm:$0xff]   ;;  %v10649_v18 = vld [vmem:[%s15547_s1 + $0x148] ss:$16 sps:$4 sm:$0xff]  }
  0x8c   :  { %2811 = vmatpush1.bf16.msra.mxu0 %v10598_v16  ;;  %2918 = vmatprep.subr.bf16.mxu1 %v10609_v24  ;;  %v10646_v16 = vld [vmem:[%s15547_s1 + $0x940] ss:$16 sps:$4 sm:$0xff]   ;;  %v10655_v24 = vld [vmem:[%s15547_s1 + $0x168] ss:$16 sps:$4 sm:$0xff]  }
  0x8d   :  { %2812 = vmatprep.subr.bf16.mxu0 %v10606_v21  ;;  %2796 = vmatmul.mubr.bf16.gmra.mrb[4].mxu0 %v12602_v53  ;;  %v10654_v21 = vld [vmem:[%s15547_s1 + $0x964] ss:$16 sps:$4 sm:$0xff]  }
  0x8e   :  { %2838 = vmatprep.mubr.bf16.mxu0 %v12610_v56 }
  0x8f   :  { %2919 = vmatpush1.bf16.msra.mxu1 %v10607_v29  ;;  %v10661_v29 = vld [vmem:[%s15547_s1 + $0x188] ss:$16 sps:$4 sm:$0xff]  }
  0x90   :  { %2813 = vmatpush1.bf16.msra.mxu0 %v10604_v28  ;;  %2920 = vmatprep.subr.bf16.mxu1 %v10615_v35  ;;  %v10658_v28 = vld [vmem:[%s15547_s1 + $0x980] ss:$16 sps:$4 sm:$0xff]   ;;  %v10675_v35 = vld [vmem:[%s15547_s1 + $0x1cc] ss:$16 sps:$4 sm:$0xff]  }
  0x91   :  { %2814 = vmatprep.subr.bf16.mxu0 %v10612_v32  ;;  %v10664_v32 = vld [vmem:[%s15547_s1 + $0x9a0] ss:$16 sps:$4 sm:$0xff]  }
  0x93   :  { %2921 = vmatpush1.bf16.msra.mxu1 %v10613_v39 }
  0x94   :  { %2815 = vmatpush1.bf16.msra.mxu0 %v10610_v38  ;;  %2922 = vmatprep.subr.bf16.mxu1 %v10621_v40  ;;  %v73_v38 = vld [vmem:[%s15546_s0 + $0x18] sm:$0xfe]  ;;  %v72_v40 = vld [vmem:[%s15546_s0 + $0x10] sm:$0xfe] }
  0x95   :  { %2816 = vmatprep.subr.bf16.mxu0 %v10618_v52  ;;  %v85_v39 = vrot.slane %v73_v38, 1  ;;  %v163_v52 = vld [vmem:[%s15546_s0 + $0x78] sm:$0xfe] }
  0x96   :  { %v10711_v38 = vld [vmem:[%s15547_s1 + $0x28c] ss:$16 sps:$4 sm:$0xff]  }
  0x97   :  { %2923 = vmatpush1.bf16.msra.mxu1 %v10619_v42  ;;  %v84_v42 = vrot.slane %v72_v40, 1  ;;  %97 = vst [vmem:[#allocation2 + $0x108] sm:$0x7f] %v85_v39  ;;  %v10709_v39 = vld [vmem:[%s15547_s1 + $0x288] ss:$16 sps:$4 sm:$0xff]  }
  0x98   :  { %2817 = vmatpush1.bf16.msra.mxu0 %v10616_v41  ;;  %2924 = vmatprep.subr.bf16.mxu1 %v10627_v49  ;;  %v175_v41 = vrot.slane %v163_v52, 2  ;;  %v174_v49 = vrot.slane %v162_v43, 2  ;;  %v10714_v52 = vld [vmem:[%s15547_s1 + $0xaa4] ss:$16 sps:$4 sm:$0xff]   ;;  %v10712_v40 = vld [vmem:[%s15547_s1 + $0xaa0] ss:$16 sps:$4 sm:$0xff]  }
  0x99   :  { %2818 = vmatprep.subr.bf16.mxu0 %v10624_v48  ;;  %v10681_v48 = vld [vmem:[%s15547_s1 + $0x1ec] ss:$16 sps:$4 sm:$0xff]   ;;  %96 = vst [vmem:[#allocation2 + $0x100] sm:$0x7f] %v84_v42  ;;  %v10720_v42 = vld [vmem:[%s15547_s1 + $0xac4] ss:$16 sps:$4 sm:$0xff]  }
  0x9a   :  { %187 = vst [vmem:[#allocation2 + $0x108] sm:$0x80] %v175_v41  ;;  %193 = vst [vmem:[#allocation2 + $0x168] sm:$0x3f] %v175_v41  ;;  %v10715_v41 = vld [vmem:[%s15547_s1 + $0x2a8] ss:$16 sps:$4 sm:$0xff]  }
  0x9b   :  { %2925 = vmatpush1.bf16.msra.mxu1 %v10625_v55  ;;  %186 = vst [vmem:[#allocation2 + $0x100] sm:$0x80] %v174_v49  ;;  %192 = vst [vmem:[#allocation2 + $0x160] sm:$0x3f] %v174_v49  ;;  %v10687_v55 = vld [vmem:[%s15547_s1 + $0x20c] ss:$16 sps:$4 sm:$0xff]  }
  0x9c   :  { %2819 = vmatpush1.bf16.msra.mxu0 %v10622_v54  ;;  %2926 = vmatprep.subr.bf16.mxu1 %v10633_v59  ;;  %v10684_v54 = vld [vmem:[%s15547_s1 + $0xa04] ss:$16 sps:$4 sm:$0xff]   ;;  %v111_v59 = vld [vmem:[%s15546_s0 + $0xb8] sm:$0xff] }
  0x9d   :  { %2820 = vmatprep.subr.bf16.mxu0 %v10630_v58  ;;  %v45_v58 = vld [vmem:[%s15546_s0 + $0x58] sm:$0xff]  ;;  %v10726_v49 = vld [vmem:[%s15547_s1 + $0xae4] ss:$16 sps:$4 sm:$0xff]  }
  0x9e   :  { %v10723_v43 = vld [vmem:[%s15547_s1 + $0x2cc] ss:$16 sps:$4 sm:$0xff]  }
  0x9f   :  { %2927 = vmatpush1.bf16.msra.mxu1 %v10631_v61  ;;  %v110_v61 = vld [vmem:[%s15546_s0 + $0xb0] sm:$0xff] }
  0xa0   :  { %2821 = vmatpush1.bf16.msra.mxu0 %v10628_v60  ;;  %2928 = vmatprep.subr.bf16.mxu1 %v10639_v3  ;;  %v44_v60 = vld [vmem:[%s15546_s0 + $0x50] sm:$0xff]  ;;  %v10685_v3 = vld [vmem:[%s15547_s1 + $0x208] ss:$16 sps:$4 sm:$0xff]  }
  0xa1   :  { %2822 = vmatprep.subr.bf16.mxu0 %v10636_v2  ;;  %v10682_v2 = vld [vmem:[%s15547_s1 + $0xa00] ss:$16 sps:$4 sm:$0xff]  }
  0xa3   :  { %2929 = vmatpush1.bf16.msra.mxu1 %v10637_v5  ;;  %v12762_v5 = vpack.c.bf16 %v110_v61, %v44_v60  ;;  %v10733_v60 = vld [vmem:[%s15547_s1 + $0x308] ss:$16 sps:$4 sm:$0xff]   ;;  %v10738_v61 = vld [vmem:[%s15547_s1 + $0xb24] ss:$16 sps:$4 sm:$0xff]  }
  0xa4   :  { %2823 = vmatpush1.bf16.msra.mxu0 %v10634_v4  ;;  %2930 = vmatprep.subr.bf16.mxu1 %v10645_v63  ;;  %v12760_v4 = vpack.c.bf16 %v12593_v47, %v12586_v45  ;;  %v10693_v63 = vld [vmem:[%s15547_s1 + $0x22c] ss:$16 sps:$4 sm:$0xff]   ;;  %v10688_v45 = vld [vmem:[%s15547_s1 + $0xa20] ss:$16 sps:$4 sm:$0xff]   ;;  %v10691_v47 = vld [vmem:[%s15547_s1 + $0x228] ss:$16 sps:$4 sm:$0xff]  }
  0xa5   :  { %2824 = vmatprep.subr.bf16.mxu0 %v10642_v62  ;;  %v10690_v62 = vld [vmem:[%s15547_s1 + $0xa24] ss:$16 sps:$4 sm:$0xff]  }
  0xa7   :  { %2931 = vmatpush1.bf16.msra.mxu1 %v10643_v10  ;;  %v241_v10 = vld [vmem:[#allocation2 + $0x168] sm:$0x3f] }
  0xa8   :  { %2825 = vmatpush1.bf16.msra.mxu0 %v10640_v8  ;;  %2932 = vmatprep.subr.bf16.mxu1 %v10651_v12  ;;  %v229_v8 = vld [vmem:[#allocation2 + $0x108] sm:$0xff]  ;;  %v228_v12 = vld [vmem:[#allocation2 + $0x100] sm:$0xff] }
  0xa9   :  { %2826 = vmatprep.subr.bf16.mxu0 %v10648_v11  ;;  %v12776_v11 = vpack.c.bf16 %v241_v10, %v229_v8  ;;  %v10747_v8 = vld [vmem:[%s15547_s1 + $0x34c] ss:$16 sps:$4 sm:$0xff]   ;;  %v10742_v10 = vld [vmem:[%s15547_s1 + $0xb40] ss:$16 sps:$4 sm:$0xff]  }
  0xab   :  { %2933 = vmatpush1.bf16.msra.mxu1 %v10649_v18  ;;  %v75_v18 = vld [vmem:[%s15546_s0 + $0x28] sm:$0xfe] }
  0xac   :  { %2827 = vmatpush1.bf16.msra.mxu0 %v10646_v16  ;;  %2934 = vmatprep.subr.bf16.mxu1 %v10657_v22  ;;  %v240_v16 = vld [vmem:[#allocation2 + $0x160] sm:$0x3f]  ;;  %v165_v22 = vld [vmem:[%s15546_s0 + $0x88] sm:$0xfe] }
  0xad   :  { %2828 = vmatprep.subr.bf16.mxu0 %v10654_v21  ;;  %v87_v21 = vrot.slane %v75_v18, 1  ;;  %v10751_v18 = vld [vmem:[%s15547_s1 + $0x368] ss:$16 sps:$4 sm:$0xff]  }
  0xaf   :  { %2935 = vmatpush1.bf16.msra.mxu1 %v10655_v24  ;;  %v177_v24 = vrot.slane %v165_v22, 2  ;;  %99 = vst [vmem:[#allocation2 + $0x118] sm:$0x7f] %v87_v21  ;;  %v10756_v21 = vld [vmem:[%s15547_s1 + $0xb84] ss:$16 sps:$4 sm:$0xff]  }
  0xb0   :  { %2829 = vmatpush1.bf16.msra.mxu0 %v10652_v23  ;;  %2936 = vmatprep.subr.bf16.mxu1 %v10663_v27  ;;  %v74_v23 = vld [vmem:[%s15546_s0 + $0x20] sm:$0xfe]  ;;  %v10759_v22 = vld [vmem:[%s15547_s1 + $0x38c] ss:$16 sps:$4 sm:$0xff]  }
  0xb1   :  { %2830 = vmatprep.subr.bf16.mxu0 %v10660_v26  ;;  %v86_v26 = vrot.slane %v74_v23, 1  ;;  %v164_v27 = vld [vmem:[%s15546_s0 + $0x80] sm:$0xfe]  ;;  %189 = vst [vmem:[#allocation2 + $0x118] sm:$0x80] %v177_v24 }
  0xb2   :  { %195 = vst [vmem:[#allocation2 + $0x178] sm:$0x3f] %v177_v24  ;;  %v10754_v23 = vld [vmem:[%s15547_s1 + $0xb80] ss:$16 sps:$4 sm:$0xff]   ;;  %v10757_v24 = vld [vmem:[%s15547_s1 + $0x388] ss:$16 sps:$4 sm:$0xff]  }
  0xb3   :  { %2937 = vmatpush1.bf16.msra.mxu1 %v10661_v29  ;;  %v176_v29 = vrot.slane %v164_v27, 2  ;;  %98 = vst [vmem:[#allocation2 + $0x110] sm:$0x7f] %v86_v26  ;;  %v10762_v26 = vld [vmem:[%s15547_s1 + $0xba4] ss:$16 sps:$4 sm:$0xff]  }
  0xb4   :  { %2831 = vmatpush1.bf16.msra.mxu0 %v10658_v28  ;;  %2938 = vmatprep.subr.bf16.mxu1 %v10669_v31  ;;  %v10699_v28 = vld [vmem:[%s15547_s1 + $0x24c] ss:$16 sps:$4 sm:$0xff]   ;;  %v10697_v31 = vld [vmem:[%s15547_s1 + $0x248] ss:$16 sps:$4 sm:$0xff]  }
  0xb5   :  { %2832 = vmatprep.subr.bf16.mxu0 %v10666_v30  ;;  %v10694_v30 = vld [vmem:[%s15547_s1 + $0xa40] ss:$16 sps:$4 sm:$0xff]   ;;  %188 = vst [vmem:[#allocation2 + $0x110] sm:$0x80] %v176_v29  ;;  %194 = vst [vmem:[#allocation2 + $0x170] sm:$0x3f] %v176_v29 }
  0xb6   :  { %v10765_v27 = vld [vmem:[%s15547_s1 + $0x3ac] ss:$16 sps:$4 sm:$0xff]   ;;  %v10768_v29 = vld [vmem:[%s15547_s1 + $0xbc4] ss:$16 sps:$4 sm:$0xff]  }
  0xb7   :  { %2939 = vmatpush1.bf16.msra.mxu1 %v10667_v33  ;;  %v10705_v33 = vld [vmem:[%s15547_s1 + $0x26c] ss:$16 sps:$4 sm:$0xff]  }
  0xb8   :  { %2833 = vmatpush1.bf16.msra.mxu0 %v10664_v32  ;;  %2940 = vmatprep.subr.bf16.mxu1 %v10675_v35  ;;  %v12806_v32 = vpack.c.bf16 %v240_v16, %v228_v12  ;;  %v10700_v35 = vld [vmem:[%s15547_s1 + $0xa60] ss:$16 sps:$4 sm:$0xff]   ;;  %v10753_v12 = vld [vmem:[%s15547_s1 + $0x36c] ss:$16 sps:$4 sm:$0xff]  }
  0xb9   :  { %2834 = vmatprep.subr.bf16.mxu0 %v10672_v34  ;;  %v12814_v34 = vpack.c.bf16 %v111_v59, %v45_v58  ;;  %v10735_v58 = vld [vmem:[%s15547_s1 + $0x30c] ss:$16 sps:$4 sm:$0xff]   ;;  %v10730_v59 = vld [vmem:[%s15547_s1 + $0xb00] ss:$16 sps:$4 sm:$0xff]  }
  0xba   :  { %v10748_v16 = vld [vmem:[%s15547_s1 + $0xb60] ss:$16 sps:$4 sm:$0xff]  }
  0xbb   :  { %2941 = vmatpush1.bf16.msra.mxu1 %v10673_v37  ;;  %v10708_v37 = vld [vmem:[%s15547_s1 + $0xa84] ss:$16 sps:$4 sm:$0xff]  }
  0xbc   :  { %2835 = vmatpush1.bf16.msra.mxu0 %v10670_v36  ;;  %2942 = vmatprep.subr.bf16.mxu1 %v10681_v48  ;;  %v10703_v36 = vld [vmem:[%s15547_s1 + $0x268] ss:$16 sps:$4 sm:$0xff]  }
  0xbd   :  { %2836 = vmatprep.subr.bf16.mxu0 %v10678_v44  ;;  %v10718_v44 = vld [vmem:[%s15547_s1 + $0xac0] ss:$16 sps:$4 sm:$0xff]   ;;  %v10721_v48 = vld [vmem:[%s15547_s1 + $0x2c8] ss:$16 sps:$4 sm:$0xff]  }
  0xbf   :  { %2943 = vmatpush1.bf16.msra.mxu1 %v10679_v51  ;;  %v10724_v51 = vld [vmem:[%s15547_s1 + $0xae0] ss:$16 sps:$4 sm:$0xff]  }
  0xc0   :  { %2837 = vmatpush1.bf16.msra.mxu0 %v10676_v50  ;;  %2965 = vmatprep.subr.bf16.mxu1 %v10687_v55  ;;  %v10729_v50 = vld [vmem:[%s15547_s1 + $0x2ec] ss:$16 sps:$4 sm:$0xff]   ;;  %v10732_v55 = vld [vmem:[%s15547_s1 + $0xb04] ss:$16 sps:$4 sm:$0xff]  }
  0xc1   :  { %2859 = vmatprep.subr.bf16.mxu0 %v10684_v54  ;;  %v10727_v54 = vld [vmem:[%s15547_s1 + $0x2e8] ss:$16 sps:$4 sm:$0xff]  }
  0xc2   :  { %2945 = vmatmul.mubr.bf16.vlgmr.msra.gmra.mrb[8].mxu1 %v12204_v14  ;;  %v10696_v14 = vld [vmem:[%s15547_s1 + $0xa44] ss:$16 sps:$4 sm:$0xff]  }
  0xc3   :  { %2839 = vmatmul.mubr.bf16.vlgmr.msra.gmra.mrb[0].mxu0 %v12760_v4  ;;  %2966 = vmatpush1.bf16.msra.mxu1 %v10685_v3  ;;  %v10736_v3 = vld [vmem:[%s15547_s1 + $0xb20] ss:$16 sps:$4 sm:$0xff]  }
  0xc4   :  { %2860 = vmatpush1.bf16.msra.mxu0 %v10682_v2  ;;  %2967 = vmatprep.subr.bf16.mxu1 %v10693_v63  ;;  %v10741_v2 = vld [vmem:[%s15547_s1 + $0x32c] ss:$16 sps:$4 sm:$0xff]   ;;  %v10744_v63 = vld [vmem:[%s15547_s1 + $0xb44] ss:$16 sps:$4 sm:$0xff]  }
  0xc5   :  { %2861 = vmatprep.subr.bf16.mxu0 %v10690_v62  ;;  %2848 = vmatprep.mubr.bf16.mxu0 %v12776_v11  ;;  %v10739_v62 = vld [vmem:[%s15547_s1 + $0x328] ss:$16 sps:$4 sm:$0xff]  }
  0xc6   :  { %2954 = vmatprep.mubr.bf16.mxu1 %v12349_v6  ;;  %v10702_v6 = vld [vmem:[%s15547_s1 + $0xa64] ss:$16 sps:$4 sm:$0xff]  }
  0xc7   :  { %2968 = vmatpush1.bf16.msra.mxu1 %v10691_v47  ;;  %v10750_v47 = vld [vmem:[%s15547_s1 + $0xb64] ss:$16 sps:$4 sm:$0xff]  }
  0xc8   :  { %2862 = vmatpush1.bf16.msra.mxu0 %v10688_v45  ;;  %2969 = vmatprep.subr.bf16.mxu1 %v10699_v28  ;;  %v10745_v45 = vld [vmem:[%s15547_s1 + $0x348] ss:$16 sps:$4 sm:$0xff]  }
  0xc9   :  { %2863 = vmatprep.subr.bf16.mxu0 %v10696_v14  ;;  %v10760_v14 = vld [vmem:[%s15547_s1 + $0xba0] ss:$16 sps:$4 sm:$0xff]   ;;  %v10763_v28 = vld [vmem:[%s15547_s1 + $0x3a8] ss:$16 sps:$4 sm:$0xff]  }
  0xca   :  { %2955 = vmatmul.mubr.bf16.gmra.mrb[12].mxu1 %v12354_v9  ;;  %v10706_v9 = vld [vmem:[%s15547_s1 + $0xa80] ss:$16 sps:$4 sm:$0xff]  }
  0xcb   :  { %2849 = vmatmul.mubr.bf16.gmra.mrb[4].mxu0 %v12806_v32  ;;  %2970 = vmatpush1.bf16.msra.mxu1 %v10697_v31  ;;  %v10766_v31 = vld [vmem:[%s15547_s1 + $0xbc0] ss:$16 sps:$4 sm:$0xff]  }
  0xcc   :  { %2864 = vmatpush1.bf16.msra.mxu0 %v10694_v30  ;;  %2971 = vmatprep.subr.bf16.mxu1 %v10705_v33  ;;  %v10771_v30 = vld [vmem:[%s15547_s1 + $0x3cc] ss:$16 sps:$4 sm:$0xff]   ;;  %v10774_v33 = vld [vmem:[%s15547_s1 + $0xbe4] ss:$16 sps:$4 sm:$0xff]  }
  0xcd   :  { %2865 = vmatprep.subr.bf16.mxu0 %v10702_v6  ;;  %2891 = vmatprep.mubr.bf16.mxu0 %v12814_v34  ;;  %v10769_v6 = vld [vmem:[%s15547_s1 + $0x3c8] ss:$16 sps:$4 sm:$0xff]  }
  0xce   :  { %2997 = vmatprep.mubr.bf16.mxu1 %v12368_v20  ;;  %v10717_v20 = vld [vmem:[%s15547_s1 + $0x2ac] ss:$16 sps:$4 sm:$0xff]  }
  0xcf   :  { %2972 = vmatpush1.bf16.msra.mxu1 %v10703_v36  ;;  %v10772_v36 = vld [vmem:[%s15547_s1 + $0xbe0] ss:$16 sps:$4 sm:$0xff]  }
  0xd0   :  { %2866 = vmatpush1.bf16.msra.mxu0 %v10700_v35  ;;  %2973 = vmatprep.subr.bf16.mxu1 %v10711_v38  ;;  %v10777_v35 = vld [vmem:[%s15547_s1 + $0x3ec] ss:$16 sps:$4 sm:$0xff]  }
  0xd1   :  { %2867 = vmatprep.subr.bf16.mxu0 %v10708_v37  ;;  %v10775_v37 = vld [vmem:[%s15547_s1 + $0x3e8] ss:$16 sps:$4 sm:$0xff]   ;;  %v10780_v38 = vld [vmem:[%s15547_s1 + $0x40c] ss:$16 sps:$4 sm:$0xff]  }
  0xd3   :  { %2974 = vmatpush1.bf16.msra.mxu1 %v10709_v39  ;;  %v243_v39 = vld [vmem:[#allocation2 + $0x178] sm:$0x3f] }
  0xd4   :  { %2868 = vmatpush1.bf16.msra.mxu0 %v10706_v9  ;;  %2975 = vmatprep.subr.bf16.mxu1 %v10717_v20  ;;  %v231_v9 = vld [vmem:[#allocation2 + $0x118] sm:$0xff] }
  0xd5   :  { %2869 = vmatprep.subr.bf16.mxu0 %v10714_v52  ;;  %v10778_v52 = vld [vmem:[%s15547_s1 + $0x408] ss:$16 sps:$4 sm:$0xff]   ;;  %v10783_v20 = vld [vmem:[%s15547_s1 + $0x42c] ss:$16 sps:$4 sm:$0xff]  }
  0xd7   :  { %2976 = vmatpush1.bf16.msra.mxu1 %v10715_v41  ;;  %v10781_v41 = vld [vmem:[%s15547_s1 + $0x428] ss:$16 sps:$4 sm:$0xff]  }
  0xd8   :  { %2870 = vmatpush1.bf16.msra.mxu0 %v10712_v40  ;;  %2977 = vmatprep.subr.bf16.mxu1 %v10723_v43  ;;  %v12979_v40 = vpack.c.bf16 %v243_v39, %v231_v9  ;;  %v230_v43 = vld [vmem:[#allocation2 + $0x110] sm:$0xff]  ;;  %v10834_v9 = vld [vmem:[%s15547_s1 + $0x64c] ss:$16 sps:$4 sm:$0xff]   ;;  %v10943_v39 = vld [vmem:[%s15549_s3 + $0x78] ss:$12 sps:$4 sm:$0xff]  }
  0xd9   :  { %2871 = vmatprep.subr.bf16.mxu0 %v10720_v42  ;;  %v10786_v42 = vld [vmem:[%s15547_s1 + $0x44c] ss:$16 sps:$4 sm:$0xff]  }
  0xdb   :  { %2978 = vmatpush1.bf16.msra.mxu1 %v10721_v48 }
  0xdc   :  { %2872 = vmatpush1.bf16.msra.mxu0 %v10718_v44  ;;  %2979 = vmatprep.subr.bf16.mxu1 %v10729_v50  ;;  %v242_v44 = vld [vmem:[#allocation2 + $0x170] sm:$0x3f]  ;;  %v10792_v50 = vld [vmem:[%s15547_s1 + $0x48c] ss:$16 sps:$4 sm:$0xff]  }
  0xdd   :  { %2873 = vmatprep.subr.bf16.mxu0 %v10726_v49  ;;  %v12991_v48 = vpack.c.bf16 %v242_v44, %v230_v43  ;;  %v10784_v49 = vld [vmem:[%s15547_s1 + $0x448] ss:$16 sps:$4 sm:$0xff]   ;;  %v10840_v43 = vld [vmem:[%s15547_s1 + $0x68c] ss:$16 sps:$4 sm:$0xff]  }
  0xde   :  { %v10955_v44 = vld [vmem:[%s15549_s3 + $0xa8] ss:$12 sps:$4 sm:$0xff]  }
  0xdf   :  { %2980 = vmatpush1.bf16.msra.mxu1 %v10727_v54  ;;  %v10793_v54 = vld [vmem:[%s15547_s1 + $0x4a8] ss:$16 sps:$4 sm:$0xff]  }
  0xe0   :  { %2874 = vmatpush1.bf16.msra.mxu0 %v10724_v51  ;;  %2981 = vmatprep.subr.bf16.mxu1 %v10735_v58  ;;  %v10790_v51 = vld [vmem:[%s15547_s1 + $0x488] ss:$16 sps:$4 sm:$0xff]   ;;  %v10801_v58 = vld [vmem:[%s15547_s1 + $0x4ec] ss:$16 sps:$4 sm:$0xff]  }
  0xe1   :  { %2875 = vmatprep.subr.bf16.mxu0 %v10732_v55  ;;  %v10796_v55 = vld [vmem:[%s15547_s1 + $0x4c8] ss:$16 sps:$4 sm:$0xff]  }
  0xe3   :  { %2982 = vmatpush1.bf16.msra.mxu1 %v10733_v60  ;;  %v10804_v60 = vld [vmem:[%s15547_s1 + $0x50c] ss:$16 sps:$4 sm:$0xff]  }
  0xe4   :  { %2876 = vmatpush1.bf16.msra.mxu0 %v10730_v59  ;;  %2983 = vmatprep.subr.bf16.mxu1 %v10741_v2  ;;  %v10799_v59 = vld [vmem:[%s15547_s1 + $0x4e8] ss:$16 sps:$4 sm:$0xff]   ;;  %v10807_v2 = vld [vmem:[%s15547_s1 + $0x52c] ss:$16 sps:$4 sm:$0xff]  }
  0xe5   :  { %2877 = vmatprep.subr.bf16.mxu0 %v10738_v61  ;;  %v10802_v61 = vld [vmem:[%s15547_s1 + $0x508] ss:$16 sps:$4 sm:$0xff]  }
  0xe7   :  { %2984 = vmatpush1.bf16.msra.mxu1 %v10739_v62  ;;  %v10810_v62 = vld [vmem:[%s15547_s1 + $0x54c] ss:$16 sps:$4 sm:$0xff]  }
  0xe8   :  { %2878 = vmatpush1.bf16.msra.mxu0 %v10736_v3  ;;  %2985 = vmatprep.subr.bf16.mxu1 %v10747_v8  ;;  %v10805_v3 = vld [vmem:[%s15547_s1 + $0x528] ss:$16 sps:$4 sm:$0xff]   ;;  %v10813_v8 = vld [vmem:[%s15547_s1 + $0x56c] ss:$16 sps:$4 sm:$0xff]  }
  0xe9   :  { %2879 = vmatprep.subr.bf16.mxu0 %v10744_v63  ;;  %v10808_v63 = vld [vmem:[%s15547_s1 + $0x548] ss:$16 sps:$4 sm:$0xff]  }
  0xeb   :  { %2986 = vmatpush1.bf16.msra.mxu1 %v10745_v45  ;;  %v10816_v45 = vld [vmem:[%s15547_s1 + $0x58c] ss:$16 sps:$4 sm:$0xff]  }
  0xec   :  { %2880 = vmatpush1.bf16.msra.mxu0 %v10742_v10  ;;  %2987 = vmatprep.subr.bf16.mxu1 %v10753_v12  ;;  %v10811_v10 = vld [vmem:[%s15547_s1 + $0x568] ss:$16 sps:$4 sm:$0xff]   ;;  %v10819_v12 = vld [vmem:[%s15547_s1 + $0x5ac] ss:$16 sps:$4 sm:$0xff]  }
  0xed   :  { %2881 = vmatprep.subr.bf16.mxu0 %v10750_v47  ;;  %v10814_v47 = vld [vmem:[%s15547_s1 + $0x588] ss:$16 sps:$4 sm:$0xff]  }
  0xef   :  { %2988 = vmatpush1.bf16.msra.mxu1 %v10751_v18  ;;  %v10915_v18 = vld [vmem:[%s15549_s3 + $0x4] ss:$12 sps:$4 sm:$0xff]  }
  0xf0   :  { %2882 = vmatpush1.bf16.msra.mxu0 %v10748_v16  ;;  %2989 = vmatprep.subr.bf16.mxu1 %v10759_v22  ;;  %v10913_v16 = vld [vmem:[%s15549_s3] ss:$12 sps:$4 sm:$0xff]  }
  0xf1   :  { %2883 = vmatprep.subr.bf16.mxu0 %v10756_v21  ;;  %v10817_v21 = vld [vmem:[%s15547_s1 + $0x5a8] ss:$16 sps:$4 sm:$0xff]   ;;  %v10822_v22 = vld [vmem:[%s15547_s1 + $0x5cc] ss:$16 sps:$4 sm:$0xff]  }
  0xf3   :  { %2990 = vmatpush1.bf16.msra.mxu1 %v10757_v24  ;;  %v10921_v24 = vld [vmem:[%s15549_s3 + $0x1c] ss:$12 sps:$4 sm:$0xff]  }
  0xf4   :  { %2884 = vmatpush1.bf16.msra.mxu0 %v10754_v23  ;;  %2991 = vmatprep.subr.bf16.mxu1 %v10765_v27  ;;  %v10919_v23 = vld [vmem:[%s15549_s3 + $0x18] ss:$12 sps:$4 sm:$0xff]   ;;  %v10825_v27 = vld [vmem:[%s15547_s1 + $0x5ec] ss:$16 sps:$4 sm:$0xff]  }
  0xf5   :  { %2885 = vmatprep.subr.bf16.mxu0 %v10762_v26  ;;  %v10820_v26 = vld [vmem:[%s15547_s1 + $0x5c8] ss:$16 sps:$4 sm:$0xff]  }
  0xf7   :  { %2992 = vmatpush1.bf16.msra.mxu1 %v10763_v28  ;;  %v10927_v28 = vld [vmem:[%s15549_s3 + $0x34] ss:$12 sps:$4 sm:$0xff]  }
  0xf8   :  { %2886 = vmatpush1.bf16.msra.mxu0 %v10760_v14  ;;  %2993 = vmatprep.subr.bf16.mxu1 %v10771_v30  ;;  %v10925_v14 = vld [vmem:[%s15549_s3 + $0x30] ss:$12 sps:$4 sm:$0xff]  }
  0xf9   :  { %2887 = vmatprep.subr.bf16.mxu0 %v10768_v29  ;;  %v10823_v29 = vld [vmem:[%s15547_s1 + $0x5e8] ss:$16 sps:$4 sm:$0xff]   ;;  %v10828_v30 = vld [vmem:[%s15547_s1 + $0x60c] ss:$16 sps:$4 sm:$0xff]  }
  0xfb   :  { %2994 = vmatpush1.bf16.msra.mxu1 %v10769_v6  ;;  %v10933_v6 = vld [vmem:[%s15549_s3 + $0x4c] ss:$12 sps:$4 sm:$0xff]  }
  0xfc   :  { %2888 = vmatpush1.bf16.msra.mxu0 %v10766_v31  ;;  %2995 = vmatprep.subr.bf16.mxu1 %v10777_v35  ;;  %v10931_v31 = vld [vmem:[%s15549_s3 + $0x48] ss:$12 sps:$4 sm:$0xff]   ;;  %v10831_v35 = vld [vmem:[%s15547_s1 + $0x62c] ss:$16 sps:$4 sm:$0xff]  }
  0xfd   :  { %2889 = vmatprep.subr.bf16.mxu0 %v10774_v33  ;;  %v10826_v33 = vld [vmem:[%s15547_s1 + $0x608] ss:$16 sps:$4 sm:$0xff]  }
  0xff   :  { %2996 = vmatpush1.bf16.msra.mxu1 %v10775_v37  ;;  %v10939_v37 = vld [vmem:[%s15549_s3 + $0x64] ss:$12 sps:$4 sm:$0xff]  }
 0x100   :  { %2890 = vmatpush1.bf16.msra.mxu0 %v10772_v36  ;;  %3018 = vmatprep.subr.bf16.mxu1 %v10780_v38  ;;  %v10937_v36 = vld [vmem:[%s15549_s3 + $0x60] ss:$12 sps:$4 sm:$0xff]   ;;  %v10829_v38 = vld [vmem:[%s15547_s1 + $0x628] ss:$16 sps:$4 sm:$0xff]  }
 0x101   :  { %6060 = vmatprep.subr.bf16.mxu0 %v10915_v18 }
 0x102   :  { %2998 = vmatmul.mubr.bf16.vlgmr.msra.gmra.mrb[8].mxu1 %v12490_v0  ;;  %v10789_v0 = vld [vmem:[%s15547_s1 + $0x46c] ss:$16 sps:$4 sm:$0xff]  }
 0x103   :  { %2892 = vmatmul.mubr.bf16.vlgmr.msra.gmra.mrb[0].mxu0 %v12762_v5  ;;  %3019 = vmatpush1.bf16.msra.mxu1 %v10778_v52  ;;  %v10832_v52 = vld [vmem:[%s15547_s1 + $0x648] ss:$16 sps:$4 sm:$0xff]  }
 0x104   :  { %2901 = vmatprep.mubr.bf16.mxu0 %v12979_v40  ;;  %3020 = vmatprep.subr.bf16.mxu1 %v10783_v20  ;;  %v10949_v20 = vld [vmem:[%s15549_s3 + $0x90] ss:$12 sps:$4 sm:$0xff]  }
 0x105   :  { %3007 = vmatprep.mubr.bf16.mxu1 %v12508_v7  ;;  %v10787_v7 = vld [vmem:[%s15547_s1 + $0x468] ss:$16 sps:$4 sm:$0xff]   ;;  %6061 = vmatpush1.bf16.msra.mxu0 %v10913_v16 }
 0x106   :  { %6062 = vmatprep.subr.bf16.mxu0 %v10921_v24  ;;  %v10979_v16 = vld [vmem:[%s15549_s3 + $0x108] ss:$12 sps:$4 sm:$0xff]   ;;  %v10858_v24 = vld [vmem:[%s15547_s1 + $0x74c] ss:$16 sps:$4 sm:$0xff]  }
 0x107   :  { %3021 = vmatpush1.bf16.msra.mxu1 %v10781_v41  ;;  %v10951_v41 = vld [vmem:[%s15549_s3 + $0x94] ss:$12 sps:$4 sm:$0xff]  }
 0x108   :  { %3022 = vmatprep.subr.bf16.mxu1 %v10786_v42  ;;  %v10835_v42 = vld [vmem:[%s15547_s1 + $0x668] ss:$16 sps:$4 sm:$0xff]  }
 0x109   :  { %6063 = vmatpush1.bf16.msra.mxu0 %v10919_v23  ;;  %v10987_v23 = vld [vmem:[%s15549_s3 + $0x124] ss:$12 sps:$4 sm:$0xff]  }
 0x10a   :  { %3008 = vmatmul.mubr.bf16.gmra.mrb[12].mxu1 %v12522_v17  ;;  %v10795_v17 = vld [vmem:[%s15547_s1 + $0x4ac] ss:$16 sps:$4 sm:$0xff]   ;;  %6064 = vmatprep.subr.bf16.mxu0 %v10927_v28 }
 0x10b   :  { %2902 = vmatmul.mubr.bf16.gmra.mrb[4].mxu0 %v12991_v48  ;;  %3023 = vmatpush1.bf16.msra.mxu1 %v10784_v49  ;;  %v10838_v49 = vld [vmem:[%s15547_s1 + $0x688] ss:$16 sps:$4 sm:$0xff]   ;;  %v10861_v28 = vld [vmem:[%s15547_s1 + $0x76c] ss:$16 sps:$4 sm:$0xff]  }
 0x10c   :  { %3050 = vmatprep.mubr.bf16.mxu1 %v12141_v57  ;;  %3024 = vmatprep.subr.bf16.mxu1 %v10789_v0  ;;  %v10798_v57 = vld [vmem:[%s15547_s1 + $0x4cc] ss:$16 sps:$4 sm:$0xff]  }
 0x10d   :  { %6065 = vmatpush1.bf16.msra.mxu0 %v10925_v14  ;;  %v10961_v0 = vld [vmem:[%s15549_s3 + $0xc0] ss:$12 sps:$4 sm:$0xff]   ;;  %v10993_v14 = vld [vmem:[%s15549_s3 + $0x13c] ss:$12 sps:$4 sm:$0xff]  }
 0x10e   :  { %6066 = vmatprep.subr.bf16.mxu0 %v10933_v6  ;;  %v10864_v6 = vld [vmem:[%s15547_s1 + $0x78c] ss:$16 sps:$4 sm:$0xff]  }
 0x10f   :  { %3025 = vmatpush1.bf16.msra.mxu1 %v10787_v7  ;;  %v10963_v7 = vld [vmem:[%s15549_s3 + $0xc4] ss:$12 sps:$4 sm:$0xff]  }
 0x110   :  { %3026 = vmatprep.subr.bf16.mxu1 %v10792_v50  ;;  %v10841_v50 = vld [vmem:[%s15547_s1 + $0x6a8] ss:$16 sps:$4 sm:$0xff]  }
 0x111   :  { %6067 = vmatpush1.bf16.msra.mxu0 %v10931_v31  ;;  %v10999_v31 = vld [vmem:[%s15549_s3 + $0x154] ss:$12 sps:$4 sm:$0xff]  }
 0x112   :  { %6068 = vmatprep.subr.bf16.mxu0 %v10939_v37  ;;  %v10867_v37 = vld [vmem:[%s15547_s1 + $0x7ac] ss:$16 sps:$4 sm:$0xff]  }
 0x113   :  { %3027 = vmatpush1.bf16.msra.mxu1 %v10790_v51  ;;  %v10846_v51 = vld [vmem:[%s15547_s1 + $0x6cc] ss:$16 sps:$4 sm:$0xff]  }
 0x114   :  { %3028 = vmatprep.subr.bf16.mxu1 %v10795_v17  ;;  %v10969_v17 = vld [vmem:[%s15549_s3 + $0xdc] ss:$12 sps:$4 sm:$0xff]  }
 0x115   :  { %6069 = vmatpush1.bf16.msra.mxu0 %v10937_v36  ;;  %v11005_v36 = vld [vmem:[%s15549_s3 + $0x16c] ss:$12 sps:$4 sm:$0xff]  }
 0x117   :  { %3029 = vmatpush1.bf16.msra.mxu1 %v10793_v54 }
 0x118   :  { %3030 = vmatprep.subr.bf16.mxu1 %v10798_v57  ;;  %v10844_v57 = vld [vmem:[%s15547_s1 + $0x6c8] ss:$16 sps:$4 sm:$0xff]  }
 0x11b   :  { %3031 = vmatpush1.bf16.msra.mxu1 %v10796_v55  ;;  %v10967_v55 = vld [vmem:[%s15549_s3 + $0xd8] ss:$12 sps:$4 sm:$0xff]  }
 0x11c   :  { %3032 = vmatprep.subr.bf16.mxu1 %v10801_v58 }
 0x11f   :  { %3033 = vmatpush1.bf16.msra.mxu1 %v10799_v59 }
 0x120   :  { %3034 = vmatprep.subr.bf16.mxu1 %v10804_v60 }
 0x123   :  { %3035 = vmatpush1.bf16.msra.mxu1 %v10802_v61  ;;  %v10849_v61 = vld [vmem:[%s15547_s1 + $0x6ec] ss:$16 sps:$4 sm:$0xff]  }
 0x124   :  { %3036 = vmatprep.subr.bf16.mxu1 %v10807_v2  ;;  %v10975_v2 = vld [vmem:[%s15549_s3 + $0xf4] ss:$12 sps:$4 sm:$0xff]  }
 0x127   :  { %3037 = vmatpush1.bf16.msra.mxu1 %v10805_v3  ;;  %v10847_v3 = vld [vmem:[%s15547_s1 + $0x6e8] ss:$16 sps:$4 sm:$0xff]  }
 0x128   :  { %3038 = vmatprep.subr.bf16.mxu1 %v10810_v62  ;;  %v10973_v62 = vld [vmem:[%s15549_s3 + $0xf0] ss:$12 sps:$4 sm:$0xff]  }
 0x12b   :  { %3039 = vmatpush1.bf16.msra.mxu1 %v10808_v63  ;;  %v10852_v63 = vld [vmem:[%s15547_s1 + $0x70c] ss:$16 sps:$4 sm:$0xff]  }
 0x12c   :  { %3040 = vmatprep.subr.bf16.mxu1 %v10813_v8 }
 0x12f   :  { %3041 = vmatpush1.bf16.msra.mxu1 %v10811_v10  ;;  %v10850_v10 = vld [vmem:[%s15547_s1 + $0x708] ss:$16 sps:$4 sm:$0xff]  }
 0x130   :  { %3042 = vmatprep.subr.bf16.mxu1 %v10816_v45  ;;  %v10981_v45 = vld [vmem:[%s15549_s3 + $0x10c] ss:$12 sps:$4 sm:$0xff]  }
 0x133   :  { %3043 = vmatpush1.bf16.msra.mxu1 %v10814_v47 }
 0x134   :  { %3044 = vmatprep.subr.bf16.mxu1 %v10819_v12  ;;  %v10855_v12 = vld [vmem:[%s15547_s1 + $0x72c] ss:$16 sps:$4 sm:$0xff]  }
 0x137   :  { %3045 = vmatpush1.bf16.msra.mxu1 %v10817_v21 }
 0x138   :  { %3046 = vmatprep.subr.bf16.mxu1 %v10822_v22  ;;  %v10853_v22 = vld [vmem:[%s15547_s1 + $0x728] ss:$16 sps:$4 sm:$0xff]  }
 0x13b   :  { %3047 = vmatpush1.bf16.msra.mxu1 %v10820_v26  ;;  %v10985_v26 = vld [vmem:[%s15549_s3 + $0x120] ss:$12 sps:$4 sm:$0xff]  }
 0x13c   :  { %3048 = vmatprep.subr.bf16.mxu1 %v10825_v27  ;;  %v10856_v27 = vld [vmem:[%s15547_s1 + $0x748] ss:$16 sps:$4 sm:$0xff]  }
 0x13f   :  { %3049 = vmatpush1.bf16.msra.mxu1 %v10823_v29  ;;  %v10991_v29 = vld [vmem:[%s15549_s3 + $0x138] ss:$12 sps:$4 sm:$0xff]  }
 0x140   :  { %3071 = vmatprep.subr.bf16.mxu1 %v10828_v30  ;;  %v10859_v30 = vld [vmem:[%s15547_s1 + $0x768] ss:$16 sps:$4 sm:$0xff]  }
 0x142   :  { %3051 = vmatmul.mubr.bf16.vlgmr.msra.gmra.mrb[8].mxu1 %v12206_v15  ;;  %v10945_v15 = vld [vmem:[%s15549_s3 + $0x7c] ss:$12 sps:$4 sm:$0xff]  }
 0x143   :  { %3072 = vmatpush1.bf16.msra.mxu1 %v10826_v33  ;;  %3060 = vmatprep.mubr.bf16.mxu1 %v12359_v13  ;;  %v10837_v13 = vld [vmem:[%s15547_s1 + $0x66c] ss:$16 sps:$4 sm:$0xff]  }
 0x144   :  { %3073 = vmatprep.subr.bf16.mxu1 %v10831_v35  ;;  %6070 = vmatprep.subr.bf16.mxu0 %v10945_v15  ;;  %v10997_v33 = vld [vmem:[%s15549_s3 + $0x150] ss:$12 sps:$4 sm:$0xff]   ;;  %v10862_v35 = vld [vmem:[%s15547_s1 + $0x788] ss:$16 sps:$4 sm:$0xff]  }
 0x145   :  { %6071 = vmatpush1.bf16.msra.mxu0 %v10943_v39  ;;  %v10870_v39 = vld [vmem:[%s15547_s1 + $0x7cc] ss:$16 sps:$4 sm:$0xff]   ;;  %v10868_v15 = vld [vmem:[%s15547_s1 + $0x7c8] ss:$16 sps:$4 sm:$0xff]  }
 0x146   :  { %6072 = vmatprep.subr.bf16.mxu0 %v10951_v41  ;;  %v10874_v41 = vld [vmem:[%s15547_s1 + $0x808] ss:$16 sps:$4 sm:$0xff]  }
 0x147   :  { %3074 = vmatpush1.bf16.msra.mxu1 %v10829_v38  ;;  %v11003_v38 = vld [vmem:[%s15549_s3 + $0x168] ss:$12 sps:$4 sm:$0xff]  }
 0x148   :  { %3075 = vmatprep.subr.bf16.mxu1 %v10834_v9  ;;  %v10865_v9 = vld [vmem:[%s15547_s1 + $0x7a8] ss:$16 sps:$4 sm:$0xff]  }
 0x149   :  { %6073 = vmatpush1.bf16.msra.mxu0 %v10949_v20  ;;  %v10876_v20 = vld [vmem:[%s15547_s1 + $0x80c] ss:$16 sps:$4 sm:$0xff]  }
 0x14a   :  { %3061 = vmatmul.mubr.bf16.gmra.mrb[12].mxu1 %v12366_v19  ;;  %v10957_v19 = vld [vmem:[%s15549_s3 + $0xac] ss:$12 sps:$4 sm:$0xff]  }
 0x14b   :  { %3076 = vmatpush1.bf16.msra.mxu1 %v10832_v52  ;;  %3103 = vmatprep.mubr.bf16.mxu1 %v12387_v25  ;;  %v10843_v25 = vld [vmem:[%s15547_s1 + $0x6ac] ss:$16 sps:$4 sm:$0xff]  }
 0x14c   :  { %3077 = vmatprep.subr.bf16.mxu1 %v10837_v13  ;;  %6074 = vmatprep.subr.bf16.mxu0 %v10957_v19  ;;  %v10873_v52 = vld [vmem:[%s15547_s1 + $0x7ec] ss:$16 sps:$4 sm:$0xff]   ;;  %v10871_v13 = vld [vmem:[%s15547_s1 + $0x7e8] ss:$16 sps:$4 sm:$0xff]  }
 0x14d   :  { %6075 = vmatpush1.bf16.msra.mxu0 %v10955_v44  ;;  %v10882_v44 = vld [vmem:[%s15547_s1 + $0x84c] ss:$16 sps:$4 sm:$0xff]   ;;  %v10880_v19 = vld [vmem:[%s15547_s1 + $0x848] ss:$16 sps:$4 sm:$0xff]  }
 0x14e   :  { %6076 = vmatprep.subr.bf16.mxu0 %v10963_v7  ;;  %v10892_v7 = vld [vmem:[%s15547_s1 + $0x8c8] ss:$16 sps:$4 sm:$0xff]  }
 0x14f   :  { %3078 = vmatpush1.bf16.msra.mxu1 %v10835_v42  ;;  %v10879_v42 = vld [vmem:[%s15547_s1 + $0x82c] ss:$16 sps:$4 sm:$0xff]  }
 0x150   :  { %3079 = vmatprep.subr.bf16.mxu1 %v10840_v43  ;;  %v10877_v43 = vld [vmem:[%s15547_s1 + $0x828] ss:$16 sps:$4 sm:$0xff]  }
 0x151   :  { %6077 = vmatpush1.bf16.msra.mxu0 %v10961_v0  ;;  %v10894_v0 = vld [vmem:[%s15547_s1 + $0x8cc] ss:$16 sps:$4 sm:$0xff]  }
 0x152   :  { %6078 = vmatprep.subr.bf16.mxu0 %v10969_v17  ;;  %v10900_v17 = vld [vmem:[%s15547_s1 + $0x90c] ss:$16 sps:$4 sm:$0xff]  }
 0x153   :  { %3080 = vmatpush1.bf16.msra.mxu1 %v10838_v49  ;;  %v10888_v49 = vld [vmem:[%s15547_s1 + $0x88c] ss:$16 sps:$4 sm:$0xff]  }
 0x154   :  { %3081 = vmatprep.subr.bf16.mxu1 %v10843_v25  ;;  %v10886_v25 = vld [vmem:[%s15547_s1 + $0x888] ss:$16 sps:$4 sm:$0xff]  }
 0x155   :  { %v13177_v54 = vpop.f32.mrb[0].mxu1  ;;  %6079 = vmatpush1.bf16.msra.mxu0 %v10967_v55  ;;  %v10903_v55 = vld [vmem:[%s15547_s1 + $0x92c] ss:$16 sps:$4 sm:$0xff]  }
 0x156   :  { %v13185_v58 = vpop.f32.mrb[1].mxu1  ;;  %6080 = vmatprep.subr.bf16.mxu0 %v10975_v2  ;;  %v10901_v2 = vld [vmem:[%s15547_s1 + $0x928] ss:$16 sps:$4 sm:$0xff]  }
 0x157   :  { %v13187_v59 = vpop.f32.mrb[2].mxu1  ;;  %3082 = vmatpush1.bf16.msra.mxu1 %v10841_v50  ;;  %v10897_v50 = vld [vmem:[%s15547_s1 + $0x8ec] ss:$16 sps:$4 sm:$0xff]  }
 0x158   :  { %v13189_v60 = vpop.f32.mrb[3].mxu1  ;;  %3083 = vmatprep.subr.bf16.mxu1 %v10846_v51  ;;  %v10895_v51 = vld [vmem:[%s15547_s1 + $0x8e8] ss:$16 sps:$4 sm:$0xff]  }
 0x159   :  { %6081 = vmatpush1.bf16.msra.mxu0 %v10973_v62  ;;  %v10904_v62 = vld [vmem:[%s15547_s1 + $0x948] ss:$16 sps:$4 sm:$0xff]  }
 0x15a   :  { %6082 = vmatprep.subr.bf16.mxu0 %v10981_v45  ;;  %v10912_v45 = vld [vmem:[%s15547_s1 + $0x98c] ss:$16 sps:$4 sm:$0xff]  }
 0x15b   :  { %3084 = vmatpush1.bf16.msra.mxu1 %v10844_v57  ;;  %v10898_v57 = vld [vmem:[%s15547_s1 + $0x908] ss:$16 sps:$4 sm:$0xff]  }
 0x15c   :  { %3085 = vmatprep.subr.bf16.mxu1 %v10849_v61  ;;  %v11036_v61 = vld [vmem:[%s15549_s3 + $0x184] ss:$12 sps:$4 sm:$0xff]  }
 0x15d   :  { %v13206_v8 = vpop.f32.mrb[4].mxu1  ;;  %6083 = vmatpush1.bf16.msra.mxu0 %v10979_v16  ;;  %v10918_v16 = vld [vmem:[%s15547_s1 + $0x9ac] ss:$16 sps:$4 sm:$0xff]  }
 0x15e   :  { %v13214_v47 = vpop.f32.mrb[5].mxu1  ;;  %6084 = vmatprep.subr.bf16.mxu0 %v10987_v23  ;;  %v10924_v23 = vld [vmem:[%s15547_s1 + $0x9cc] ss:$16 sps:$4 sm:$0xff]  }
 0x15f   :  { %v13222_v18 = vpop.f32.mrb[6].mxu1  ;;  %3086 = vmatpush1.bf16.msra.mxu1 %v10847_v3  ;;  %v10906_v3 = vld [vmem:[%s15547_s1 + $0x94c] ss:$16 sps:$4 sm:$0xff]  }
 0x160   :  { %v13224_v21 = vpop.f32.mrb[7].mxu1  ;;  %3087 = vmatprep.subr.bf16.mxu1 %v10852_v63  ;;  %v10909_v63 = vld [vmem:[%s15547_s1 + $0x96c] ss:$16 sps:$4 sm:$0xff]  }
 0x161   :  { %6085 = vmatpush1.bf16.msra.mxu0 %v10985_v26  ;;  %v10930_v26 = vld [vmem:[%s15547_s1 + $0x9ec] ss:$16 sps:$4 sm:$0xff]  }
 0x162   :  { %6086 = vmatprep.subr.bf16.mxu0 %v10993_v14  ;;  %v10936_v14 = vld [vmem:[%s15547_s1 + $0xa0c] ss:$16 sps:$4 sm:$0xff]  }
 0x163   :  { %3088 = vmatpush1.bf16.msra.mxu1 %v10850_v10  ;;  %v10907_v10 = vld [vmem:[%s15547_s1 + $0x968] ss:$16 sps:$4 sm:$0xff]  }
 0x164   :  { %3089 = vmatprep.subr.bf16.mxu1 %v10855_v12  ;;  %v10910_v12 = vld [vmem:[%s15547_s1 + $0x988] ss:$16 sps:$4 sm:$0xff]  }
 0x165   :  { %6087 = vmatpush1.bf16.msra.mxu0 %v10991_v29  ;;  %v10942_v29 = vld [vmem:[%s15547_s1 + $0xa2c] ss:$16 sps:$4 sm:$0xff]  }
 0x166   :  { %6088 = vmatprep.subr.bf16.mxu0 %v10999_v31  ;;  %v10948_v31 = vld [vmem:[%s15547_s1 + $0xa4c] ss:$16 sps:$4 sm:$0xff]  }
 0x167   :  { %3090 = vmatpush1.bf16.msra.mxu1 %v10853_v22  ;;  %v10916_v22 = vld [vmem:[%s15547_s1 + $0x9a8] ss:$16 sps:$4 sm:$0xff]  }
 0x168   :  { %3091 = vmatprep.subr.bf16.mxu1 %v10858_v24  ;;  %v10922_v24 = vld [vmem:[%s15547_s1 + $0x9c8] ss:$16 sps:$4 sm:$0xff]  }
 0x169   :  { %6089 = vmatpush1.bf16.msra.mxu0 %v10997_v33  ;;  %v10946_v33 = vld [vmem:[%s15547_s1 + $0xa48] ss:$16 sps:$4 sm:$0xff]  }
 0x16a   :  { %6090 = vmatprep.subr.bf16.mxu0 %v11005_v36  ;;  %v10952_v36 = vld [vmem:[%s15547_s1 + $0xa68] ss:$16 sps:$4 sm:$0xff]  }
 0x16b   :  { %3092 = vmatpush1.bf16.msra.mxu1 %v10856_v27  ;;  %v10928_v27 = vld [vmem:[%s15547_s1 + $0x9e8] ss:$16 sps:$4 sm:$0xff]  }
 0x16c   :  { %3093 = vmatprep.subr.bf16.mxu1 %v10861_v28  ;;  %v10934_v28 = vld [vmem:[%s15547_s1 + $0xa08] ss:$16 sps:$4 sm:$0xff]  }
 0x16d   :  { %6091 = vmatpush1.bf16.msra.mxu0 %v11003_v38 }
 0x16e   :  { %6103 = vmatprep.subr.bf16.mxu0 %v11036_v61  ;;  %v10982_v61 = vld [vmem:[%s15547_s1 + $0xb08] ss:$16 sps:$4 sm:$0xff]  }
 0x16f   :  { %3094 = vmatpush1.bf16.msra.mxu1 %v10859_v30  ;;  %v10940_v30 = vld [vmem:[%s15547_s1 + $0xa28] ss:$16 sps:$4 sm:$0xff]  }
 0x170   :  { %3095 = vmatprep.subr.bf16.mxu1 %v10864_v6  ;;  %v654_v6 = vlaneseq }
 0x173   :  { %3096 = vmatpush1.bf16.msra.mxu1 %v10862_v35  ;;  %v10954_v35 = vld [vmem:[%s15547_s1 + $0xa6c] ss:$16 sps:$4 sm:$0xff]  }
 0x174   :  { %3097 = vmatprep.subr.bf16.mxu1 %v10867_v37  ;;  %v652_v37 = vld [vmem:[%s15548_s2] sm:$0xf] }
 0x177   :  { %3098 = vmatpush1.bf16.msra.mxu1 %v10865_v9 }
 0x178   :  { %3099 = vmatprep.subr.bf16.mxu1 %v10870_v39  ;;  %v10958_v39 = vld [vmem:[%s15547_s1 + $0xa88] ss:$16 sps:$4 sm:$0xff]  }
 0x17b   :  { %3100 = vmatpush1.bf16.msra.mxu1 %v10868_v15 }
 0x17c   :  { %3101 = vmatprep.subr.bf16.mxu1 %v10873_v52  ;;  %v10964_v52 = vld [vmem:[%s15547_s1 + $0xaa8] ss:$16 sps:$4 sm:$0xff]  }
 0x17f   :  { %3102 = vmatpush1.bf16.msra.mxu1 %v10871_v13  ;;  %v10972_v13 = vld [vmem:[%s15547_s1 + $0xacc] ss:$16 sps:$4 sm:$0xff]  }
 0x180   :  { %3124 = vmatprep.subr.bf16.mxu1 %v10876_v20 }
 0x182   :  { %3104 = vmatmul.mubr.bf16.vlgmr.msra.gmra.mrb[8].mxu1 %v12494_v1  ;;  %v10885_v1 = vld [vmem:[%s15547_s1 + $0x86c] ss:$16 sps:$4 sm:$0xff]  }
 0x183   :  { %3125 = vmatpush1.bf16.msra.mxu1 %v10874_v41  ;;  %3113 = vmatprep.mubr.bf16.mxu1 %v12588_v46  ;;  %v10883_v46 = vld [vmem:[%s15547_s1 + $0x868] ss:$16 sps:$4 sm:$0xff]  }
 0x184   :  { %3126 = vmatprep.subr.bf16.mxu1 %v10879_v42 }
 0x187   :  { %3127 = vmatpush1.bf16.msra.mxu1 %v10877_v43  ;;  %v10970_v43 = vld [vmem:[%s15547_s1 + $0xac8] ss:$16 sps:$4 sm:$0xff]  }
 0x188   :  { %3128 = vmatprep.subr.bf16.mxu1 %v10882_v44 }
 0x18a   :  { %3114 = vmatmul.mubr.bf16.gmra.mrb[12].mxu1 %v12602_v53  ;;  %v10891_v53 = vld [vmem:[%s15547_s1 + $0x8ac] ss:$16 sps:$4 sm:$0xff]  }
 0x18b   :  { %3129 = vmatpush1.bf16.msra.mxu1 %v10880_v19  ;;  %3156 = vmatprep.mubr.bf16.mxu1 %v12610_v56  ;;  %v10889_v56 = vld [vmem:[%s15547_s1 + $0x8a8] ss:$16 sps:$4 sm:$0xff]  }
 0x18c   :  { %3130 = vmatprep.subr.bf16.mxu1 %v10885_v1 }
 0x18f   :  { %3131 = vmatpush1.bf16.msra.mxu1 %v10883_v46  ;;  %v10978_v46 = vld [vmem:[%s15547_s1 + $0xaec] ss:$16 sps:$4 sm:$0xff]  }
 0x190   :  { %3132 = vmatprep.subr.bf16.mxu1 %v10888_v49 }
 0x193   :  { %3133 = vmatpush1.bf16.msra.mxu1 %v10886_v25 }
 0x194   :  { %3134 = vmatprep.subr.bf16.mxu1 %v10891_v53 }
 0x197   :  { %3135 = vmatpush1.bf16.msra.mxu1 %v10889_v56 }
 0x198   :  { %3136 = vmatprep.subr.bf16.mxu1 %v10894_v0 }
 0x19b   :  { %3137 = vmatpush1.bf16.msra.mxu1 %v10892_v7 }
 0x19c   :  { %3138 = vmatprep.subr.bf16.mxu1 %v10897_v50 }
 0x19f   :  { %3139 = vmatpush1.bf16.msra.mxu1 %v10895_v51  ;;  %v10984_v51 = vld [vmem:[%s15547_s1 + $0xb0c] ss:$16 sps:$4 sm:$0xff]  }
 0x1a0   :  { %3140 = vmatprep.subr.bf16.mxu1 %v10900_v17 }
 0x1a3   :  { %3141 = vmatpush1.bf16.msra.mxu1 %v10898_v57 }
 0x1a4   :  { %3142 = vmatprep.subr.bf16.mxu1 %v10903_v55 }
 0x1a7   :  { %3143 = vmatpush1.bf16.msra.mxu1 %v10901_v2 }
 0x1a8   :  { %3144 = vmatprep.subr.bf16.mxu1 %v10906_v3 }
 0x1ab   :  { %3145 = vmatpush1.bf16.msra.mxu1 %v10904_v62 }
 0x1ac   :  { %3146 = vmatprep.subr.bf16.mxu1 %v10909_v63  ;;  %v10990_v63 = vld [vmem:[%s15547_s1 + $0xb2c] ss:$16 sps:$4 sm:$0xff]  }
 0x1af   :  { %3147 = vmatpush1.bf16.msra.mxu1 %v10907_v10 }
 0x1b0   :  { %3148 = vmatprep.subr.bf16.mxu1 %v10912_v45 }
 0x1b3   :  { %3149 = vmatpush1.bf16.msra.mxu1 %v10910_v12 }
 0x1b4   :  { %3150 = vmatprep.subr.bf16.mxu1 %v10918_v16 }
 0x1b7   :  { %3151 = vmatpush1.bf16.msra.mxu1 %v10916_v22 }
 0x1b8   :  { %3152 = vmatprep.subr.bf16.mxu1 %v10924_v23 }
 0x1bb   :  { %3153 = vmatpush1.bf16.msra.mxu1 %v10922_v24 }
 0x1bc   :  { %3154 = vmatprep.subr.bf16.mxu1 %v10930_v26 }
 0x1bf   :  { %3155 = vmatpush1.bf16.msra.mxu1 %v10928_v27 }
 0x1c0   :  { %3177 = vmatprep.subr.bf16.mxu1 %v10936_v14 }
 0x1c2   :  { %3157 = vmatmul.mubr.bf16.vlgmr.msra.gmra.mrb[8].mxu1 %v12760_v4  ;;  %v13416_v4 = vshrl.u32 %v654_v6, 7 }
 0x1c3   :  { %3178 = vmatpush1.bf16.msra.mxu1 %v10934_v28  ;;  %3166 = vmatprep.mubr.bf16.mxu1 %v12776_v11  ;;  %v10960_v11 = vld [vmem:[%s15547_s1 + $0xa8c] ss:$16 sps:$4 sm:$0xff]  }
 0x1c4   :  { %3179 = vmatprep.subr.bf16.mxu1 %v10942_v29  ;;  %v13430_v38 = vsub.s32 0, %v13416_v4  ;;  %v13433_v9 = vsub.s32 1, %v13416_v4  ;;  %v10996_v29 = vld [vmem:[%s15547_s1 + $0xb4c] ss:$16 sps:$4 sm:$0xff]  }
 0x1c6   :  { %v657_v15 = vrot.slane %v652_v37, %v13430_v38 }
 0x1c7   :  { %3180 = vmatpush1.bf16.msra.mxu1 %v10940_v30 }
 0x1c8   :  { %3181 = vmatprep.subr.bf16.mxu1 %v10948_v31  ;;  %v10231_v20 = vadd.f32 %v13177_v54, %v657_v15  ;;  %v10235_v44 = vadd.f32 %v13187_v59, %v657_v15  ;;  %v10976_v59 = vld [vmem:[%s15547_s1 + $0xae8] ss:$16 sps:$4 sm:$0xff]   ;;  %v10239_v17 = vadd.f32 %v13206_v8, %v657_v15  ;;  %v10243_v2 = vadd.f32 %v13222_v18, %v657_v15 }
 0x1c9   :  { %v10988_v18 = vld [vmem:[%s15547_s1 + $0xb28] ss:$16 sps:$4 sm:$0xff]  }
 0x1ca   :  { %3167 = vmatmul.mubr.bf16.gmra.mrb[12].mxu1 %v12806_v32  ;;  %v10966_v32 = vld [vmem:[%s15547_s1 + $0xaac] ss:$16 sps:$4 sm:$0xff]  }
 0x1cb   :  { %3182 = vmatpush1.bf16.msra.mxu1 %v10946_v33  ;;  %3209 = vmatprep.mubr.bf16.mxu1 %v12814_v34  ;;  %v661_v34 = vrot.slane %v652_v37, %v13433_v9 }
 0x1cc   :  { %3183 = vmatprep.subr.bf16.mxu1 %v10954_v35 }
 0x1cd   :  { %v10233_v41 = vadd.f32 %v13185_v58, %v661_v34  ;;  %v10237_v49 = vadd.f32 %v13189_v60, %v661_v34  ;;  %v10241_v57 = vadd.f32 %v13214_v47, %v661_v34  ;;  %v10245_v8 = vadd.f32 %v13224_v21, %v661_v34  ;;  %v10994_v34 = vld [vmem:[%s15547_s1 + $0xb48] ss:$16 sps:$4 sm:$0xff]  }
 0x1cf   :  { %3184 = vmatpush1.bf16.msra.mxu1 %v10952_v36 }
 0x1d0   :  { %3185 = vmatprep.subr.bf16.mxu1 %v10960_v11 }
 0x1d3   :  { %3186 = vmatpush1.bf16.msra.mxu1 %v10958_v39 }
 0x1d4   :  { %3187 = vmatprep.subr.bf16.mxu1 %v10966_v32 }
 0x1d6   :  { %v2893_v42 = vpop.f32.mrb[0].mxu0 }
 0x1d7   :  { %v10232_v19 = vadd.f32 %v10231_v20, %v2893_v42  ;;  %v2895_v1 = vpop.f32.mrb[1].mxu0  ;;  %3188 = vmatpush1.bf16.msra.mxu1 %v10964_v52  ;;  %v11002_v52 = vld [vmem:[%s15547_s1 + $0xb6c] ss:$16 sps:$4 sm:$0xff]   ;;  %v11000_v42 = vld [vmem:[%s15547_s1 + $0xb68] ss:$16 sps:$4 sm:$0xff]  }
 0x1d8   :  { %v10234_v25 = vadd.f32 %v10233_v41, %v2895_v1  ;;  %v2897_v54 = vpop.f32.mrb[2].mxu0  ;;  %3189 = vmatprep.subr.bf16.mxu1 %v10972_v13  ;;  %v11008_v1 = vld [vmem:[%s15547_s1 + $0xb8c] ss:$16 sps:$4 sm:$0xff]  }
 0x1d9   :  { %v3230_v53 = vmax.f32 %v10232_v19, 0.0  ;;  %v10236_v58 = vadd.f32 %v10235_v44, %v2897_v54  ;;  %v2899_v56 = vpop.f32.mrb[3].mxu0 }
 0x1da   :  { %v3231_v0 = vmax.f32 %v10234_v25, 0.0  ;;  %v10238_v7 = vadd.f32 %v10237_v49, %v2899_v56 }
 0x1db   :  { %3246 = vst [vmem:[#allocation3] sm:$0xff] %v3230_v53  ;;  %v3234_v50 = vmax.f32 %v10236_v58, 0.0  ;;  %3190 = vmatpush1.bf16.msra.mxu1 %v10970_v43 }
 0x1dc   :  { %3247 = vst [vmem:[#allocation3 + $0x8] sm:$0xff] %v3231_v0  ;;  %v3235_v60 = vmax.f32 %v10238_v7, 0.0  ;;  %3191 = vmatprep.subr.bf16.mxu1 %v10978_v46 }
 0x1dd   :  { %3250 = vst [vmem:[#allocation3 + $0x20] sm:$0xff] %v3234_v50 }
 0x1de   :  { %3251 = vst [vmem:[#allocation3 + $0x28] sm:$0xff] %v3235_v60  ;;  %v2903_v55 = vpop.f32.mrb[4].mxu0 }
 0x1df   :  { %v10240_v3 = vadd.f32 %v10239_v17, %v2903_v55  ;;  %v2905_v62 = vpop.f32.mrb[5].mxu0  ;;  %3192 = vmatpush1.bf16.msra.mxu1 %v10976_v59 }
 0x1e0   :  { %v10242_v10 = vadd.f32 %v10241_v57, %v2905_v62  ;;  %v2907_v45 = vpop.f32.mrb[6].mxu0  ;;  %3193 = vmatprep.subr.bf16.mxu1 %v10984_v51  ;;  %v11006_v51 = vld [vmem:[%s15547_s1 + $0xb88] ss:$16 sps:$4 sm:$0xff]   ;;  %v11011_v62 = vld [vmem:[%s15547_s1 + $0xbac] ss:$16 sps:$4 sm:$0xff]  }
 0x1e1   :  { %v3238_v47 = vmax.f32 %v10240_v3, 0.0  ;;  %v10244_v12 = vadd.f32 %v10243_v2, %v2907_v45  ;;  %v2909_v16 = vpop.f32.mrb[7].mxu0 }
 0x1e2   :  { %v3262_v22 = vld [vmem:[#allocation3] sm:$0x3f]  ;;  %v3239_v24 = vmax.f32 %v10242_v10, 0.0  ;;  %v10246_v26 = vadd.f32 %v10245_v8, %v2909_v16  ;;  %v11039_v8 = vld [vmem:[%s15549_s3 + $0x19c] ss:$12 sps:$4 sm:$0xff]  }
 0x1e3   :  { %v3278_v23 = vld [vmem:[#allocation3] sm:$0x7e]  ;;  %3266 = vst [vmem:[#allocation4] sm:$0x3f] %v3262_v22  ;;  %v3263_v14 = vld [vmem:[#allocation3 + $0x8] sm:$0x3f]  ;;  %3194 = vmatpush1.bf16.msra.mxu1 %v10982_v61 }
 0x1e4   :  { %v3286_v27 = vrot.slane %v3278_v23, 1  ;;  %v3279_v28 = vld [vmem:[#allocation3 + $0x8] sm:$0x7e]  ;;  %3254 = vst [vmem:[#allocation3 + $0x40] sm:$0xff] %v3238_v47  ;;  %v3242_v21 = vmax.f32 %v10244_v12, 0.0  ;;  %3255 = vst [vmem:[#allocation3 + $0x48] sm:$0xff] %v3239_v24  ;;  %3195 = vmatprep.subr.bf16.mxu1 %v10990_v63 }
 0x1e5   :  { %3267 = vst [vmem:[#allocation4 + $0x8] sm:$0x3f] %v3263_v14  ;;  %v3287_v30 = vrot.slane %v3279_v28, 1  ;;  %v3318_v31 = vld [vmem:[#allocation3 + $0x20] sm:$0x3f]  ;;  %v3243_v35 = vmax.f32 %v10246_v26, 0.0 }
 0x1e6   :  { %v3387_v33 = vld [vmem:[#allocation3 + $0x20] sm:$0x7e]  ;;  %3294 = vst [vmem:[#allocation4 + $0x40] sm:$0x3f] %v3286_v27  ;;  %v3326_v36 = vrot.slane %v3318_v31, 2 }
 0x1e7   :  { %v3395_v11 = vrot.slane %v3387_v33, 3  ;;  %v3319_v37 = vld [vmem:[#allocation3 + $0x28] sm:$0x3f]  ;;  %3258 = vst [vmem:[#allocation3 + $0x60] sm:$0x3f] %v3242_v21  ;;  %3196 = vmatpush1.bf16.msra.mxu1 %v10988_v18 }
 0x1e8   :  { %v3388_v39 = vld [vmem:[#allocation3 + $0x28] sm:$0x7e]  ;;  %3295 = vst [vmem:[#allocation4 + $0x48] sm:$0x3f] %v3287_v30  ;;  %v3327_v32 = vrot.slane %v3319_v37, 2  ;;  %3197 = vmatprep.subr.bf16.mxu1 %v10996_v29 }
 0x1e9   :  { %v3396_v15 = vrot.slane %v3388_v39, 3  ;;  %3259 = vst [vmem:[#allocation3 + $0x68] sm:$0x3f] %v3243_v35  ;;  %3334 = vst [vmem:[#allocation4 + $0x80] ss:$-124 sps:$4 sm:$0xcf] %v3326_v36  }
 0x1ea   :  { %3403 = vst [vmem:[#allocation4 + $0xc0] ss:$-124 sps:$4 sm:$0xcf] %v3395_v11   ;;  %3335 = vst [vmem:[#allocation4 + $0x88] ss:$-124 sps:$4 sm:$0xcf] %v3327_v32  }
 0x1eb   :  { %3404 = vst [vmem:[#allocation4 + $0xc8] ss:$-124 sps:$4 sm:$0xcf] %v3396_v15   ;;  %v3270_v13 = vld [vmem:[#allocation3 + $0x40] sm:$0x3f]  ;;  %3198 = vmatpush1.bf16.msra.mxu1 %v10994_v34 }
 0x1ec   :  { %v3298_v20 = vld [vmem:[#allocation3 + $0x40] sm:$0x7e]  ;;  %v3342_v41 = vld [vmem:[#allocation3 + $0x40] sm:$0x80]  ;;  %3274 = vst [vmem:[#allocation4 + $0x20] sm:$0x3f] %v3270_v13  ;;  %3199 = vmatprep.subr.bf16.mxu1 %v11002_v52 }
 0x1ed   :  { %v3306_v43 = vrot.slane %v3298_v20, 1  ;;  %v3271_v44 = vld [vmem:[#allocation3 + $0x48] sm:$0x3f]  ;;  %v3343_v49 = vld [vmem:[#allocation3 + $0x48] sm:$0x80]  ;;  %v3359_v54 = vrot.slane %v3342_v41, 1 }
 0x1ee   :  { %v3299_v19 = vld [vmem:[#allocation3 + $0x48] sm:$0x7e]  ;;  %3275 = vst [vmem:[#allocation4 + $0x28] sm:$0x3f] %v3271_v44  ;;  %v3346_v25 = vld [vmem:[#allocation3 + $0x60] sm:$0x1f] }
 0x1ef   :  { %v3307_v46 = vrot.slane %v3299_v19, 1  ;;  %3314 = vst [vmem:[#allocation4 + $0x60] sm:$0x3f] %v3306_v43  ;;  %v3360_v53 = vrot.slane %v3346_v25, 1  ;;  %v3411_v58 = vld [vmem:[#allocation3 + $0x60] sm:$0x3f]  ;;  %3200 = vmatpush1.bf16.msra.mxu1 %v11000_v42 }
 0x1f0   :  { %v3347_v56 = vld [vmem:[#allocation3 + $0x68] sm:$0x1f]  ;;  %v3362_v0 = vrot.slane %v3343_v49, 1  ;;  %v3419_v7 = vrot.slane %v3411_v58, 2  ;;  %v3435_v60 = vld [vmem:[#allocation4] sm:$0xff]  ;;  %3201 = vmatprep.subr.bf16.mxu1 %v11008_v1 }
 0x1f1   :  { %3315 = vst [vmem:[#allocation4 + $0x68] sm:$0x3f] %v3307_v46  ;;  %v3363_v59 = vrot.slane %v3347_v56, 1  ;;  %v3412_v50 = vld [vmem:[#allocation3 + $0x68] sm:$0x3f]  ;;  %v3361_v17 = vsel %vm3358_vm0, %v3359_v54, %v3360_v53 }
 0x1f2   :  { %3383 = vst [vmem:[#allocation4 + $0xa0] sm:$0xf] %v3360_v53  ;;  %v3420_v57 = vrot.slane %v3412_v50, 2  ;;  %v3436_v55 = vld [vmem:[#allocation4 + $0x8] sm:$0xff]  ;;  %v3451_v2 = vld [vmem:[#allocation4 + $0x80] sm:$0xf] }
 0x1f3   :  { %v3452_v61 = vld [vmem:[#allocation4 + $0x88] sm:$0xf]  ;;  %3379 = vst [vmem:[#allocation4 + $0x20] sm:$0xc0] %v3361_v17  ;;  %3384 = vst [vmem:[#allocation4 + $0xa8] sm:$0xf] %v3363_v59  ;;  %v3364_v10 = vsel %vm3358_vm0, %v3362_v0, %v3363_v59  ;;  %v13509_v45 = vpack.c.bf16 %v3451_v2, %v3435_v60  ;;  %3202 = vmatpush1.bf16.msra.mxu1 %v11006_v51 }
 0x1f4   :  { %3427 = vst [vmem:[#allocation4 + $0xe0] ss:$-124 sps:$4 sm:$0xcf] %v3419_v7   ;;  %v13497_v3 = vpack.c.bf16 %v3452_v61, %v3436_v55  ;;  %v11034_v63 = vld [vmem:[%s15549_s3 + $0x180] ss:$12 sps:$4 sm:$0xff]   ;;  %3203 = vmatprep.subr.bf16.mxu1 %v11011_v62 }
 0x1f5   :  { %3428 = vst [vmem:[#allocation4 + $0xe8] ss:$-124 sps:$4 sm:$0xcf] %v3420_v57   ;;  %3380 = vst [vmem:[#allocation4 + $0x28] sm:$0xc0] %v3364_v10 }
 0x1f6   :  { %6092 = vmatprep.mubr.bf16.mxu0 %v13497_v3  ;;  %v11009_v47 = vld [vmem:[%s15547_s1 + $0xba8] ss:$16 sps:$4 sm:$0xff]   ;;  %v11014_v16 = vld [vmem:[%s15547_s1 + $0xbcc] ss:$16 sps:$4 sm:$0xff]   ;;  %v11042_v22 = vld [vmem:[%s15549_s3 + $0x1b4] ss:$12 sps:$4 sm:$0xff]  }
 0x1f7   :  { %v11037_v12 = vld [vmem:[%s15549_s3 + $0x198] ss:$12 sps:$4 sm:$0xff]   ;;  %6093 = vmatmul.mubr.bf16.vlgmr.msra.gmra.mrb[8].mxu0 %v13509_v45  ;;  %3204 = vmatpush1.bf16.msra.mxu1 %v11009_v47  ;;  %v11017_v24 = vld [vmem:[%s15547_s1 + $0xbec] ss:$16 sps:$4 sm:$0xff]   ;;  %v11043_v14 = vld [vmem:[%s15549_s3 + $0x1c8] ss:$12 sps:$4 sm:$0xff]  }
 0x1f8   :  { %6104 = vmatpush1.bf16.msra.mxu0 %v11034_v63  ;;  %v11012_v23 = vld [vmem:[%s15547_s1 + $0xbc8] ss:$16 sps:$4 sm:$0xff]   ;;  %v11040_v26 = vld [vmem:[%s15549_s3 + $0x1b0] ss:$12 sps:$4 sm:$0xff]   ;;  %3205 = vmatprep.subr.bf16.mxu1 %v11014_v16  ;;  %v11020_v30 = vld [vmem:[%s15549_s3 + $0xe0] ss:$12 sps:$4 sm:$0xff]  }
 0x1f9   :  { %6105 = vmatprep.subr.bf16.mxu0 %v11039_v8  ;;  %v11045_v18 = vld [vmem:[%s15549_s3 + $0x1cc] ss:$12 sps:$4 sm:$0xff]   ;;  %v11018_v28 = vld [vmem:[%s15549_s3 + $0xc8] ss:$12 sps:$4 sm:$0xff]   ;;  %v11048_v21 = vld [vmem:[%s15549_s3 + $0x1e4] ss:$12 sps:$4 sm:$0xff]  }
 0x1fa   :  { %v11015_v27 = vld [vmem:[%s15547_s1 + $0xbe8] ss:$16 sps:$4 sm:$0xff]   ;;  %v11046_v31 = vld [vmem:[%s15549_s3 + $0x1e0] ss:$12 sps:$4 sm:$0xff]   ;;  %v11024_v39 = vld [vmem:[%s15549_s3 + $0x110] ss:$12 sps:$4 sm:$0xff]  }
 0x1fb   :  { %3206 = vmatpush1.bf16.msra.mxu1 %v11012_v23  ;;  %v11019_v29 = vld [vmem:[%s15549_s3 + $0x8] ss:$12 sps:$4 sm:$0xff]   ;;  %v11021_v35 = vld [vmem:[%s15549_s3 + $0x20] ss:$12 sps:$4 sm:$0xff]   ;;  %v11022_v36 = vld [vmem:[%s15549_s3 + $0xf8] ss:$12 sps:$4 sm:$0xff]  }
 0x1fc   :  { %6106 = vmatpush1.bf16.msra.mxu0 %v11037_v12  ;;  %3207 = vmatprep.subr.bf16.mxu1 %v11017_v24  ;;  %v11051_v33 = vld [vmem:[%s15549_s3 + $0x1fc] ss:$12 sps:$4 sm:$0xff]   ;;  %v11049_v11 = vld [vmem:[%s15549_s3 + $0x1f8] ss:$12 sps:$4 sm:$0xff]   ;;  %v11054_v37 = vld [vmem:[%s15549_s3 + $0x214] ss:$12 sps:$4 sm:$0xff]  }
 0x1fd   :  { %6107 = vmatprep.subr.bf16.mxu0 %v11042_v22  ;;  %v11052_v32 = vld [vmem:[%s15549_s3 + $0x210] ss:$12 sps:$4 sm:$0xff]   ;;  %v11026_v34 = vld [vmem:[%s15549_s3 + $0x128] ss:$12 sps:$4 sm:$0xff]   ;;  %v11028_v20 = vld [vmem:[%s15549_s3 + $0x140] ss:$12 sps:$4 sm:$0xff]  }
 0x1fe   :  { %v11025_v15 = vld [vmem:[%s15549_s3 + $0x50] ss:$12 sps:$4 sm:$0xff]   ;;  %v11055_v52 = vld [vmem:[%s15549_s3 + $0x228] ss:$12 sps:$4 sm:$0xff]   ;;  %v11058_v41 = vld [vmem:[%s15549_s3 + $0x240] ss:$12 sps:$4 sm:$0xff]  }
 0x1ff   :  { %3208 = vmatpush1.bf16.msra.mxu1 %v11015_v27  ;;  %v11060_v13 = vld [vmem:[%s15549_s3 + $0x244] ss:$12 sps:$4 sm:$0xff]   ;;  %v11029_v42 = vld [vmem:[%s15549_s3 + $0x80] ss:$12 sps:$4 sm:$0xff]   ;;  %v11061_v46 = vld [vmem:[%s15549_s3 + $0x248] ss:$12 sps:$4 sm:$0xff]  }
 0x200   :  { %6108 = vmatpush1.bf16.msra.mxu0 %v11040_v26  ;;  %10055 = vmatprep.subr.bf16.mxu1 %v11018_v28  ;;  %v11030_v43 = vld [vmem:[%s15549_s3 + $0x158] ss:$12 sps:$4 sm:$0xff]   ;;  %v11032_v19 = vld [vmem:[%s15549_s3 + $0x170] ss:$12 sps:$4 sm:$0xff]   ;;  %v11062_v49 = vld [vmem:[%s15549_s3 + $0x188] ss:$12 sps:$4 sm:$0xff]  }
 0x201   :  { %6109 = vmatprep.subr.bf16.mxu0 %v11045_v18  ;;  %v11031_v44 = vld [vmem:[%s15549_s3 + $0x98] ss:$12 sps:$4 sm:$0xff]   ;;  %v11033_v1 = vld [vmem:[%s15549_s3 + $0xb0] ss:$12 sps:$4 sm:$0xff]  }
 0x202   :  { %3210 = vmatmul.mubr.bf16.vlgmr.msra.gmra.mrb[8].mxu1 %v12762_v5  ;;  %v11023_v5 = vld [vmem:[%s15549_s3 + $0x38] ss:$12 sps:$4 sm:$0xff]  }
 0x203   :  { %10056 = vmatpush3.bf16.msra.mxu1 %v11019_v29  ;;  %3219 = vmatprep.mubr.bf16.mxu1 %v12979_v40  ;;  %v11057_v40 = vld [vmem:[%s15549_s3 + $0x22c] ss:$12 sps:$4 sm:$0xff]  }
 0x204   :  { %6110 = vmatpush1.bf16.msra.mxu0 %v11043_v14  ;;  %10057 = vmatprep.subr.bf16.mxu1 %v11020_v30 }
 0x205   :  { %6111 = vmatprep.subr.bf16.mxu0 %v11048_v21 }
 0x207   :  { %10058 = vmatpush3.bf16.msra.mxu1 %v11021_v35 }
 0x208   :  { %6112 = vmatpush1.bf16.msra.mxu0 %v11046_v31  ;;  %10059 = vmatprep.subr.bf16.mxu1 %v11022_v36 }
 0x209   :  { %6113 = vmatprep.subr.bf16.mxu0 %v11051_v33 }
 0x20a   :  { %3220 = vmatmul.mubr.bf16.gmra.mrb[12].mxu1 %v12991_v48  ;;  %v11027_v48 = vld [vmem:[%s15549_s3 + $0x68] ss:$12 sps:$4 sm:$0xff]  }
 0x20b   :  { %10060 = vmatpush3.bf16.msra.mxu1 %v11023_v5  ;;  %6436 = vmatprep.mubr.bf16.mxu1 %v13497_v3 }
 0x20c   :  { %6114 = vmatpush1.bf16.msra.mxu0 %v11049_v11  ;;  %10061 = vmatprep.subr.bf16.mxu1 %v11024_v39 }
 0x20d   :  { %6115 = vmatprep.subr.bf16.mxu0 %v11054_v37 }
 0x20f   :  { %10062 = vmatpush3.bf16.msra.mxu1 %v11025_v15 }
 0x210   :  { %6116 = vmatpush1.bf16.msra.mxu0 %v11052_v32  ;;  %10063 = vmatprep.subr.bf16.mxu1 %v11026_v34 }
 0x211   :  { %6117 = vmatprep.subr.bf16.mxu0 %v11057_v40 }
 0x213   :  { %10064 = vmatpush3.bf16.msra.mxu1 %v11027_v48 }
 0x214   :  { %6118 = vmatpush1.bf16.msra.mxu0 %v11055_v52  ;;  %10065 = vmatprep.subr.bf16.mxu1 %v11028_v20 }
 0x215   :  { %6119 = vmatprep.subr.bf16.mxu0 %v11060_v13 }
 0x217   :  { %10066 = vmatpush3.bf16.msra.mxu1 %v11029_v42 }
 0x218   :  { %6120 = vmatpush1.bf16.msra.mxu0 %v11058_v41  ;;  %10067 = vmatprep.subr.bf16.mxu1 %v11030_v43 }
 0x21b   :  { %10068 = vmatpush3.bf16.msra.mxu1 %v11031_v44 }
 0x21c   :  { %10069 = vmatprep.subr.bf16.mxu1 %v11032_v19 }
 0x21f   :  { %10070 = vmatpush3.bf16.msra.mxu1 %v11033_v1 }
 0x220   :  { %10077 = vmatprep.subr.bf16.mxu1 %v11061_v46 }
 0x222   :  { %6437 = vmatmul.mubr.bf16.vlgmr.msra.gmra.mrb[16].mxu1 %v13509_v45 }
 0x223   :  { %10078 = vmatpush3.bf16.msra.mxu1 %v11062_v49 }
 0x224   :  { %14 = vsyncpa [#allocation10], 0  ;;  %v11065_v25 = vld [vmem:[%s15549_s3 + $0x25c] ss:$12 sps:$4 sm:$0xff]   ;;  %v11066_v54 = vld [vmem:[%s15549_s3 + $0x260] ss:$12 sps:$4 sm:$0xff]  }
 0x225   :  { %v11063_v53 = vld [vmem:[%s15549_s3 + $0x258] ss:$12 sps:$4 sm:$0xff]   ;;  %v11067_v58 = vld [vmem:[%s15549_s3 + $0x1a0] ss:$12 sps:$4 sm:$0xff]   ;;  %6121 = vmatprep.subr.bf16.mxu0 %v11065_v25  ;;  %10079 = vmatprep.subr.bf16.mxu1 %v11066_v54  ;;  %v11068_v7 = vld [vmem:[%s15549_s3 + $0x270] ss:$12 sps:$4 sm:$0xff]  }
 0x226   :  { %6122 = vmatpush1.bf16.msra.mxu0 %v11063_v53  ;;  %v11070_v56 = vld [vmem:[%s15549_s3 + $0x274] ss:$12 sps:$4 sm:$0xff]   ;;  %v11071_v0 = vld [vmem:[%s15549_s3 + $0x278] ss:$12 sps:$4 sm:$0xff]   ;;  %v11076_v51 = vld [vmem:[%s15549_s3 + $0x290] ss:$12 sps:$4 sm:$0xff]  }
 0x227   :  { %10080 = vmatpush3.bf16.msra.mxu1 %v11067_v58  ;;  %v11072_v59 = vld [vmem:[%s15549_s3 + $0x1b8] ss:$12 sps:$4 sm:$0xff]   ;;  %6123 = vmatprep.subr.bf16.mxu0 %v11070_v56  ;;  %v11073_v60 = vld [vmem:[%s15549_s3 + $0x288] ss:$12 sps:$4 sm:$0xff]   ;;  %v11077_v17 = vld [vmem:[%s15549_s3 + $0x1d0] ss:$12 sps:$4 sm:$0xff]  }
 0x228   :  { %10081 = vmatprep.subr.bf16.mxu1 %v11071_v0  ;;  %v11075_v50 = vld [vmem:[%s15549_s3 + $0x28c] ss:$12 sps:$4 sm:$0xff]   ;;  %v11080_v57 = vld [vmem:[%s15549_s3 + $0x2a4] ss:$12 sps:$4 sm:$0xff]   ;;  %v11081_v55 = vld [vmem:[%s15549_s3 + $0x2a8] ss:$12 sps:$4 sm:$0xff]  }
 0x229   :  { %v11078_v61 = vld [vmem:[%s15549_s3 + $0x2a0] ss:$12 sps:$4 sm:$0xff]   ;;  %v11082_v2 = vld [vmem:[%s15549_s3 + $0x1e8] ss:$12 sps:$4 sm:$0xff]   ;;  %v11083_v63 = vld [vmem:[%s15549_s3 + $0x2b8] ss:$12 sps:$4 sm:$0xff]  }
 0x22a   :  { %6124 = vmatpush1.bf16.msra.mxu0 %v11068_v7  ;;  %v11085_v3 = vld [vmem:[%s15549_s3 + $0x2bc] ss:$12 sps:$4 sm:$0xff]   ;;  %v11086_v62 = vld [vmem:[%s15549_s3 + $0x2c0] ss:$12 sps:$4 sm:$0xff]   ;;  %v11091_v45 = vld [vmem:[%s15549_s3 + $0x2d8] ss:$12 sps:$4 sm:$0xff]  }
 0x22b   :  { %10082 = vmatpush3.bf16.msra.mxu1 %v11072_v59  ;;  %6125 = vmatprep.subr.bf16.mxu0 %v11075_v50  ;;  %v11087_v8 = vld [vmem:[%s15549_s3 + $0x200] ss:$12 sps:$4 sm:$0xff]   ;;  %v11088_v47 = vld [vmem:[%s15549_s3 + $0x2d0] ss:$12 sps:$4 sm:$0xff]   ;;  %v11092_v12 = vld [vmem:[%s15549_s3 + $0x218] ss:$12 sps:$4 sm:$0xff]  }
 0x22c   :  { %10083 = vmatprep.subr.bf16.mxu1 %v11076_v51  ;;  %v11090_v10 = vld [vmem:[%s15549_s3 + $0x2d4] ss:$12 sps:$4 sm:$0xff]   ;;  %v11095_v16 = vld [vmem:[%s15549_s3 + $0x2ec] ss:$12 sps:$4 sm:$0xff]   ;;  %v11096_v22 = vld [vmem:[%s15549_s3 + $0x2f0] ss:$12 sps:$4 sm:$0xff]  }
 0x22d   :  { %v11093_v23 = vld [vmem:[%s15549_s3 + $0x2e8] ss:$12 sps:$4 sm:$0xff]   ;;  %v11097_v24 = vld [vmem:[%s15549_s3 + $0x230] ss:$12 sps:$4 sm:$0xff]   ;;  %v664_v27 = vsub.s32 2, %v13416_v4  ;;  %v668_v14 = vsub.s32 3, %v13416_v4 }
 0x22e   :  { %6126 = vmatpush1.bf16.msra.mxu0 %v11073_v60  ;;  %v11100_v26 = vld [vmem:[%s15549_s3 + $0x304] ss:$12 sps:$4 sm:$0xff]   ;;  %v11101_v18 = vld [vmem:[%s15549_s3 + $0x3c8] ss:$12 sps:$4 sm:$0xff]   ;;  %v11892_v28 = vld [vmem:[%s15548_s2] sm:$0xf] }
 0x22f   :  { %10084 = vmatpush3.bf16.msra.mxu1 %v11077_v17  ;;  %6127 = vmatprep.subr.bf16.mxu0 %v11080_v57  ;;  %v665_v21 = vrot.slane %v11892_v28, %v664_v27  ;;  %v669_v29 = vrot.slane %v11892_v28, %v668_v14  ;;  %v3456_v28 = vld [vmem:[#allocation4 + $0xa8] sm:$0xf]  ;;  %vm6792_vm1 = vcmask 1045504   ;;  %vm6820_vm2 = vcmask 1044480  }
 0x230   :  { %10085 = vmatprep.subr.bf16.mxu1 %v11081_v55  ;;  %vm15194_vm3 = vcmp.lt.s32.totalorder %v654_v6, 256 }
 0x232   :  { %6128 = vmatpush1.bf16.msra.mxu0 %v11078_v61 }
 0x233   :  { %10086 = vmatpush3.bf16.msra.mxu1 %v11082_v2  ;;  %6129 = vmatprep.subr.bf16.mxu0 %v11085_v3 }
 0x234   :  { %10087 = vmatprep.subr.bf16.mxu1 %v11086_v62 }
 0x236   :  { %6130 = vmatpush1.bf16.msra.mxu0 %v11083_v63 }
 0x237   :  { %10088 = vmatpush3.bf16.msra.mxu1 %v11087_v8  ;;  %6131 = vmatprep.subr.bf16.mxu0 %v11090_v10 }
 0x238   :  { %10089 = vmatprep.subr.bf16.mxu1 %v11091_v45 }
 0x23a   :  { %6132 = vmatpush1.bf16.msra.mxu0 %v11088_v47 }
 0x23b   :  { %10090 = vmatpush3.bf16.msra.mxu1 %v11092_v12  ;;  %6133 = vmatprep.subr.bf16.mxu0 %v11095_v16 }
 0x23c   :  { %10091 = vmatprep.subr.bf16.mxu1 %v11096_v22 }
 0x23e   :  { %6134 = vmatpush1.bf16.msra.mxu0 %v11093_v23 }
 0x23f   :  { %10092 = vmatpush3.bf16.msra.mxu1 %v11097_v24  ;;  %6146 = vmatprep.subr.bf16.mxu0 %v11100_v26 }
 0x240   :  { %10099 = vmatprep.subr.bf16.mxu1 %v11101_v18 }
 0x2d5   :  { %v3211_v30 = vpop.f32.mrb[8].mxu1 }
 0x2d6   :  { %v10247_v31 = vadd.f32 %v3211_v30, %v665_v21  ;;  %v3213_v33 = vpop.f32.mrb[9].mxu1 }
 0x2d7   :  { %v10248_v35 = vadd.f32 %v3213_v33, %v669_v29  ;;  %v3215_v36 = vpop.f32.mrb[10].mxu1 }
 0x2d8   :  { %v3232_v11 = vmax.f32 %v10247_v31, 0.0  ;;  %v10249_v37 = vadd.f32 %v3215_v36, %v665_v21  ;;  %v3217_v5 = vpop.f32.mrb[11].mxu1  ;;  %v11098_v36 = vld [vmem:[%s15549_s3 + $0x300] ss:$12 sps:$4 sm:$0xff]  }
 0x2d9   :  { %v3233_v39 = vmax.f32 %v10248_v35, 0.0  ;;  %v10250_v32 = vadd.f32 %v3217_v5, %v669_v29 }
 0x2da   :  { %3248 = vst [vmem:[#allocation3 + $0x10] sm:$0xff] %v3232_v11  ;;  %v3236_v40 = vmax.f32 %v10249_v37, 0.0  ;;  %v11102_v11 = vld [vmem:[%s15549_s3 + $0x308] ss:$12 sps:$4 sm:$0xff]  }
 0x2db   :  { %3249 = vst [vmem:[#allocation3 + $0x18] sm:$0xff] %v3233_v39  ;;  %v3237_v15 = vmax.f32 %v10250_v32, 0.0  ;;  %v3440_v37 = vld [vmem:[#allocation4 + $0x28] sm:$0xff] }
 0x2dc   :  { %3252 = vst [vmem:[#allocation3 + $0x30] sm:$0xff] %v3236_v40  ;;  %v11105_v32 = vld [vmem:[%s15549_s3 + $0x31c] ss:$12 sps:$4 sm:$0xff]   ;;  %v11106_v40 = vld [vmem:[%s15549_s3 + $0x3e0] ss:$12 sps:$4 sm:$0xff]  }
 0x2dd   :  { %3253 = vst [vmem:[#allocation3 + $0x38] sm:$0xff] %v3237_v15  ;;  %v3221_v34 = vpop.f32.mrb[12].mxu1  ;;  %v3472_v15 = vpack.c.bf16 %v3456_v28, %v3440_v37  ;;  %v11143_v28 = vld [vmem:[%s15549_s3 + $0x3d8] ss:$12 sps:$4 sm:$0xff]   ;;  %v11157_v37 = vld [vmem:[%s15549_s3 + $0x4d0] ss:$12 sps:$4 sm:$0xff]  }
 0x2de   :  { %v10251_v52 = vadd.f32 %v3221_v34, %v665_v21  ;;  %v3223_v13 = vpop.f32.mrb[13].mxu1  ;;  %v11103_v34 = vld [vmem:[%s15549_s3 + $0x318] ss:$12 sps:$4 sm:$0xff]  }
 0x2df   :  { %v10252_v48 = vadd.f32 %v3223_v13, %v669_v29  ;;  %v3225_v20 = vpop.f32.mrb[14].mxu1  ;;  %v11110_v13 = vld [vmem:[%s15549_s3 + $0x334] ss:$12 sps:$4 sm:$0xff]  }
 0x2e0   :  { %v3240_v41 = vmax.f32 %v10251_v52, 0.0  ;;  %v10253_v42 = vadd.f32 %v3225_v20, %v665_v21  ;;  %v3227_v43 = vpop.f32.mrb[15].mxu1  ;;  %v11107_v52 = vld [vmem:[%s15549_s3 + $0x320] ss:$12 sps:$4 sm:$0xff]  }
 0x2e1   :  { %v3264_v44 = vld [vmem:[#allocation3 + $0x10] sm:$0x3f]  ;;  %v3241_v1 = vmax.f32 %v10252_v48, 0.0  ;;  %v10254_v46 = vadd.f32 %v3227_v43, %v669_v29  ;;  %v11111_v48 = vld [vmem:[%s15549_s3 + $0x3f8] ss:$12 sps:$4 sm:$0xff]  }
 0x2e2   :  { %v3280_v19 = vld [vmem:[#allocation3 + $0x10] sm:$0x7e]  ;;  %3268 = vst [vmem:[#allocation4 + $0x10] sm:$0x3f] %v3264_v44  ;;  %v3265_v25 = vld [vmem:[#allocation3 + $0x18] sm:$0x3f] }
 0x2e3   :  { %v3288_v49 = vrot.slane %v3280_v19, 1  ;;  %v3281_v54 = vld [vmem:[#allocation3 + $0x18] sm:$0x7e]  ;;  %3256 = vst [vmem:[#allocation3 + $0x50] sm:$0xff] %v3240_v41  ;;  %v3244_v53 = vmax.f32 %v10253_v42, 0.0  ;;  %3257 = vst [vmem:[#allocation3 + $0x58] sm:$0xff] %v3241_v1 }
 0x2e4   :  { %3269 = vst [vmem:[#allocation4 + $0x18] sm:$0x3f] %v3265_v25  ;;  %v3289_v58 = vrot.slane %v3281_v54, 1  ;;  %v3320_v56 = vld [vmem:[#allocation3 + $0x30] sm:$0x3f]  ;;  %v3245_v7 = vmax.f32 %v10254_v46, 0.0 }
 0x2e5   :  { %v3389_v0 = vld [vmem:[#allocation3 + $0x30] sm:$0x7e]  ;;  %3296 = vst [vmem:[#allocation4 + $0x50] sm:$0x3f] %v3288_v49  ;;  %v3328_v59 = vrot.slane %v3320_v56, 2 }
 0x2e6   :  { %v3397_v50 = vrot.slane %v3389_v0, 3  ;;  %v3321_v51 = vld [vmem:[#allocation3 + $0x38] sm:$0x3f]  ;;  %3260 = vst [vmem:[#allocation3 + $0x70] sm:$0x3f] %v3244_v53 }
 0x2e7   :  { %v3390_v60 = vld [vmem:[#allocation3 + $0x38] sm:$0x7e]  ;;  %3297 = vst [vmem:[#allocation4 + $0x58] sm:$0x3f] %v3289_v58  ;;  %v3329_v17 = vrot.slane %v3321_v51, 2 }
 0x2e8   :  { %v3398_v57 = vrot.slane %v3390_v60, 3  ;;  %3261 = vst [vmem:[#allocation3 + $0x78] sm:$0x3f] %v3245_v7  ;;  %3336 = vst [vmem:[#allocation4 + $0x90] ss:$-124 sps:$4 sm:$0xcf] %v3328_v59  }
 0x2e9   :  { %3405 = vst [vmem:[#allocation4 + $0xd0] ss:$-124 sps:$4 sm:$0xcf] %v3397_v50   ;;  %3337 = vst [vmem:[#allocation4 + $0x98] ss:$-124 sps:$4 sm:$0xcf] %v3329_v17  }
 0x2ea   :  { %3406 = vst [vmem:[#allocation4 + $0xd8] ss:$-124 sps:$4 sm:$0xcf] %v3398_v57   ;;  %v3272_v55 = vld [vmem:[#allocation3 + $0x50] sm:$0x3f] }
 0x2eb   :  { %v3300_v61 = vld [vmem:[#allocation3 + $0x50] sm:$0x7e]  ;;  %v3344_v2 = vld [vmem:[#allocation3 + $0x50] sm:$0x80]  ;;  %3276 = vst [vmem:[#allocation4 + $0x30] sm:$0x3f] %v3272_v55 }
 0x2ec   :  { %v3308_v3 = vrot.slane %v3300_v61, 1  ;;  %v3273_v62 = vld [vmem:[#allocation3 + $0x58] sm:$0x3f]  ;;  %v3345_v10 = vld [vmem:[#allocation3 + $0x58] sm:$0x80]  ;;  %v3365_v47 = vrot.slane %v3344_v2, 1 }
 0x2ed   :  { %v3301_v63 = vld [vmem:[#allocation3 + $0x58] sm:$0x7e]  ;;  %3277 = vst [vmem:[#allocation4 + $0x38] sm:$0x3f] %v3273_v62  ;;  %v3348_v45 = vld [vmem:[#allocation3 + $0x70] sm:$0x1f] }
 0x2ee   :  { %v3309_v8 = vrot.slane %v3301_v63, 1  ;;  %3316 = vst [vmem:[#allocation4 + $0x70] sm:$0x3f] %v3308_v3  ;;  %v3366_v12 = vrot.slane %v3348_v45, 1  ;;  %v3413_v16 = vld [vmem:[#allocation3 + $0x70] sm:$0x3f] }
 0x2ef   :  { %v3349_v22 = vld [vmem:[#allocation3 + $0x78] sm:$0x1f]  ;;  %v3368_v23 = vrot.slane %v3345_v10, 1  ;;  %v3421_v24 = vrot.slane %v3413_v16, 2  ;;  %v3437_v14 = vld [vmem:[#allocation4 + $0x10] sm:$0xff]  ;;  %v3439_v45 = vld [vmem:[#allocation4 + $0x20] sm:$0xff] }
 0x2f0   :  { %3317 = vst [vmem:[#allocation4 + $0x78] sm:$0x3f] %v3309_v8  ;;  %v3369_v26 = vrot.slane %v3349_v22, 1  ;;  %v3414_v18 = vld [vmem:[#allocation3 + $0x78] sm:$0x3f]  ;;  %v3367_v21 = vsel %vm3358_vm0, %v3365_v47, %v3366_v12 }
 0x2f1   :  { %3385 = vst [vmem:[#allocation4 + $0xb0] sm:$0xf] %v3366_v12  ;;  %v3422_v29 = vrot.slane %v3414_v18, 2  ;;  %v3438_v30 = vld [vmem:[#allocation4 + $0x18] sm:$0xff]  ;;  %v3453_v33 = vld [vmem:[#allocation4 + $0x90] sm:$0xf] }
 0x2f2   :  { %v3454_v31 = vld [vmem:[#allocation4 + $0x98] sm:$0xf]  ;;  %3381 = vst [vmem:[#allocation4 + $0x30] sm:$0xc0] %v3367_v21  ;;  %3386 = vst [vmem:[#allocation4 + $0xb8] sm:$0xf] %v3369_v26  ;;  %v3370_v5 = vsel %vm3358_vm0, %v3368_v23, %v3369_v26  ;;  %v3469_v39 = vpack.c.bf16 %v3453_v33, %v3437_v14 }
 0x2f3   :  { %3429 = vst [vmem:[#allocation4 + $0xf0] ss:$-124 sps:$4 sm:$0xcf] %v3421_v24   ;;  %v3470_v35 = vpack.c.bf16 %v3454_v31, %v3438_v30  ;;  %3430 = vst [vmem:[#allocation4 + $0xf8] ss:$-124 sps:$4 sm:$0xcf] %v3422_v29  }
 0x2f4   :  { %3382 = vst [vmem:[#allocation4 + $0x38] sm:$0xc0] %v3370_v5  ;;  %v11108_v44 = vld [vmem:[%s15549_s3 + $0x330] ss:$12 sps:$4 sm:$0xff]   ;;  %v11112_v19 = vld [vmem:[%s15549_s3 + $0x338] ss:$12 sps:$4 sm:$0xff]  }
 0x2f5   :  { %6135 = vmatprep.mubr.bf16.mxu0 %v3470_v35  ;;  %6477 = vmatprep.mubr.bf16.mxu1 %v3470_v35  ;;  %v10071_v20 = vpop.f32.mrb[16].mxu1  ;;  %v11115_v46 = vld [vmem:[%s15549_s3 + $0x34c] ss:$12 sps:$4 sm:$0xff]   ;;  %v11116_v49 = vld [vmem:[%s15549_s3 + $0x410] ss:$12 sps:$4 sm:$0xff]  }
 0x2f6   :  { %6136 = vmatmul.mubr.bf16.vlgmr.msra.gmra.mrb[8].mxu0 %v3469_v39  ;;  %6478 = vmatmul.mubr.bf16.vlgmr.msra.gmra.mrb[20].mxu1 %v3469_v39  ;;  %v10072_v41 = vpop.f32.mrb[17].mxu1  ;;  %v11113_v54 = vld [vmem:[%s15549_s3 + $0x348] ss:$12 sps:$4 sm:$0xff]   ;;  %v11117_v53 = vld [vmem:[%s15549_s3 + $0x350] ss:$12 sps:$4 sm:$0xff]  }
 0x2f7   :  { %6147 = vmatpush1.bf16.msra.mxu0 %v11098_v36  ;;  %10100 = vmatpush3.bf16.msra.mxu1 %v11102_v11  ;;  %v13755_v42 = vadd.f32 %v10072_v41, %v10071_v20  ;;  %v10074_v43 = vpop.f32.mrb[18].mxu1  ;;  %v11120_v58 = vld [vmem:[%s15549_s3 + $0x364] ss:$12 sps:$4 sm:$0xff]   ;;  %v11121_v56 = vld [vmem:[%s15549_s3 + $0x428] ss:$12 sps:$4 sm:$0xff]  }
 0x2f8   :  { %6178 = vmatprep.mubr.bf16.mxu0 %v3472_v15  ;;  %6518 = vmatprep.mubr.bf16.mxu1 %v3472_v15  ;;  %v10075_v1 = vpop.f32.mrb[19].mxu1  ;;  %v11118_v0 = vld [vmem:[%s15549_s3 + $0x360] ss:$12 sps:$4 sm:$0xff]   ;;  %v11122_v7 = vld [vmem:[%s15549_s3 + $0x368] ss:$12 sps:$4 sm:$0xff]  }
 0x2f9   :  { %6148 = vmatprep.subr.bf16.mxu0 %v11105_v32  ;;  %10101 = vmatprep.subr.bf16.mxu1 %v11106_v40  ;;  %v13769_v25 = vadd.f32 %v10075_v1, %v10074_v43  ;;  %v11125_v59 = vld [vmem:[%s15549_s3 + $0x37c] ss:$12 sps:$4 sm:$0xff]   ;;  %v11126_v50 = vld [vmem:[%s15549_s3 + $0x440] ss:$12 sps:$4 sm:$0xff]   ;;  %v11123_v51 = vld [vmem:[%s15549_s3 + $0x378] ss:$12 sps:$4 sm:$0xff]  }
 0x2fa   :  { %v11127_v60 = vld [vmem:[%s15549_s3 + $0x380] ss:$12 sps:$4 sm:$0xff]   ;;  %v11131_v57 = vld [vmem:[%s15549_s3 + $0x458] ss:$12 sps:$4 sm:$0xff]   ;;  %v11128_v55 = vld [vmem:[%s15549_s3 + $0x390] ss:$12 sps:$4 sm:$0xff]  }
 0x2fb   :  { %6149 = vmatpush1.bf16.msra.mxu0 %v11103_v34  ;;  %10102 = vmatpush3.bf16.msra.mxu1 %v11107_v52  ;;  %v11130_v17 = vld [vmem:[%s15549_s3 + $0x394] ss:$12 sps:$4 sm:$0xff]   ;;  %v11132_v61 = vld [vmem:[%s15549_s3 + $0x398] ss:$12 sps:$4 sm:$0xff]   ;;  %v11136_v3 = vld [vmem:[%s15549_s3 + $0x470] ss:$12 sps:$4 sm:$0xff]  }
 0x2fc   :  { %6150 = vmatprep.subr.bf16.mxu0 %v11110_v13  ;;  %10103 = vmatprep.subr.bf16.mxu1 %v11111_v48  ;;  %v11135_v2 = vld [vmem:[%s15549_s3 + $0x3ac] ss:$12 sps:$4 sm:$0xff]   ;;  %v11133_v62 = vld [vmem:[%s15549_s3 + $0x3a8] ss:$12 sps:$4 sm:$0xff]   ;;  %v11137_v63 = vld [vmem:[%s15549_s3 + $0x3b0] ss:$12 sps:$4 sm:$0xff]  }
 0x2fd   :  { %v11140_v8 = vld [vmem:[%s15549_s3 + $0x3c4] ss:$12 sps:$4 sm:$0xff]   ;;  %v11141_v10 = vld [vmem:[%s15549_s3 + $0x548] ss:$12 sps:$4 sm:$0xff]   ;;  %v3455_v47 = vld [vmem:[#allocation4 + $0xa0] sm:$0xf] }
 0x2fe   :  { %v11138_v12 = vld [vmem:[%s15549_s3 + $0x3c0] ss:$12 sps:$4 sm:$0xff]   ;;  %v11142_v16 = vld [vmem:[%s15549_s3 + $0x488] ss:$12 sps:$4 sm:$0xff]   ;;  %v3442_v22 = vld [vmem:[#allocation4 + $0x38] sm:$0xff]  ;;  %v13837_v24 = vpack.c.bf16 %v3455_v47, %v3439_v45 }
 0x2ff   :  { %6151 = vmatpush1.bf16.msra.mxu0 %v11108_v44  ;;  %10104 = vmatpush3.bf16.msra.mxu1 %v11112_v19  ;;  %v3458_v23 = vld [vmem:[#allocation4 + $0xb8] sm:$0xf]  ;;  %v11145_v26 = vld [vmem:[%s15549_s3 + $0x3dc] ss:$12 sps:$4 sm:$0xff]   ;;  %v11146_v18 = vld [vmem:[%s15549_s3 + $0x560] ss:$12 sps:$4 sm:$0xff]  }
 0x300   :  { %6152 = vmatprep.subr.bf16.mxu0 %v11115_v46  ;;  %10105 = vmatprep.subr.bf16.mxu1 %v11116_v49  ;;  %v13846_v14 = vpack.c.bf16 %v3458_v23, %v3442_v22  ;;  %v11147_v21 = vld [vmem:[%s15549_s3 + $0x4a0] ss:$12 sps:$4 sm:$0xff]   ;;  %v11151_v30 = vld [vmem:[%s15549_s3 + $0x578] ss:$12 sps:$4 sm:$0xff]   ;;  %v11148_v31 = vld [vmem:[%s15549_s3 + $0x3f0] ss:$12 sps:$4 sm:$0xff]  }
 0x301   :  { %v11150_v29 = vld [vmem:[%s15549_s3 + $0x3f4] ss:$12 sps:$4 sm:$0xff]   ;;  %v11152_v33 = vld [vmem:[%s15549_s3 + $0x4b8] ss:$12 sps:$4 sm:$0xff]   ;;  %v11156_v36 = vld [vmem:[%s15549_s3 + $0x590] ss:$12 sps:$4 sm:$0xff]  }
 0x302   :  { %v11155_v35 = vld [vmem:[%s15549_s3 + $0x40c] ss:$12 sps:$4 sm:$0xff]   ;;  %v11153_v11 = vld [vmem:[%s15549_s3 + $0x408] ss:$12 sps:$4 sm:$0xff]   ;;  %v11160_v5 = vld [vmem:[%s15549_s3 + $0x424] ss:$12 sps:$4 sm:$0xff]  }
 0x303   :  { %6153 = vmatpush1.bf16.msra.mxu0 %v11113_v54  ;;  %10106 = vmatpush3.bf16.msra.mxu1 %v11117_v53  ;;  %v11161_v39 = vld [vmem:[%s15549_s3 + $0x5a8] ss:$12 sps:$4 sm:$0xff]   ;;  %v11158_v32 = vld [vmem:[%s15549_s3 + $0x420] ss:$12 sps:$4 sm:$0xff]   ;;  %v11163_v52 = vld [vmem:[%s15549_s3 + $0x438] ss:$12 sps:$4 sm:$0xff]  }
 0x304   :  { %6154 = vmatprep.subr.bf16.mxu0 %v11120_v58  ;;  %10107 = vmatprep.subr.bf16.mxu1 %v11121_v56  ;;  %v11162_v40 = vld [vmem:[%s15549_s3 + $0x4e8] ss:$12 sps:$4 sm:$0xff]   ;;  %v11166_v34 = vld [vmem:[%s15549_s3 + $0x5c0] ss:$12 sps:$4 sm:$0xff]   ;;  %v11171_v20 = vld [vmem:[%s15549_s3 + $0x5d8] ss:$12 sps:$4 sm:$0xff]  }
 0x305   :  { %v11165_v15 = vld [vmem:[%s15549_s3 + $0x43c] ss:$12 sps:$4 sm:$0xff]   ;;  %v11167_v13 = vld [vmem:[%s15549_s3 + $0x500] ss:$12 sps:$4 sm:$0xff]   ;;  %v11172_v43 = vld [vmem:[%s15549_s3 + $0x518] ss:$12 sps:$4 sm:$0xff]  }
 0x306   :  { %v11170_v48 = vld [vmem:[%s15549_s3 + $0x454] ss:$12 sps:$4 sm:$0xff]   ;;  %v11168_v41 = vld [vmem:[%s15549_s3 + $0x450] ss:$12 sps:$4 sm:$0xff]   ;;  %v11175_v44 = vld [vmem:[%s15549_s3 + $0x46c] ss:$12 sps:$4 sm:$0xff]  }
 0x307   :  { %6155 = vmatpush1.bf16.msra.mxu0 %v11118_v0  ;;  %10108 = vmatpush3.bf16.msra.mxu1 %v11122_v7  ;;  %v11176_v19 = vld [vmem:[%s15549_s3 + $0x5f0] ss:$12 sps:$4 sm:$0xff]   ;;  %v11173_v1 = vld [vmem:[%s15549_s3 + $0x468] ss:$12 sps:$4 sm:$0xff]   ;;  %v11178_v56 = vld [vmem:[%s15549_s3 + $0x480] ss:$12 sps:$4 sm:$0xff]  }
 0x308   :  { %6156 = vmatprep.subr.bf16.mxu0 %v11125_v59  ;;  %10109 = vmatprep.subr.bf16.mxu1 %v11126_v50  ;;  %v11177_v46 = vld [vmem:[%s15549_s3 + $0x530] ss:$12 sps:$4 sm:$0xff]   ;;  %v11181_v54 = vld [vmem:[%s15549_s3 + $0x6c8] ss:$12 sps:$4 sm:$0xff]  }
 0x309   :  { %v11180_v49 = vld [vmem:[%s15549_s3 + $0x484] ss:$12 sps:$4 sm:$0xff]   ;;  %v3444_v0 = vld [vmem:[#allocation4 + $0x48] sm:$0xff] }
 0x30a   :  { %v3441_v53 = vld [vmem:[#allocation4 + $0x30] sm:$0xff]  ;;  %v3460_v7 = vld [vmem:[#allocation4 + $0xc8] sm:$0xf] }
 0x30b   :  { %6157 = vmatpush1.bf16.msra.mxu0 %v11123_v51  ;;  %10110 = vmatpush3.bf16.msra.mxu1 %v11127_v60  ;;  %v3457_v58 = vld [vmem:[#allocation4 + $0xb0] sm:$0xf]  ;;  %v11182_v50 = vld [vmem:[%s15549_s3 + $0x608] ss:$12 sps:$4 sm:$0xff]   ;;  %v11186_v60 = vld [vmem:[%s15549_s3 + $0x6e0] ss:$12 sps:$4 sm:$0xff]  }
 0x30c   :  { %6158 = vmatprep.subr.bf16.mxu0 %v11130_v17  ;;  %10111 = vmatprep.subr.bf16.mxu1 %v11131_v57  ;;  %v13936_v59 = vpack.c.bf16 %v3457_v58, %v3441_v53  ;;  %v11185_v51 = vld [vmem:[%s15549_s3 + $0x49c] ss:$12 sps:$4 sm:$0xff]   ;;  %v13949_v17 = vpack.c.bf16 %v3460_v7, %v3444_v0  ;;  %v11183_v57 = vld [vmem:[%s15549_s3 + $0x498] ss:$12 sps:$4 sm:$0xff]   ;;  %v11238_v0 = vld [vmem:[%s15549_s3 + $0x5a0] ss:$12 sps:$4 sm:$0xff]  }
 0x30d   :  { %v11197_v45 = vld [vmem:[%s15549_s3 + $0x650] ss:$12 sps:$4 sm:$0xff]   ;;  %v11202_v22 = vld [vmem:[%s15549_s3 + $0x668] ss:$12 sps:$4 sm:$0xff]  }
 0x30e   :  { %v11200_v47 = vld [vmem:[%s15549_s3 + $0x4e4] ss:$12 sps:$4 sm:$0xff]   ;;  %v11205_v23 = vld [vmem:[%s15549_s3 + $0x4fc] ss:$12 sps:$4 sm:$0xff]  }
 0x30f   :  { %6159 = vmatpush1.bf16.msra.mxu0 %v11128_v55  ;;  %10112 = vmatpush3.bf16.msra.mxu1 %v11132_v61  ;;  %v11187_v55 = vld [vmem:[%s15549_s3 + $0x620] ss:$12 sps:$4 sm:$0xff]   ;;  %v11237_v53 = vld [vmem:[%s15549_s3 + $0x7d0] ss:$12 sps:$4 sm:$0xff]   ;;  %v11242_v7 = vld [vmem:[%s15549_s3 + $0x7e8] ss:$12 sps:$4 sm:$0xff]  }
 0x310   :  { %6160 = vmatprep.subr.bf16.mxu0 %v11135_v2  ;;  %10113 = vmatprep.subr.bf16.mxu1 %v11136_v3  ;;  %v11190_v61 = vld [vmem:[%s15549_s3 + $0x4b4] ss:$12 sps:$4 sm:$0xff]   ;;  %v11191_v2 = vld [vmem:[%s15549_s3 + $0x6f8] ss:$12 sps:$4 sm:$0xff]   ;;  %v11188_v3 = vld [vmem:[%s15549_s3 + $0x4b0] ss:$12 sps:$4 sm:$0xff]  }
 0x311   :  { %v11240_v58 = vld [vmem:[%s15549_s3 + $0x5a4] ss:$12 sps:$4 sm:$0xff]  }
 0x313   :  { %6161 = vmatpush1.bf16.msra.mxu0 %v11133_v62  ;;  %10114 = vmatpush3.bf16.msra.mxu1 %v11137_v63  ;;  %v11192_v62 = vld [vmem:[%s15549_s3 + $0x638] ss:$12 sps:$4 sm:$0xff]  }
 0x314   :  { %6162 = vmatprep.subr.bf16.mxu0 %v11140_v8  ;;  %10121 = vmatprep.subr.bf16.mxu1 %v11141_v10  ;;  %v11195_v63 = vld [vmem:[%s15549_s3 + $0x4cc] ss:$12 sps:$4 sm:$0xff]   ;;  %v11196_v8 = vld [vmem:[%s15549_s3 + $0x710] ss:$12 sps:$4 sm:$0xff]   ;;  %v11193_v10 = vld [vmem:[%s15549_s3 + $0x4c8] ss:$12 sps:$4 sm:$0xff]  }
 0x316   :  { %6519 = vmatmul.mubr.bf16.vlgmr.msra.gmra.mrb[24].mxu1 %v13837_v24 }
 0x317   :  { %6163 = vmatpush1.bf16.msra.mxu0 %v11138_v12  ;;  %10122 = vmatpush3.bf16.msra.mxu1 %v11142_v16  ;;  %v11201_v12 = vld [vmem:[%s15549_s3 + $0x728] ss:$12 sps:$4 sm:$0xff]   ;;  %v11198_v16 = vld [vmem:[%s15549_s3 + $0x4e0] ss:$12 sps:$4 sm:$0xff]  }
 0x318   :  { %6559 = vmatprep.mubr.bf16.mxu1 %v13846_v14  ;;  %6164 = vmatprep.subr.bf16.mxu0 %v11145_v26  ;;  %v11203_v26 = vld [vmem:[%s15549_s3 + $0x4f8] ss:$12 sps:$4 sm:$0xff]  }
 0x319   :  { %10123 = vmatprep.subr.bf16.mxu1 %v11146_v18  ;;  %v11207_v18 = vld [vmem:[%s15549_s3 + $0x680] ss:$12 sps:$4 sm:$0xff]  }
 0x31b   :  { %6165 = vmatpush1.bf16.msra.mxu0 %v11143_v28  ;;  %10124 = vmatpush3.bf16.msra.mxu1 %v11147_v21  ;;  %v11211_v28 = vld [vmem:[%s15549_s3 + $0x758] ss:$12 sps:$4 sm:$0xff]   ;;  %v11208_v21 = vld [vmem:[%s15549_s3 + $0x510] ss:$12 sps:$4 sm:$0xff]  }
 0x31c   :  { %6166 = vmatprep.subr.bf16.mxu0 %v11150_v29  ;;  %10125 = vmatprep.subr.bf16.mxu1 %v11151_v30  ;;  %v11212_v29 = vld [vmem:[%s15549_s3 + $0x698] ss:$12 sps:$4 sm:$0xff]  }
 0x31d   :  { %v11215_v30 = vld [vmem:[%s15549_s3 + $0x52c] ss:$12 sps:$4 sm:$0xff]  }
 0x31f   :  { %6167 = vmatpush1.bf16.msra.mxu0 %v11148_v31  ;;  %10126 = vmatpush3.bf16.msra.mxu1 %v11152_v33  ;;  %v11216_v31 = vld [vmem:[%s15549_s3 + $0x770] ss:$12 sps:$4 sm:$0xff]   ;;  %v11213_v33 = vld [vmem:[%s15549_s3 + $0x528] ss:$12 sps:$4 sm:$0xff]  }
 0x320   :  { %6168 = vmatprep.subr.bf16.mxu0 %v11155_v35  ;;  %10127 = vmatprep.subr.bf16.mxu1 %v11156_v36  ;;  %v11217_v35 = vld [vmem:[%s15549_s3 + $0x6b0] ss:$12 sps:$4 sm:$0xff]  }
 0x321   :  { %v11220_v36 = vld [vmem:[%s15549_s3 + $0x544] ss:$12 sps:$4 sm:$0xff]  }
 0x323   :  { %6169 = vmatpush1.bf16.msra.mxu0 %v11153_v11  ;;  %10128 = vmatpush3.bf16.msra.mxu1 %v11157_v37  ;;  %v11221_v11 = vld [vmem:[%s15549_s3 + $0x848] ss:$12 sps:$4 sm:$0xff]   ;;  %v3443_v37 = vld [vmem:[#allocation4 + $0x40] sm:$0xff] }
 0x324   :  { %6170 = vmatprep.subr.bf16.mxu0 %v11160_v5  ;;  %10129 = vmatprep.subr.bf16.mxu1 %v11161_v39  ;;  %v3459_v5 = vld [vmem:[#allocation4 + $0xc0] sm:$0xf] }
 0x325   :  { %v11218_v39 = vld [vmem:[%s15549_s3 + $0x540] ss:$12 sps:$4 sm:$0xff]  }
 0x327   :  { %6171 = vmatpush1.bf16.msra.mxu0 %v11158_v32  ;;  %10130 = vmatpush3.bf16.msra.mxu1 %v11162_v40  ;;  %v3446_v32 = vld [vmem:[#allocation4 + $0x58] sm:$0xff] }
 0x328   :  { %6172 = vmatprep.subr.bf16.mxu0 %v11165_v15  ;;  %10131 = vmatprep.subr.bf16.mxu1 %v11166_v34  ;;  %v3462_v40 = vld [vmem:[#allocation4 + $0xd8] sm:$0xf]  ;;  %v11222_v15 = vld [vmem:[%s15549_s3 + $0x788] ss:$12 sps:$4 sm:$0xff]   ;;  %v14043_v34 = vpack.c.bf16 %v3459_v5, %v3443_v37  ;;  %v11277_v37 = vld [vmem:[%s15549_s3 + $0x950] ss:$12 sps:$4 sm:$0xff]  }
 0x329   :  { %v11280_v5 = vld [vmem:[%s15549_s3 + $0x664] ss:$12 sps:$4 sm:$0xff]  }
 0x32b   :  { %6173 = vmatpush1.bf16.msra.mxu0 %v11163_v52  ;;  %10132 = vmatpush3.bf16.msra.mxu1 %v11167_v13  ;;  %v11225_v52 = vld [vmem:[%s15549_s3 + $0x55c] ss:$12 sps:$4 sm:$0xff]   ;;  %v11226_v13 = vld [vmem:[%s15549_s3 + $0x860] ss:$12 sps:$4 sm:$0xff]  }
 0x32c   :  { %6174 = vmatprep.subr.bf16.mxu0 %v11170_v48  ;;  %10133 = vmatprep.subr.bf16.mxu1 %v11171_v20  ;;  %v14051_v48 = vpack.c.bf16 %v3462_v40, %v3446_v32  ;;  %v11223_v20 = vld [vmem:[%s15549_s3 + $0x558] ss:$12 sps:$4 sm:$0xff]   ;;  %v11278_v32 = vld [vmem:[%s15549_s3 + $0x660] ss:$12 sps:$4 sm:$0xff]   ;;  %v11282_v40 = vld [vmem:[%s15549_s3 + $0x968] ss:$12 sps:$4 sm:$0xff]  }
 0x32f   :  { %6175 = vmatpush1.bf16.msra.mxu0 %v11168_v41  ;;  %10134 = vmatpush3.bf16.msra.mxu1 %v11172_v43  ;;  %v11227_v41 = vld [vmem:[%s15549_s3 + $0x7a0] ss:$12 sps:$4 sm:$0xff]  }
 0x330   :  { %6176 = vmatprep.subr.bf16.mxu0 %v11175_v44  ;;  %10135 = vmatprep.subr.bf16.mxu1 %v11176_v19  ;;  %v11230_v43 = vld [vmem:[%s15549_s3 + $0x574] ss:$12 sps:$4 sm:$0xff]   ;;  %v11231_v44 = vld [vmem:[%s15549_s3 + $0x878] ss:$12 sps:$4 sm:$0xff]   ;;  %v11228_v19 = vld [vmem:[%s15549_s3 + $0x570] ss:$12 sps:$4 sm:$0xff]  }
 0x333   :  { %6177 = vmatpush1.bf16.msra.mxu0 %v11173_v1  ;;  %10136 = vmatpush3.bf16.msra.mxu1 %v11177_v46  ;;  %v11232_v1 = vld [vmem:[%s15549_s3 + $0x7b8] ss:$12 sps:$4 sm:$0xff]  }
 0x334   :  { %6189 = vmatprep.subr.bf16.mxu0 %v11180_v49  ;;  %10143 = vmatprep.subr.bf16.mxu1 %v11181_v54  ;;  %v11235_v46 = vld [vmem:[%s15549_s3 + $0x58c] ss:$12 sps:$4 sm:$0xff]   ;;  %v11236_v49 = vld [vmem:[%s15549_s3 + $0x890] ss:$12 sps:$4 sm:$0xff]   ;;  %v11233_v54 = vld [vmem:[%s15549_s3 + $0x588] ss:$12 sps:$4 sm:$0xff]  }
 0x336   :  { %6179 = vmatmul.mubr.bf16.vlgmr.msra.gmra.mrb[8].mxu0 %v13837_v24  ;;  %6560 = vmatmul.mubr.bf16.vlgmr.msra.gmra.mrb[28].mxu1 %v13936_v59  ;;  %v11206_v24 = vld [vmem:[%s15549_s3 + $0x740] ss:$12 sps:$4 sm:$0xff]  }
 0x337   :  { %6190 = vmatpush1.bf16.msra.mxu0 %v11178_v56  ;;  %6221 = vmatprep.mubr.bf16.mxu0 %v13846_v14  ;;  %v11210_v14 = vld [vmem:[%s15549_s3 + $0x514] ss:$12 sps:$4 sm:$0xff]  }
 0x338   :  { %10144 = vmatpush3.bf16.msra.mxu1 %v11182_v50  ;;  %6600 = vmatprep.mubr.bf16.mxu1 %v13949_v17  ;;  %v11241_v56 = vld [vmem:[%s15549_s3 + $0x8a8] ss:$12 sps:$4 sm:$0xff]  }
 0x339   :  { %6191 = vmatprep.subr.bf16.mxu0 %v11185_v51  ;;  %10145 = vmatprep.subr.bf16.mxu1 %v11186_v60  ;;  %v11245_v50 = vld [vmem:[%s15549_s3 + $0x5bc] ss:$12 sps:$4 sm:$0xff]   ;;  %v11246_v51 = vld [vmem:[%s15549_s3 + $0x8c0] ss:$12 sps:$4 sm:$0xff]   ;;  %v11243_v60 = vld [vmem:[%s15549_s3 + $0x5b8] ss:$12 sps:$4 sm:$0xff]  }
 0x33b   :  { %6192 = vmatpush1.bf16.msra.mxu0 %v11183_v57  ;;  %v11247_v57 = vld [vmem:[%s15549_s3 + $0x800] ss:$12 sps:$4 sm:$0xff]  }
 0x33c   :  { %10146 = vmatpush3.bf16.msra.mxu1 %v11187_v55  ;;  %6193 = vmatprep.subr.bf16.mxu0 %v11190_v61  ;;  %v11250_v55 = vld [vmem:[%s15549_s3 + $0x5d4] ss:$12 sps:$4 sm:$0xff]   ;;  %v11251_v61 = vld [vmem:[%s15549_s3 + $0x8d8] ss:$12 sps:$4 sm:$0xff]  }
 0x33d   :  { %10147 = vmatprep.subr.bf16.mxu1 %v11191_v2  ;;  %v11248_v2 = vld [vmem:[%s15549_s3 + $0x5d0] ss:$12 sps:$4 sm:$0xff]  }
 0x33f   :  { %6194 = vmatpush1.bf16.msra.mxu0 %v11188_v3  ;;  %v11252_v3 = vld [vmem:[%s15549_s3 + $0x818] ss:$12 sps:$4 sm:$0xff]  }
 0x340   :  { %10148 = vmatpush3.bf16.msra.mxu1 %v11192_v62  ;;  %6195 = vmatprep.subr.bf16.mxu0 %v11195_v63  ;;  %v11255_v62 = vld [vmem:[%s15549_s3 + $0x5ec] ss:$12 sps:$4 sm:$0xff]   ;;  %v11256_v63 = vld [vmem:[%s15549_s3 + $0x8f0] ss:$12 sps:$4 sm:$0xff]  }
 0x341   :  { %10149 = vmatprep.subr.bf16.mxu1 %v11196_v8  ;;  %v11253_v8 = vld [vmem:[%s15549_s3 + $0x5e8] ss:$12 sps:$4 sm:$0xff]  }
 0x343   :  { %6196 = vmatpush1.bf16.msra.mxu0 %v11193_v10  ;;  %v11257_v10 = vld [vmem:[%s15549_s3 + $0x830] ss:$12 sps:$4 sm:$0xff]  }
 0x344   :  { %10150 = vmatpush3.bf16.msra.mxu1 %v11197_v45  ;;  %6197 = vmatprep.subr.bf16.mxu0 %v11200_v47  ;;  %v11260_v45 = vld [vmem:[%s15549_s3 + $0x604] ss:$12 sps:$4 sm:$0xff]   ;;  %v11261_v47 = vld [vmem:[%s15549_s3 + $0x9c8] ss:$12 sps:$4 sm:$0xff]  }
 0x345   :  { %10151 = vmatprep.subr.bf16.mxu1 %v11201_v12  ;;  %v3445_v12 = vld [vmem:[#allocation4 + $0x50] sm:$0xff] }
 0x347   :  { %6198 = vmatpush1.bf16.msra.mxu0 %v11198_v16  ;;  %v3461_v16 = vld [vmem:[#allocation4 + $0xd0] sm:$0xf] }
 0x348   :  { %10152 = vmatpush3.bf16.msra.mxu1 %v11202_v22  ;;  %6199 = vmatprep.subr.bf16.mxu0 %v11205_v23  ;;  %v11258_v22 = vld [vmem:[%s15549_s3 + $0x600] ss:$12 sps:$4 sm:$0xff]   ;;  %v11262_v23 = vld [vmem:[%s15549_s3 + $0x908] ss:$12 sps:$4 sm:$0xff]  }
 0x349   :  { %10153 = vmatprep.subr.bf16.mxu1 %v11206_v24  ;;  %v3448_v24 = vld [vmem:[#allocation4 + $0x68] sm:$0xff] }
 0x34b   :  { %6200 = vmatpush1.bf16.msra.mxu0 %v11203_v26  ;;  %v3464_v26 = vld [vmem:[#allocation4 + $0xe8] sm:$0xf] }
 0x34c   :  { %10154 = vmatpush3.bf16.msra.mxu1 %v11207_v18  ;;  %6201 = vmatprep.subr.bf16.mxu0 %v11210_v14  ;;  %v14145_v18 = vpack.c.bf16 %v3461_v16, %v3445_v12  ;;  %v11265_v14 = vld [vmem:[%s15549_s3 + $0x61c] ss:$12 sps:$4 sm:$0xff]  }
 0x34d   :  { %10155 = vmatprep.subr.bf16.mxu1 %v11211_v28  ;;  %v11266_v28 = vld [vmem:[%s15549_s3 + $0x9e0] ss:$12 sps:$4 sm:$0xff]   ;;  %v11316_v12 = vld [vmem:[%s15549_s3 + $0xb90] ss:$12 sps:$4 sm:$0xff]   ;;  %v11313_v16 = vld [vmem:[%s15549_s3 + $0x708] ss:$12 sps:$4 sm:$0xff]  }
 0x34f   :  { %6202 = vmatpush1.bf16.msra.mxu0 %v11208_v21  ;;  %v14155_v21 = vpack.c.bf16 %v3464_v26, %v3448_v24  ;;  %v11321_v24 = vld [vmem:[%s15549_s3 + $0xba8] ss:$12 sps:$4 sm:$0xff]   ;;  %v11318_v26 = vld [vmem:[%s15549_s3 + $0x720] ss:$12 sps:$4 sm:$0xff]  }
 0x350   :  { %10156 = vmatpush3.bf16.msra.mxu1 %v11212_v29  ;;  %6203 = vmatprep.subr.bf16.mxu0 %v11215_v30  ;;  %v11263_v29 = vld [vmem:[%s15549_s3 + $0x618] ss:$12 sps:$4 sm:$0xff]   ;;  %v11270_v30 = vld [vmem:[%s15549_s3 + $0x634] ss:$12 sps:$4 sm:$0xff]  }
 0x351   :  { %10157 = vmatprep.subr.bf16.mxu1 %v11216_v31  ;;  %v11271_v31 = vld [vmem:[%s15549_s3 + $0x9f8] ss:$12 sps:$4 sm:$0xff]  }
 0x353   :  { %6204 = vmatpush1.bf16.msra.mxu0 %v11213_v33  ;;  %v11272_v33 = vld [vmem:[%s15549_s3 + $0x938] ss:$12 sps:$4 sm:$0xff]  }
 0x354   :  { %10158 = vmatpush3.bf16.msra.mxu1 %v11217_v35  ;;  %6205 = vmatprep.subr.bf16.mxu0 %v11220_v36  ;;  %v11275_v35 = vld [vmem:[%s15549_s3 + $0x64c] ss:$12 sps:$4 sm:$0xff]   ;;  %v11276_v36 = vld [vmem:[%s15549_s3 + $0xa10] ss:$12 sps:$4 sm:$0xff]  }
 0x355   :  { %10165 = vmatprep.subr.bf16.mxu1 %v11221_v11  ;;  %v11273_v11 = vld [vmem:[%s15549_s3 + $0x648] ss:$12 sps:$4 sm:$0xff]  }
 0x357   :  { %6601 = vmatmul.mubr.bf16.vlgmr.msra.gmra.mrb[32].mxu1 %v14043_v34  ;;  %6206 = vmatpush1.bf16.msra.mxu0 %v11218_v39  ;;  %v11281_v39 = vld [vmem:[%s15549_s3 + $0xa28] ss:$12 sps:$4 sm:$0xff]  }
 0x358   :  { %10166 = vmatpush3.bf16.msra.mxu1 %v11222_v15  ;;  %6641 = vmatprep.mubr.bf16.mxu1 %v14051_v48  ;;  %v11285_v15 = vld [vmem:[%s15549_s3 + $0x67c] ss:$12 sps:$4 sm:$0xff]  }
 0x359   :  { %6207 = vmatprep.subr.bf16.mxu0 %v11225_v52  ;;  %10167 = vmatprep.subr.bf16.mxu1 %v11226_v13  ;;  %v11286_v52 = vld [vmem:[%s15549_s3 + $0xa40] ss:$12 sps:$4 sm:$0xff]   ;;  %v11283_v13 = vld [vmem:[%s15549_s3 + $0x678] ss:$12 sps:$4 sm:$0xff]  }
 0x35b   :  { %6208 = vmatpush1.bf16.msra.mxu0 %v11223_v20  ;;  %v11287_v20 = vld [vmem:[%s15549_s3 + $0x980] ss:$12 sps:$4 sm:$0xff]  }
 0x35c   :  { %10168 = vmatpush3.bf16.msra.mxu1 %v11227_v41  ;;  %6209 = vmatprep.subr.bf16.mxu0 %v11230_v43  ;;  %v11290_v41 = vld [vmem:[%s15549_s3 + $0x694] ss:$12 sps:$4 sm:$0xff]   ;;  %v11291_v43 = vld [vmem:[%s15549_s3 + $0xa58] ss:$12 sps:$4 sm:$0xff]  }
 0x35d   :  { %10169 = vmatprep.subr.bf16.mxu1 %v11231_v44  ;;  %v11288_v44 = vld [vmem:[%s15549_s3 + $0x690] ss:$12 sps:$4 sm:$0xff]  }
 0x35f   :  { %6210 = vmatpush1.bf16.msra.mxu0 %v11228_v19  ;;  %v11292_v19 = vld [vmem:[%s15549_s3 + $0x998] ss:$12 sps:$4 sm:$0xff]  }
 0x360   :  { %10170 = vmatpush3.bf16.msra.mxu1 %v11232_v1  ;;  %6211 = vmatprep.subr.bf16.mxu0 %v11235_v46  ;;  %v11295_v1 = vld [vmem:[%s15549_s3 + $0x6ac] ss:$12 sps:$4 sm:$0xff]   ;;  %v11296_v46 = vld [vmem:[%s15549_s3 + $0xa70] ss:$12 sps:$4 sm:$0xff]  }
 0x361   :  { %10171 = vmatprep.subr.bf16.mxu1 %v11236_v49  ;;  %v11293_v49 = vld [vmem:[%s15549_s3 + $0x6a8] ss:$12 sps:$4 sm:$0xff]  }
 0x363   :  { %6212 = vmatpush1.bf16.msra.mxu0 %v11233_v54  ;;  %v11297_v54 = vld [vmem:[%s15549_s3 + $0x9b0] ss:$12 sps:$4 sm:$0xff]  }
 0x364   :  { %10172 = vmatpush3.bf16.msra.mxu1 %v11237_v53  ;;  %6213 = vmatprep.subr.bf16.mxu0 %v11240_v58  ;;  %v11300_v53 = vld [vmem:[%s15549_s3 + $0x6c4] ss:$12 sps:$4 sm:$0xff]   ;;  %v11301_v58 = vld [vmem:[%s15549_s3 + $0xb48] ss:$12 sps:$4 sm:$0xff]  }
 0x365   :  { %10173 = vmatprep.subr.bf16.mxu1 %v11241_v56  ;;  %v3447_v56 = vld [vmem:[#allocation4 + $0x60] sm:$0xff] }
 0x367   :  { %6214 = vmatpush1.bf16.msra.mxu0 %v11238_v0  ;;  %v3463_v0 = vld [vmem:[#allocation4 + $0xe0] sm:$0xf] }
 0x368   :  { %10174 = vmatpush3.bf16.msra.mxu1 %v11242_v7  ;;  %6215 = vmatprep.subr.bf16.mxu0 %v11245_v50  ;;  %v11298_v7 = vld [vmem:[%s15549_s3 + $0x6c0] ss:$12 sps:$4 sm:$0xff]   ;;  %v3450_v50 = vld [vmem:[#allocation4 + $0x78] sm:$0xff] }
 0x369   :  { %10175 = vmatprep.subr.bf16.mxu1 %v11246_v51  ;;  %v3466_v51 = vld [vmem:[#allocation4 + $0xf8] sm:$0xf] }
 0x36b   :  { %6216 = vmatpush1.bf16.msra.mxu0 %v11243_v60  ;;  %v11302_v60 = vld [vmem:[%s15549_s3 + $0xa88] ss:$12 sps:$4 sm:$0xff]  }
 0x36c   :  { %10176 = vmatpush3.bf16.msra.mxu1 %v11247_v57  ;;  %6217 = vmatprep.subr.bf16.mxu0 %v11250_v55  ;;  %v14249_v57 = vpack.c.bf16 %v3463_v0, %v3447_v56  ;;  %v11305_v55 = vld [vmem:[%s15549_s3 + $0x6dc] ss:$12 sps:$4 sm:$0xff]  }
 0x36d   :  { %10177 = vmatprep.subr.bf16.mxu1 %v11251_v61  ;;  %v11306_v61 = vld [vmem:[%s15549_s3 + $0xb60] ss:$12 sps:$4 sm:$0xff]  }
 0x36f   :  { %6218 = vmatpush1.bf16.msra.mxu0 %v11248_v2  ;;  %v14257_v2 = vpack.c.bf16 %v3466_v51, %v3450_v50 }
 0x370   :  { %10178 = vmatpush3.bf16.msra.mxu1 %v11252_v3  ;;  %6219 = vmatprep.subr.bf16.mxu0 %v11255_v62  ;;  %v11303_v3 = vld [vmem:[%s15549_s3 + $0x6d8] ss:$12 sps:$4 sm:$0xff]   ;;  %v11307_v62 = vld [vmem:[%s15549_s3 + $0xaa0] ss:$12 sps:$4 sm:$0xff]  }
 0x371   :  { %10179 = vmatprep.subr.bf16.mxu1 %v11256_v63  ;;  %v11310_v63 = vld [vmem:[%s15549_s3 + $0x6f4] ss:$12 sps:$4 sm:$0xff]  }
 0x373   :  { %6220 = vmatpush1.bf16.msra.mxu0 %v11253_v8  ;;  %v11311_v8 = vld [vmem:[%s15549_s3 + $0xb78] ss:$12 sps:$4 sm:$0xff]  }
 0x374   :  { %10180 = vmatpush3.bf16.msra.mxu1 %v11257_v10  ;;  %6232 = vmatprep.subr.bf16.mxu0 %v11260_v45  ;;  %v11308_v10 = vld [vmem:[%s15549_s3 + $0x6f0] ss:$12 sps:$4 sm:$0xff]   ;;  %v11312_v45 = vld [vmem:[%s15549_s3 + $0xab8] ss:$12 sps:$4 sm:$0xff]  }
 0x375   :  { %10187 = vmatprep.subr.bf16.mxu1 %v11261_v47  ;;  %v11315_v47 = vld [vmem:[%s15549_s3 + $0x70c] ss:$12 sps:$4 sm:$0xff]  }
 0x376   :  { %6222 = vmatmul.mubr.bf16.vlgmr.msra.gmra.mrb[8].mxu0 %v13936_v59  ;;  %v11267_v59 = vld [vmem:[%s15549_s3 + $0x920] ss:$12 sps:$4 sm:$0xff]  }
 0x377   :  { %6642 = vmatmul.mubr.bf16.vlgmr.msra.gmra.mrb[36].mxu1 %v14145_v18  ;;  %6233 = vmatpush1.bf16.msra.mxu0 %v11258_v22  ;;  %v11317_v22 = vld [vmem:[%s15549_s3 + $0xad0] ss:$12 sps:$4 sm:$0xff]  }
 0x378   :  { %6264 = vmatprep.mubr.bf16.mxu0 %v13949_v17  ;;  %10188 = vmatpush3.bf16.msra.mxu1 %v11262_v23  ;;  %v11268_v17 = vld [vmem:[%s15549_s3 + $0x630] ss:$12 sps:$4 sm:$0xff]  }
 0x379   :  { %6682 = vmatprep.mubr.bf16.mxu1 %v14155_v21  ;;  %6234 = vmatprep.subr.bf16.mxu0 %v11265_v14  ;;  %v11320_v23 = vld [vmem:[%s15549_s3 + $0x724] ss:$12 sps:$4 sm:$0xff]   ;;  %v11322_v14 = vld [vmem:[%s15549_s3 + $0xae8] ss:$12 sps:$4 sm:$0xff]  }
 0x37a   :  { %10189 = vmatprep.subr.bf16.mxu1 %v11266_v28  ;;  %v11325_v28 = vld [vmem:[%s15549_s3 + $0x73c] ss:$12 sps:$4 sm:$0xff]  }
 0x37b   :  { %6235 = vmatpush1.bf16.msra.mxu0 %v11263_v29  ;;  %v11326_v29 = vld [vmem:[%s15549_s3 + $0xbc0] ss:$12 sps:$4 sm:$0xff]  }
 0x37c   :  { %10190 = vmatpush3.bf16.msra.mxu1 %v11267_v59  ;;  %6236 = vmatprep.subr.bf16.mxu0 %v11270_v30  ;;  %v11323_v59 = vld [vmem:[%s15549_s3 + $0x738] ss:$12 sps:$4 sm:$0xff]   ;;  %v11327_v30 = vld [vmem:[%s15549_s3 + $0xb00] ss:$12 sps:$4 sm:$0xff]  }
 0x37d   :  { %10191 = vmatprep.subr.bf16.mxu1 %v11271_v31  ;;  %v11330_v31 = vld [vmem:[%s15549_s3 + $0x754] ss:$12 sps:$4 sm:$0xff]  }
 0x37f   :  { %6237 = vmatpush1.bf16.msra.mxu0 %v11268_v17  ;;  %v11331_v17 = vld [vmem:[%s15549_s3 + $0xbd8] ss:$12 sps:$4 sm:$0xff]  }
 0x380   :  { %10192 = vmatpush3.bf16.msra.mxu1 %v11272_v33  ;;  %6238 = vmatprep.subr.bf16.mxu0 %v11275_v35  ;;  %v11328_v33 = vld [vmem:[%s15549_s3 + $0x750] ss:$12 sps:$4 sm:$0xff]   ;;  %v11332_v35 = vld [vmem:[%s15549_s3 + $0xb18] ss:$12 sps:$4 sm:$0xff]  }
 0x381   :  { %10193 = vmatprep.subr.bf16.mxu1 %v11276_v36  ;;  %v11335_v36 = vld [vmem:[%s15549_s3 + $0x76c] ss:$12 sps:$4 sm:$0xff]  }
 0x383   :  { %6239 = vmatpush1.bf16.msra.mxu0 %v11273_v11  ;;  %v11336_v11 = vld [vmem:[%s15549_s3 + $0xbf0] ss:$12 sps:$4 sm:$0xff]  }
 0x384   :  { %10194 = vmatpush3.bf16.msra.mxu1 %v11277_v37  ;;  %6240 = vmatprep.subr.bf16.mxu0 %v11280_v5  ;;  %v11333_v37 = vld [vmem:[%s15549_s3 + $0x768] ss:$12 sps:$4 sm:$0xff]   ;;  %v11337_v5 = vld [vmem:[%s15549_s3 + $0xb30] ss:$12 sps:$4 sm:$0xff]  }
 0x385   :  { %10195 = vmatprep.subr.bf16.mxu1 %v11281_v39  ;;  %v11340_v39 = vld [vmem:[%s15549_s3 + $0x784] ss:$12 sps:$4 sm:$0xff]  }
 0x387   :  { %6241 = vmatpush1.bf16.msra.mxu0 %v11278_v32  ;;  %v3449_v32 = vld [vmem:[#allocation4 + $0x70] sm:$0xff] }
 0x388   :  { %10196 = vmatpush3.bf16.msra.mxu1 %v11282_v40  ;;  %6242 = vmatprep.subr.bf16.mxu0 %v11285_v15  ;;  %v3465_v40 = vld [vmem:[#allocation4 + $0xf0] sm:$0xf]  ;;  %v11338_v15 = vld [vmem:[%s15549_s3 + $0x780] ss:$12 sps:$4 sm:$0xff]  }
 0x389   :  { %10197 = vmatprep.subr.bf16.mxu1 %v11286_v52  ;;  %v11343_v52 = vld [vmem:[%s15549_s3 + $0x79c] ss:$12 sps:$4 sm:$0xff]  }
 0x38b   :  { %6243 = vmatpush1.bf16.msra.mxu0 %v11283_v13  ;;  %v14348_v13 = vpack.c.bf16 %v3465_v40, %v3449_v32  ;;  %v11391_v32 = vld [vmem:[%s15549_s3 + $0x91c] ss:$12 sps:$4 sm:$0xff]   ;;  %v11389_v40 = vld [vmem:[%s15549_s3 + $0x918] ss:$12 sps:$4 sm:$0xff]  }
 0x38c   :  { %10198 = vmatpush3.bf16.msra.mxu1 %v11287_v20  ;;  %6244 = vmatprep.subr.bf16.mxu0 %v11290_v41  ;;  %v11341_v20 = vld [vmem:[%s15549_s3 + $0x798] ss:$12 sps:$4 sm:$0xff]   ;;  %v11346_v41 = vld [vmem:[%s15549_s3 + $0x7b4] ss:$12 sps:$4 sm:$0xff]  }
 0x38d   :  { %10199 = vmatprep.subr.bf16.mxu1 %v11291_v43  ;;  %v11344_v43 = vld [vmem:[%s15549_s3 + $0x7b0] ss:$12 sps:$4 sm:$0xff]  }
 0x38f   :  { %6245 = vmatpush1.bf16.msra.mxu0 %v11288_v44  ;;  %v11352_v44 = vld [vmem:[%s15549_s3 + $0x7e4] ss:$12 sps:$4 sm:$0xff]  }
 0x390   :  { %10200 = vmatpush3.bf16.msra.mxu1 %v11292_v19  ;;  %6246 = vmatprep.subr.bf16.mxu0 %v11295_v1  ;;  %v11350_v19 = vld [vmem:[%s15549_s3 + $0x7e0] ss:$12 sps:$4 sm:$0xff]  }
 0x391   :  { %10201 = vmatprep.subr.bf16.mxu1 %v11296_v46  ;;  %v14377_v1 = vld [vmem:[%s15550_s4] sm:$0x7]  ;;  %v11355_v46 = vld [vmem:[%s15549_s3 + $0x7fc] ss:$12 sps:$4 sm:$0xff]  }
 0x393   :  { %6247 = vmatpush1.bf16.msra.mxu0 %v11293_v49  ;;  %v4008_v49 = vrot.slane %v14377_v1, %v664_v27  ;;  %v11356_v27 = vld [vmem:[%s15549_s3 + $0x810] ss:$12 sps:$4 sm:$0xff]  }
 0x394   :  { %10202 = vmatpush3.bf16.msra.mxu1 %v11297_v54  ;;  %6248 = vmatprep.subr.bf16.mxu0 %v11300_v53  ;;  %v11353_v54 = vld [vmem:[%s15549_s3 + $0x7f8] ss:$12 sps:$4 sm:$0xff]   ;;  %v11358_v53 = vld [vmem:[%s15549_s3 + $0x814] ss:$12 sps:$4 sm:$0xff]  }
 0x395   :  { %10209 = vmatprep.subr.bf16.mxu1 %v11301_v58  ;;  %v6439_v0 = vadd.f32 %v13755_v42, %v4008_v49  ;;  %v11359_v42 = vld [vmem:[%s15549_s3 + $0x828] ss:$12 sps:$4 sm:$0xff]  }
 0x397   :  { %6683 = vmatmul.mubr.bf16.vlgmr.msra.gmra.mrb[40].mxu1 %v14249_v57  ;;  %6249 = vmatpush1.bf16.msra.mxu0 %v11298_v7 }
 0x398   :  { %10210 = vmatpush3.bf16.msra.mxu1 %v11302_v60  ;;  %6723 = vmatprep.mubr.bf16.mxu1 %v14257_v2  ;;  %v11361_v60 = vld [vmem:[%s15549_s3 + $0x82c] ss:$12 sps:$4 sm:$0xff]  }
 0x399   :  { %6250 = vmatprep.subr.bf16.mxu0 %v11305_v55  ;;  %10211 = vmatprep.subr.bf16.mxu1 %v11306_v61  ;;  %v6442_v55 = vadd.f32 %v13769_v25, %v4008_v49  ;;  %v11367_v25 = vld [vmem:[%s15549_s3 + $0x85c] ss:$12 sps:$4 sm:$0xff]  }
 0x39b   :  { %6251 = vmatpush1.bf16.msra.mxu0 %v11303_v3 }
 0x39c   :  { %10212 = vmatpush3.bf16.msra.mxu1 %v11307_v62  ;;  %6252 = vmatprep.subr.bf16.mxu0 %v11310_v63  ;;  %v11364_v63 = vld [vmem:[%s15549_s3 + $0x844] ss:$12 sps:$4 sm:$0xff]  }
 0x39d   :  { %10213 = vmatprep.subr.bf16.mxu1 %v11311_v8  ;;  %v11362_v8 = vld [vmem:[%s15549_s3 + $0x840] ss:$12 sps:$4 sm:$0xff]  }
 0x39f   :  { %6253 = vmatpush1.bf16.msra.mxu0 %v11308_v10  ;;  %v11365_v10 = vld [vmem:[%s15549_s3 + $0x858] ss:$12 sps:$4 sm:$0xff]  }
 0x3a0   :  { %10214 = vmatpush3.bf16.msra.mxu1 %v11312_v45  ;;  %6254 = vmatprep.subr.bf16.mxu0 %v11315_v47  ;;  %v11370_v45 = vld [vmem:[%s15549_s3 + $0x874] ss:$12 sps:$4 sm:$0xff]   ;;  %v11368_v47 = vld [vmem:[%s15549_s3 + $0x870] ss:$12 sps:$4 sm:$0xff]  }
 0x3a1   :  { %10215 = vmatprep.subr.bf16.mxu1 %v11316_v12  ;;  %v11373_v12 = vld [vmem:[%s15549_s3 + $0x88c] ss:$12 sps:$4 sm:$0xff]  }
 0x3a3   :  { %6255 = vmatpush1.bf16.msra.mxu0 %v11313_v16  ;;  %v11371_v16 = vld [vmem:[%s15549_s3 + $0x888] ss:$12 sps:$4 sm:$0xff]  }
 0x3a4   :  { %10216 = vmatpush3.bf16.msra.mxu1 %v11317_v22  ;;  %6256 = vmatprep.subr.bf16.mxu0 %v11320_v23  ;;  %v11376_v22 = vld [vmem:[%s15549_s3 + $0x8a4] ss:$12 sps:$4 sm:$0xff]   ;;  %v11374_v23 = vld [vmem:[%s15549_s3 + $0x8a0] ss:$12 sps:$4 sm:$0xff]  }
 0x3a5   :  { %10217 = vmatprep.subr.bf16.mxu1 %v11321_v24  ;;  %v11379_v24 = vld [vmem:[%s15549_s3 + $0x8bc] ss:$12 sps:$4 sm:$0xff]  }
 0x3a7   :  { %6257 = vmatpush1.bf16.msra.mxu0 %v11318_v26  ;;  %v11377_v26 = vld [vmem:[%s15549_s3 + $0x8b8] ss:$12 sps:$4 sm:$0xff]  }
 0x3a8   :  { %10218 = vmatpush3.bf16.msra.mxu1 %v11322_v14  ;;  %6258 = vmatprep.subr.bf16.mxu0 %v11325_v28  ;;  %v11382_v14 = vld [vmem:[%s15549_s3 + $0x8d4] ss:$12 sps:$4 sm:$0xff]  }
 0x3a9   :  { %10219 = vmatprep.subr.bf16.mxu1 %v11326_v29 }
 0x3ab   :  { %6259 = vmatpush1.bf16.msra.mxu0 %v11323_v59 }
 0x3ac   :  { %10220 = vmatpush3.bf16.msra.mxu1 %v11327_v30  ;;  %6260 = vmatprep.subr.bf16.mxu0 %v11330_v31  ;;  %v11380_v31 = vld [vmem:[%s15549_s3 + $0x8d0] ss:$12 sps:$4 sm:$0xff]  }
 0x3ad   :  { %10221 = vmatprep.subr.bf16.mxu1 %v11331_v17 }
 0x3af   :  { %6261 = vmatpush1.bf16.msra.mxu0 %v11328_v33  ;;  %v11385_v33 = vld [vmem:[%s15549_s3 + $0x8ec] ss:$12 sps:$4 sm:$0xff]  }
 0x3b0   :  { %10222 = vmatpush3.bf16.msra.mxu1 %v11332_v35  ;;  %6262 = vmatprep.subr.bf16.mxu0 %v11335_v36 }
 0x3b1   :  { %10223 = vmatprep.subr.bf16.mxu1 %v11336_v11 }
 0x3b3   :  { %6263 = vmatpush1.bf16.msra.mxu0 %v11333_v37  ;;  %v11383_v37 = vld [vmem:[%s15549_s3 + $0x8e8] ss:$12 sps:$4 sm:$0xff]  }
 0x3b4   :  { %10224 = vmatpush3.bf16.msra.mxu1 %v11337_v5  ;;  %6275 = vmatprep.subr.bf16.mxu0 %v11340_v39  ;;  %v11388_v5 = vld [vmem:[%s15549_s3 + $0x904] ss:$12 sps:$4 sm:$0xff]   ;;  %v11386_v39 = vld [vmem:[%s15549_s3 + $0x900] ss:$12 sps:$4 sm:$0xff]  }
 0x3b6   :  { %6265 = vmatmul.mubr.bf16.vlgmr.msra.gmra.mrb[8].mxu0 %v14043_v34  ;;  %v11349_v34 = vld [vmem:[%s15549_s3 + $0x7cc] ss:$12 sps:$4 sm:$0xff]  }
 0x3b7   :  { %6724 = vmatmul.mubr.bf16.vlgmr.msra.gmra.mrb[44].mxu1 %v14348_v13  ;;  %6276 = vmatpush1.bf16.msra.mxu0 %v11338_v15  ;;  %v11394_v15 = vld [vmem:[%s15549_s3 + $0x934] ss:$12 sps:$4 sm:$0xff]  }
 0x3b8   :  { %6307 = vmatprep.mubr.bf16.mxu0 %v14051_v48  ;;  %6277 = vmatprep.subr.bf16.mxu0 %v11343_v52  ;;  %v11347_v48 = vld [vmem:[%s15549_s3 + $0x7c8] ss:$12 sps:$4 sm:$0xff]   ;;  %v11392_v52 = vld [vmem:[%s15549_s3 + $0x930] ss:$12 sps:$4 sm:$0xff]  }
 0x3bb   :  { %6278 = vmatpush1.bf16.msra.mxu0 %v11341_v20  ;;  %v11400_v20 = vld [vmem:[%s15549_s3 + $0x964] ss:$12 sps:$4 sm:$0xff]  }
 0x3bc   :  { %6279 = vmatprep.subr.bf16.mxu0 %v11346_v41  ;;  %v11398_v41 = vld [vmem:[%s15549_s3 + $0x960] ss:$12 sps:$4 sm:$0xff]  }
 0x3bf   :  { %6280 = vmatpush1.bf16.msra.mxu0 %v11344_v43  ;;  %v11403_v43 = vld [vmem:[%s15549_s3 + $0x97c] ss:$12 sps:$4 sm:$0xff]  }
 0x3c0   :  { %6281 = vmatprep.subr.bf16.mxu0 %v11349_v34  ;;  %v11401_v34 = vld [vmem:[%s15549_s3 + $0x978] ss:$12 sps:$4 sm:$0xff]  }
 0x3c3   :  { %6282 = vmatpush1.bf16.msra.mxu0 %v11347_v48  ;;  %v11406_v48 = vld [vmem:[%s15549_s3 + $0x994] ss:$12 sps:$4 sm:$0xff]  }
 0x3c4   :  { %6283 = vmatprep.subr.bf16.mxu0 %v11352_v44 }
 0x3c7   :  { %6284 = vmatpush1.bf16.msra.mxu0 %v11350_v19 }
 0x3c8   :  { %6285 = vmatprep.subr.bf16.mxu0 %v11355_v46 }
 0x3c9   :  { %v10093_v58 = vpop.f32.mrb[20].mxu1 }
 0x3ca   :  { %v10094_v56 = vpop.f32.mrb[21].mxu1 }
 0x3cb   :  { %6286 = vmatpush1.bf16.msra.mxu0 %v11353_v54  ;;  %v10095_v7 = vadd.f32 %v10094_v56, %v10093_v58  ;;  %v10096_v50 = vpop.f32.mrb[22].mxu1  ;;  %v11404_v54 = vld [vmem:[%s15549_s3 + $0x990] ss:$12 sps:$4 sm:$0xff]   ;;  %v11409_v58 = vld [vmem:[%s15549_s3 + $0x9ac] ss:$12 sps:$4 sm:$0xff]  }
 0x3cc   :  { %v10097_v51 = vpop.f32.mrb[23].mxu1  ;;  %6287 = vmatprep.subr.bf16.mxu0 %v11358_v53 }
 0x3cd   :  { %v6480_v61 = vadd.f32 %v10095_v7, %v6439_v0  ;;  %v10098_v3 = vadd.f32 %v10097_v51, %v10096_v50  ;;  %v11407_v50 = vld [vmem:[%s15549_s3 + $0x9a8] ss:$12 sps:$4 sm:$0xff]   ;;  %v11410_v51 = vld [vmem:[%s15549_s3 + $0x9c0] ss:$12 sps:$4 sm:$0xff]  }
 0x3cf   :  { %v6483_v62 = vadd.f32 %v10098_v3, %v6442_v55  ;;  %6288 = vmatpush1.bf16.msra.mxu0 %v11356_v27  ;;  %v11412_v27 = vld [vmem:[%s15549_s3 + $0x9c4] ss:$12 sps:$4 sm:$0xff]  }
 0x3d0   :  { %6289 = vmatprep.subr.bf16.mxu0 %v11361_v60  ;;  %v11415_v60 = vld [vmem:[%s15549_s3 + $0x9dc] ss:$12 sps:$4 sm:$0xff]   ;;  %v11413_v55 = vld [vmem:[%s15549_s3 + $0x9d8] ss:$12 sps:$4 sm:$0xff]  }
 0x3d1   :  { %v11416_v3 = vld [vmem:[%s15549_s3 + $0x9f0] ss:$12 sps:$4 sm:$0xff]  }
 0x3d3   :  { %6290 = vmatpush1.bf16.msra.mxu0 %v11359_v42  ;;  %v11419_v42 = vld [vmem:[%s15549_s3 + $0xa08] ss:$12 sps:$4 sm:$0xff]  }
 0x3d4   :  { %6291 = vmatprep.subr.bf16.mxu0 %v11364_v63  ;;  %v11482_v63 = vld [vmem:[%s15551_s5] ss:$8 sps:$4 sm:$0xff]  }
 0x3d7   :  { %6292 = vmatpush1.bf16.msra.mxu0 %v11362_v8  ;;  %v11484_v8 = vld [vmem:[%s15551_s5 + $0x4] ss:$8 sps:$4 sm:$0xff]  }
 0x3d8   :  { %6293 = vmatprep.subr.bf16.mxu0 %v11367_v25  ;;  %v11424_v25 = vld [vmem:[%s15549_s3 + $0xa24] ss:$12 sps:$4 sm:$0xff]   ;;  %7745 = vmatprep.subr.bf16.mxu1 %v11484_v8  ;;  %v11458_v8 = vld [vmem:[%s15549_s3 + $0xb40] ss:$12 sps:$4 sm:$0xff]  }
 0x3d9   :  { %7746 = vmatpush1.bf16.msra.mxu1 %v11482_v63  ;;  %v11460_v63 = vld [vmem:[%s15549_s3 + $0xb44] ss:$12 sps:$4 sm:$0xff]  }
 0x3db   :  { %6294 = vmatpush1.bf16.msra.mxu0 %v11365_v10  ;;  %v11487_v10 = vld [vmem:[%s15551_s5 + $0x14] ss:$8 sps:$4 sm:$0xff]  }
 0x3dc   :  { %6295 = vmatprep.subr.bf16.mxu0 %v11370_v45  ;;  %v11485_v45 = vld [vmem:[%s15551_s5 + $0x10] ss:$8 sps:$4 sm:$0xff]   ;;  %7747 = vmatprep.subr.bf16.mxu1 %v11487_v10 }
 0x3dd   :  { %7748 = vmatpush1.bf16.msra.mxu1 %v11485_v45  ;;  %v11461_v10 = vld [vmem:[%s15549_s3 + $0xb58] ss:$12 sps:$4 sm:$0xff]   ;;  %v11466_v45 = vld [vmem:[%s15549_s3 + $0xb74] ss:$12 sps:$4 sm:$0xff]  }
 0x3df   :  { %6296 = vmatpush1.bf16.msra.mxu0 %v11368_v47  ;;  %v11422_v47 = vld [vmem:[%s15549_s3 + $0xa20] ss:$12 sps:$4 sm:$0xff]  }
 0x3e0   :  { %6297 = vmatprep.subr.bf16.mxu0 %v11373_v12  ;;  %v11490_v12 = vld [vmem:[%s15551_s5 + $0x24] ss:$8 sps:$4 sm:$0xff]  }
 0x3e1   :  { %7749 = vmatprep.subr.bf16.mxu1 %v11490_v12  ;;  %v11469_v12 = vld [vmem:[%s15549_s3 + $0xb8c] ss:$12 sps:$4 sm:$0xff]  }
 0x3e3   :  { %6298 = vmatpush1.bf16.msra.mxu0 %v11371_v16  ;;  %v11427_v16 = vld [vmem:[%s15549_s3 + $0xa3c] ss:$12 sps:$4 sm:$0xff]  }
 0x3e4   :  { %6299 = vmatprep.subr.bf16.mxu0 %v11376_v22  ;;  %v11488_v22 = vld [vmem:[%s15551_s5 + $0x20] ss:$8 sps:$4 sm:$0xff]  }
 0x3e5   :  { %7750 = vmatpush1.bf16.msra.mxu1 %v11488_v22  ;;  %v11472_v22 = vld [vmem:[%s15549_s3 + $0xba4] ss:$12 sps:$4 sm:$0xff]  }
 0x3e7   :  { %6300 = vmatpush1.bf16.msra.mxu0 %v11374_v23  ;;  %v11425_v23 = vld [vmem:[%s15549_s3 + $0xa38] ss:$12 sps:$4 sm:$0xff]  }
 0x3e8   :  { %6301 = vmatprep.subr.bf16.mxu0 %v11379_v24  ;;  %v11493_v24 = vld [vmem:[%s15551_s5 + $0x34] ss:$8 sps:$4 sm:$0xff]  }
 0x3e9   :  { %v10115_v28 = vpop.f32.mrb[24].mxu1  ;;  %7751 = vmatprep.subr.bf16.mxu1 %v11493_v24  ;;  %v11475_v24 = vld [vmem:[%s15549_s3 + $0xbbc] ss:$12 sps:$4 sm:$0xff]  }
 0x3ea   :  { %v10116_v29 = vpop.f32.mrb[25].mxu1 }
 0x3eb   :  { %v10117_v59 = vadd.f32 %v10116_v29, %v10115_v28  ;;  %6302 = vmatpush1.bf16.msra.mxu0 %v11377_v26  ;;  %v10118_v30 = vpop.f32.mrb[26].mxu1  ;;  %v11430_v26 = vld [vmem:[%s15549_s3 + $0xa54] ss:$12 sps:$4 sm:$0xff]   ;;  %v11491_v28 = vld [vmem:[%s15551_s5 + $0x30] ss:$8 sps:$4 sm:$0xff]  }
 0x3ec   :  { %v10119_v17 = vpop.f32.mrb[27].mxu1  ;;  %6303 = vmatprep.subr.bf16.mxu0 %v11382_v14  ;;  %7752 = vmatpush1.bf16.msra.mxu1 %v11491_v28 }
 0x3ed   :  { %v6521_v35 = vadd.f32 %v10117_v59, %v6480_v61  ;;  %v10120_v36 = vadd.f32 %v10119_v17, %v10118_v30  ;;  %v11418_v61 = vld [vmem:[%s15549_s3 + $0x9f4] ss:$12 sps:$4 sm:$0xff]   ;;  %v11428_v59 = vld [vmem:[%s15549_s3 + $0xa50] ss:$12 sps:$4 sm:$0xff]   ;;  %v11496_v30 = vld [vmem:[%s15551_s5 + $0x44] ss:$8 sps:$4 sm:$0xff]  }
 0x3ee   :  { %7753 = vmatprep.subr.bf16.mxu1 %v11496_v30 }
 0x3ef   :  { %v6524_v11 = vadd.f32 %v10120_v36, %v6483_v62  ;;  %6304 = vmatpush1.bf16.msra.mxu0 %v11380_v31  ;;  %v11421_v62 = vld [vmem:[%s15549_s3 + $0xa0c] ss:$12 sps:$4 sm:$0xff]  }
 0x3f0   :  { %6305 = vmatprep.subr.bf16.mxu0 %v11385_v33  ;;  %v11433_v33 = vld [vmem:[%s15549_s3 + $0xa6c] ss:$12 sps:$4 sm:$0xff]  }
 0x3f3   :  { %6306 = vmatpush1.bf16.msra.mxu0 %v11383_v37  ;;  %v11494_v37 = vld [vmem:[%s15551_s5 + $0x40] ss:$8 sps:$4 sm:$0xff]  }
 0x3f4   :  { %6318 = vmatprep.subr.bf16.mxu0 %v11388_v5  ;;  %v11431_v5 = vld [vmem:[%s15549_s3 + $0xa68] ss:$12 sps:$4 sm:$0xff]   ;;  %7754 = vmatpush1.bf16.msra.mxu1 %v11494_v37 }
 0x3f6   :  { %6308 = vmatmul.mubr.bf16.vlgmr.msra.gmra.mrb[8].mxu0 %v14145_v18  ;;  %v11397_v18 = vld [vmem:[%s15549_s3 + $0x94c] ss:$12 sps:$4 sm:$0xff]  }
 0x3f7   :  { %6319 = vmatpush1.bf16.msra.mxu0 %v11386_v39  ;;  %6350 = vmatprep.mubr.bf16.mxu0 %v14155_v21  ;;  %v11395_v21 = vld [vmem:[%s15549_s3 + $0x948] ss:$12 sps:$4 sm:$0xff]  }
 0x3f8   :  { %6320 = vmatprep.subr.bf16.mxu0 %v11391_v32  ;;  %v11499_v39 = vld [vmem:[%s15551_s5 + $0x54] ss:$8 sps:$4 sm:$0xff]  }
 0x3f9   :  { %7755 = vmatprep.subr.bf16.mxu1 %v11499_v39 }
 0x3fb   :  { %6321 = vmatpush1.bf16.msra.mxu0 %v11389_v40  ;;  %v11436_v40 = vld [vmem:[%s15549_s3 + $0xa84] ss:$12 sps:$4 sm:$0xff]  }
 0x3fc   :  { %6322 = vmatprep.subr.bf16.mxu0 %v11394_v15  ;;  %v11497_v15 = vld [vmem:[%s15551_s5 + $0x50] ss:$8 sps:$4 sm:$0xff]  }
 0x3fd   :  { %7756 = vmatpush1.bf16.msra.mxu1 %v11497_v15 }
 0x3ff   :  { %6323 = vmatpush1.bf16.msra.mxu0 %v11392_v52  ;;  %v11434_v52 = vld [vmem:[%s15549_s3 + $0xa80] ss:$12 sps:$4 sm:$0xff]  }
 0x400   :  { %6324 = vmatprep.subr.bf16.mxu0 %v11397_v18  ;;  %v11439_v18 = vld [vmem:[%s15549_s3 + $0xa9c] ss:$12 sps:$4 sm:$0xff]  }
 0x403   :  { %6325 = vmatpush1.bf16.msra.mxu0 %v11395_v21  ;;  %v11502_v21 = vld [vmem:[%s15551_s5 + $0x64] ss:$8 sps:$4 sm:$0xff]  }
 0x404   :  { %6326 = vmatprep.subr.bf16.mxu0 %v11400_v20  ;;  %v11500_v20 = vld [vmem:[%s15551_s5 + $0x60] ss:$8 sps:$4 sm:$0xff]   ;;  %7757 = vmatprep.subr.bf16.mxu1 %v11502_v21 }
 0x405   :  { %7758 = vmatpush1.bf16.msra.mxu1 %v11500_v20 }
 0x407   :  { %6327 = vmatpush1.bf16.msra.mxu0 %v11398_v41  ;;  %v11437_v41 = vld [vmem:[%s15549_s3 + $0xa98] ss:$12 sps:$4 sm:$0xff]  }
 0x408   :  { %6328 = vmatprep.subr.bf16.mxu0 %v11403_v43  ;;  %v11505_v43 = vld [vmem:[%s15551_s5 + $0x74] ss:$8 sps:$4 sm:$0xff]  }
 0x409   :  { %v10137_v44 = vpop.f32.mrb[28].mxu1  ;;  %7759 = vmatprep.subr.bf16.mxu1 %v11505_v43 }
 0x40a   :  { %v10138_v19 = vpop.f32.mrb[29].mxu1 }
 0x40b   :  { %v10139_v46 = vadd.f32 %v10138_v19, %v10137_v44  ;;  %6329 = vmatpush1.bf16.msra.mxu0 %v11401_v34  ;;  %v10140_v49 = vpop.f32.mrb[30].mxu1  ;;  %v11503_v34 = vld [vmem:[%s15551_s5 + $0x70] ss:$8 sps:$4 sm:$0xff]   ;;  %v11506_v19 = vld [vmem:[%s15551_s5 + $0x80] ss:$8 sps:$4 sm:$0xff]  }
 0x40c   :  { %v10141_v53 = vpop.f32.mrb[31].mxu1  ;;  %6330 = vmatprep.subr.bf16.mxu0 %v11406_v48  ;;  %v11508_v48 = vld [vmem:[%s15551_s5 + $0x84] ss:$8 sps:$4 sm:$0xff]   ;;  %7760 = vmatpush1.bf16.msra.mxu1 %v11503_v34 }
 0x40d   :  { %v6562_v56 = vadd.f32 %v10139_v46, %v6521_v35  ;;  %v10142_v0 = vadd.f32 %v10141_v53, %v10140_v49  ;;  %v11445_v44 = vld [vmem:[%s15549_s3 + $0xacc] ss:$12 sps:$4 sm:$0xff]   ;;  %v11443_v46 = vld [vmem:[%s15549_s3 + $0xac8] ss:$12 sps:$4 sm:$0xff]   ;;  %7761 = vmatprep.subr.bf16.mxu1 %v11508_v48  ;;  %v11448_v49 = vld [vmem:[%s15549_s3 + $0xae4] ss:$12 sps:$4 sm:$0xff]  }
 0x40e   :  { %v11451_v53 = vld [vmem:[%s15549_s3 + $0xafc] ss:$12 sps:$4 sm:$0xff]  }
 0x40f   :  { %v6565_v7 = vadd.f32 %v10142_v0, %v6524_v11  ;;  %6331 = vmatpush1.bf16.msra.mxu0 %v11404_v54  ;;  %v11446_v54 = vld [vmem:[%s15549_s3 + $0xae0] ss:$12 sps:$4 sm:$0xff]  }
 0x410   :  { %6332 = vmatprep.subr.bf16.mxu0 %v11409_v58  ;;  %7762 = vmatpush1.bf16.msra.mxu1 %v11506_v19  ;;  %v11449_v58 = vld [vmem:[%s15549_s3 + $0xaf8] ss:$12 sps:$4 sm:$0xff]  }
 0x413   :  { %6333 = vmatpush1.bf16.msra.mxu0 %v11407_v50  ;;  %v11452_v50 = vld [vmem:[%s15549_s3 + $0xb10] ss:$12 sps:$4 sm:$0xff]  }
 0x414   :  { %6334 = vmatprep.subr.bf16.mxu0 %v11412_v27 }
 0x417   :  { %6335 = vmatpush1.bf16.msra.mxu0 %v11410_v51 }
 0x418   :  { %6336 = vmatprep.subr.bf16.mxu0 %v11415_v60  ;;  %v11457_v60 = vld [vmem:[%s15549_s3 + $0xb2c] ss:$12 sps:$4 sm:$0xff]  }
 0x41b   :  { %6337 = vmatpush1.bf16.msra.mxu0 %v11413_v55 }
 0x41c   :  { %6338 = vmatprep.subr.bf16.mxu0 %v11418_v61 }
 0x41f   :  { %6339 = vmatpush1.bf16.msra.mxu0 %v11416_v3 }
 0x420   :  { %6340 = vmatprep.subr.bf16.mxu0 %v11421_v62  ;;  %v11455_v62 = vld [vmem:[%s15549_s3 + $0xb28] ss:$12 sps:$4 sm:$0xff]  }
 0x423   :  { %6341 = vmatpush1.bf16.msra.mxu0 %v11419_v42 }
 0x424   :  { %6342 = vmatprep.subr.bf16.mxu0 %v11424_v25  ;;  %v11463_v25 = vld [vmem:[%s15549_s3 + $0xb5c] ss:$12 sps:$4 sm:$0xff]  }
 0x427   :  { %6343 = vmatpush1.bf16.msra.mxu0 %v11422_v47  ;;  %v11464_v47 = vld [vmem:[%s15549_s3 + $0xb70] ss:$12 sps:$4 sm:$0xff]  }
 0x428   :  { %6344 = vmatprep.subr.bf16.mxu0 %v11427_v16  ;;  %v11467_v16 = vld [vmem:[%s15549_s3 + $0xb88] ss:$12 sps:$4 sm:$0xff]  }
 0x42a   :  { %v10159_v14 = vpop.f32.mrb[32].mxu1 }
 0x42b   :  { %v10160_v29 = vpop.f32.mrb[33].mxu1  ;;  %6345 = vmatpush1.bf16.msra.mxu0 %v11425_v23  ;;  %v11470_v23 = vld [vmem:[%s15549_s3 + $0xba0] ss:$12 sps:$4 sm:$0xff]  }
 0x42c   :  { %v10161_v31 = vadd.f32 %v10160_v29, %v10159_v14  ;;  %v10162_v17 = vpop.f32.mrb[34].mxu1  ;;  %6346 = vmatprep.subr.bf16.mxu0 %v11430_v26  ;;  %v11473_v26 = vld [vmem:[%s15549_s3 + $0xbb8] ss:$12 sps:$4 sm:$0xff]   ;;  %v11478_v14 = vld [vmem:[%s15549_s3 + $0xbd4] ss:$12 sps:$4 sm:$0xff]  }
 0x42d   :  { %v10163_v35 = vpop.f32.mrb[35].mxu1 }
 0x42e   :  { %v6603_v36 = vadd.f32 %v10161_v31, %v6562_v56  ;;  %v10164_v11 = vadd.f32 %v10163_v35, %v10162_v17  ;;  %v11454_v56 = vld [vmem:[%s15549_s3 + $0xb14] ss:$12 sps:$4 sm:$0xff]   ;;  %v11481_v17 = vld [vmem:[%s15549_s3 + $0xbec] ss:$12 sps:$4 sm:$0xff]  }
 0x42f   :  { %6347 = vmatpush1.bf16.msra.mxu0 %v11428_v59  ;;  %v11476_v59 = vld [vmem:[%s15549_s3 + $0xbd0] ss:$12 sps:$4 sm:$0xff]  }
 0x430   :  { %v6606_v32 = vadd.f32 %v10164_v11, %v6565_v7  ;;  %6348 = vmatprep.subr.bf16.mxu0 %v11433_v33  ;;  %v11479_v11 = vld [vmem:[%s15549_s3 + $0xbe8] ss:$12 sps:$4 sm:$0xff]  }
 0x433   :  { %6349 = vmatpush1.bf16.msra.mxu0 %v11431_v5 }
 0x434   :  { %6361 = vmatprep.subr.bf16.mxu0 %v11436_v40 }
 0x436   :  { %6351 = vmatmul.mubr.bf16.vlgmr.msra.gmra.mrb[8].mxu0 %v14249_v57  ;;  %v11442_v57 = vld [vmem:[%s15549_s3 + $0xab4] ss:$12 sps:$4 sm:$0xff]  }
 0x437   :  { %6362 = vmatpush1.bf16.msra.mxu0 %v11434_v52  ;;  %6393 = vmatprep.mubr.bf16.mxu0 %v14257_v2  ;;  %v11440_v2 = vld [vmem:[%s15549_s3 + $0xab0] ss:$12 sps:$4 sm:$0xff]  }
 0x438   :  { %6363 = vmatprep.subr.bf16.mxu0 %v11439_v18 }
 0x43b   :  { %6364 = vmatpush1.bf16.msra.mxu0 %v11437_v41 }
 0x43c   :  { %6365 = vmatprep.subr.bf16.mxu0 %v11442_v57 }
 0x43f   :  { %6366 = vmatpush1.bf16.msra.mxu0 %v11440_v2 }
 0x440   :  { %6367 = vmatprep.subr.bf16.mxu0 %v11445_v44 }
 0x443   :  { %6368 = vmatpush1.bf16.msra.mxu0 %v11443_v46 }
 0x444   :  { %6369 = vmatprep.subr.bf16.mxu0 %v11448_v49 }
 0x447   :  { %6370 = vmatpush1.bf16.msra.mxu0 %v11446_v54 }
 0x448   :  { %6371 = vmatprep.subr.bf16.mxu0 %v11451_v53 }
 0x44a   :  { %v10181_v0 = vpop.f32.mrb[36].mxu1 }
 0x44b   :  { %v10182_v7 = vpop.f32.mrb[37].mxu1  ;;  %6372 = vmatpush1.bf16.msra.mxu0 %v11449_v58 }
 0x44c   :  { %v10183_v27 = vadd.f32 %v10182_v7, %v10181_v0  ;;  %v10184_v51 = vpop.f32.mrb[38].mxu1  ;;  %6373 = vmatprep.subr.bf16.mxu0 %v11454_v56 }
 0x44d   :  { %v10185_v55 = vpop.f32.mrb[39].mxu1 }
 0x44e   :  { %v6644_v61 = vadd.f32 %v10183_v27, %v6603_v36  ;;  %v10186_v3 = vadd.f32 %v10185_v55, %v10184_v51  ;;  %v11511_v27 = vld [vmem:[%s15551_s5 + $0x94] ss:$8 sps:$4 sm:$0xff]   ;;  %v11509_v51 = vld [vmem:[%s15551_s5 + $0x90] ss:$8 sps:$4 sm:$0xff]   ;;  %v11512_v55 = vld [vmem:[%s15551_s5 + $0xa0] ss:$8 sps:$4 sm:$0xff]  }
 0x44f   :  { %6374 = vmatpush1.bf16.msra.mxu0 %v11452_v50  ;;  %7763 = vmatprep.subr.bf16.mxu1 %v11511_v27 }
 0x450   :  { %v6647_v42 = vadd.f32 %v10186_v3, %v6606_v32  ;;  %6375 = vmatprep.subr.bf16.mxu0 %v11457_v60  ;;  %7764 = vmatpush1.bf16.msra.mxu1 %v11509_v51  ;;  %v11514_v60 = vld [vmem:[%s15551_s5 + $0xa4] ss:$8 sps:$4 sm:$0xff]   ;;  %v11515_v3 = vld [vmem:[%s15551_s5 + $0xb0] ss:$8 sps:$4 sm:$0xff]  }
 0x451   :  { %7765 = vmatprep.subr.bf16.mxu1 %v11514_v60 }
 0x453   :  { %6376 = vmatpush1.bf16.msra.mxu0 %v11455_v62  ;;  %v11520_v62 = vld [vmem:[%s15551_s5 + $0xc4] ss:$8 sps:$4 sm:$0xff]  }
 0x454   :  { %6377 = vmatprep.subr.bf16.mxu0 %v11460_v63  ;;  %7766 = vmatpush1.bf16.msra.mxu1 %v11512_v55  ;;  %v11523_v63 = vld [vmem:[%s15551_s5 + $0xd4] ss:$8 sps:$4 sm:$0xff]  }
 0x457   :  { %6378 = vmatpush1.bf16.msra.mxu0 %v11458_v8  ;;  %v11521_v8 = vld [vmem:[%s15551_s5 + $0xd0] ss:$8 sps:$4 sm:$0xff]  }
 0x458   :  { %6379 = vmatprep.subr.bf16.mxu0 %v11463_v25  ;;  %v11524_v25 = vld [vmem:[%s15551_s5 + $0xe0] ss:$8 sps:$4 sm:$0xff]  }
 0x45b   :  { %6380 = vmatpush1.bf16.msra.mxu0 %v11461_v10  ;;  %v11526_v10 = vld [vmem:[%s15551_s5 + $0xe4] ss:$8 sps:$4 sm:$0xff]  }
 0x45c   :  { %6381 = vmatprep.subr.bf16.mxu0 %v11466_v45  ;;  %v11529_v45 = vld [vmem:[%s15551_s5 + $0xf4] ss:$8 sps:$4 sm:$0xff]  }
 0x45f   :  { %6382 = vmatpush1.bf16.msra.mxu0 %v11464_v47  ;;  %v11527_v47 = vld [vmem:[%s15551_s5 + $0xf0] ss:$8 sps:$4 sm:$0xff]  }
 0x460   :  { %6383 = vmatprep.subr.bf16.mxu0 %v11469_v12  ;;  %v11532_v12 = vld [vmem:[%s15551_s5 + $0x104] ss:$8 sps:$4 sm:$0xff]  }
 0x463   :  { %6384 = vmatpush1.bf16.msra.mxu0 %v11467_v16  ;;  %v4000_v16 = vrot.slane %v14377_v1, %v13430_v38 }
 0x464   :  { %6385 = vmatprep.subr.bf16.mxu0 %v11472_v22  ;;  %v4004_v22 = vrot.slane %v14377_v1, %v13433_v9 }
 0x467   :  { %6386 = vmatpush1.bf16.msra.mxu0 %v11470_v23 }
 0x468   :  { %6387 = vmatprep.subr.bf16.mxu0 %v11475_v24 }
 0x46a   :  { %v10203_v28 = vpop.f32.mrb[40].mxu1 }
 0x46b   :  { %v10204_v29 = vpop.f32.mrb[41].mxu1  ;;  %6388 = vmatpush1.bf16.msra.mxu0 %v11473_v26 }
 0x46c   :  { %v10205_v30 = vadd.f32 %v10204_v29, %v10203_v28  ;;  %v10206_v31 = vpop.f32.mrb[42].mxu1  ;;  %6389 = vmatprep.subr.bf16.mxu0 %v11478_v14 }
 0x46d   :  { %v10207_v33 = vpop.f32.mrb[43].mxu1 }
 0x46e   :  { %v6685_v35 = vadd.f32 %v10205_v30, %v6644_v61  ;;  %v10208_v36 = vadd.f32 %v10207_v33, %v10206_v31  ;;  %v11517_v61 = vld [vmem:[%s15551_s5 + $0xb4] ss:$8 sps:$4 sm:$0xff]  }
 0x46f   :  { %6390 = vmatpush1.bf16.msra.mxu0 %v11476_v59  ;;  %7767 = vmatprep.subr.bf16.mxu1 %v11517_v61 }
 0x470   :  { %v6688_v37 = vadd.f32 %v10208_v36, %v6647_v42  ;;  %6391 = vmatprep.subr.bf16.mxu0 %v11481_v17  ;;  %7768 = vmatpush1.bf16.msra.mxu1 %v11515_v3  ;;  %v11518_v42 = vld [vmem:[%s15551_s5 + $0xc0] ss:$8 sps:$4 sm:$0xff]  }
 0x471   :  { %7769 = vmatprep.subr.bf16.mxu1 %v11520_v62 }
 0x473   :  { %6392 = vmatpush1.bf16.msra.mxu0 %v11479_v11 }
 0x474   :  { %7770 = vmatpush1.bf16.msra.mxu1 %v11518_v42  ;;  %v11530_v42 = vld [vmem:[%s15551_s5 + $0x100] ss:$8 sps:$4 sm:$0xff]  }
 0x475   :  { %7771 = vmatprep.subr.bf16.mxu1 %v11523_v63 }
 0x476   :  { %6394 = vmatmul.mubr.bf16.vlgmr.msra.gmra.mrb[8].mxu0 %v14348_v13 }
 0x478   :  { %7772 = vmatpush1.bf16.msra.mxu1 %v11521_v8  ;;  %v11535_v8 = vld [vmem:[%s15551_s5 + $0x114] ss:$8 sps:$4 sm:$0xff]  }
 0x479   :  { %7773 = vmatprep.subr.bf16.mxu1 %v11526_v10  ;;  %v11533_v10 = vld [vmem:[%s15551_s5 + $0x110] ss:$8 sps:$4 sm:$0xff]  }
 0x47c   :  { %7774 = vmatpush1.bf16.msra.mxu1 %v11524_v25 }
 0x47d   :  { %7775 = vmatprep.subr.bf16.mxu1 %v11529_v45  ;;  %v11538_v45 = vld [vmem:[%s15551_s5 + $0x124] ss:$8 sps:$4 sm:$0xff]  }
 0x480   :  { %7776 = vmatpush1.bf16.msra.mxu1 %v11527_v47  ;;  %v11536_v47 = vld [vmem:[%s15551_s5 + $0x120] ss:$8 sps:$4 sm:$0xff]  }
 0x481   :  { %7786 = vmatprep.subr.bf16.mxu1 %v11532_v12  ;;  %v11541_v12 = vld [vmem:[%s15551_s5 + $0x134] ss:$8 sps:$4 sm:$0xff]  }
 0x48a   :  { %v10225_v5 = vpop.f32.mrb[44].mxu1 }
 0x48b   :  { %v10226_v39 = vpop.f32.mrb[45].mxu1 }
 0x48c   :  { %v10227_v32 = vadd.f32 %v10226_v39, %v10225_v5  ;;  %v10228_v40 = vpop.f32.mrb[46].mxu1 }
 0x48d   :  { %v10229_v15 = vpop.f32.mrb[47].mxu1 }
 0x48e   :  { %v6726_v52 = vadd.f32 %v10227_v32, %v6685_v35  ;;  %v10230_v18 = vadd.f32 %v10229_v15, %v10228_v40 }
 0x490   :  { %v6734_v21 = vmax.f32 %v6726_v52, 0.0  ;;  %v6729_v20 = vadd.f32 %v10230_v18, %v6688_v37 }
 0x492   :  { %6740 = vst [vmem:[#allocation5 + $0x10] sm:$0xff] %v6734_v21  ;;  %v6737_v41 = vmax.f32 %v6729_v20, 0.0 }
 0x494   :  { %6743 = vst [vmem:[#allocation5 + $0x28] sm:$0xf] %v6737_v41 }
 0x499   :  { %v6746_v43 = vld [vmem:[#allocation5 + $0x10] sm:$0xf]  ;;  %v6782_v44 = vld [vmem:[#allocation5 + $0x10] sm:$0xc0] }
 0x49a   :  { %v6752_v57 = vld [vmem:[#allocation5 + $0x10] sm:$0x1e]  ;;  %6749 = vst [vmem:[#allocation6 + $0x10] sm:$0xf] %v6746_v43  ;;  %v6810_v13 = vld [vmem:[#allocation5 + $0x10] sm:$0x80] }
 0x49b   :  { %v6767_v34 = vld [vmem:[#allocation5 + $0x10] sm:$0x3c]  ;;  %v6758_v2 = vrot.slane %v6752_v57, 1  ;;  %v6785_v19 = vld [vmem:[#allocation5 + $0x28] sm:$0x3]  ;;  %v6799_v49 = vrot.slane %v6782_v44, 2 }
 0x49c   :  { %v6773_v48 = vrot.slane %v6767_v34, 2  ;;  %v6813_v46 = vld [vmem:[#allocation5 + $0x28] sm:$0x7]  ;;  %v6827_v54 = vrot.slane %v6810_v13, 3  ;;  %v6800_v53 = vrot.slane %v6785_v19, 2 }
 0x49d   :  { %6764 = vst [vmem:[#allocation6 + $0x28] sm:$0xf] %v6758_v2  ;;  %v6828_v58 = vrot.slane %v6813_v46, 3  ;;  %v6838_v56 = vld [vmem:[#allocation5 + $0x28] sm:$0xf] }
 0x49e   :  { %6779 = vst [vmem:[#allocation6 + $0x40] sm:$0xf] %v6773_v48  ;;  %v6844_v0 = vrot.slane %v6838_v56, 4  ;;  %v6801_v7 = vsel %vm6792_vm1, %v6799_v49, %v6800_v53 }
 0x49f   :  { %v6829_v50 = vsel %vm6820_vm2, %v6827_v54, %v6828_v58  ;;  %6807 = vst [vmem:[#allocation6 + $0x10] sm:$0xf0] %v6801_v7 }
 0x4a0   :  { %6850 = vst [vmem:[#allocation6 + $0x40] sm:$0xf0] %v6844_v0  ;;  %6835 = vst [vmem:[#allocation6 + $0x28] sm:$0xf0] %v6829_v50 }
 0x549   :  { %v6395_v23 = vpop.f32.mrb[8].mxu0 }
 0x54a   :  { %v10255_v24 = vadd.f32 %v6395_v23, %v4000_v16  ;;  %v6397_v26 = vpop.f32.mrb[9].mxu0  ;;  %v11542_v23 = vld [vmem:[%s15551_s5 + $0x140] ss:$8 sps:$4 sm:$0xff]  }
 0x54b   :  { %v10256_v14 = vadd.f32 %v6397_v26, %v4004_v22  ;;  %v6399_v28 = vpop.f32.mrb[10].mxu0  ;;  %v11545_v26 = vld [vmem:[%s15551_s5 + $0x150] ss:$8 sps:$4 sm:$0xff]  }
 0x54c   :  { %v6732_v29 = vmax.f32 %v10255_v24, 0.0  ;;  %v10257_v59 = vadd.f32 %v6399_v28, %v4000_v16  ;;  %v6401_v30 = vpop.f32.mrb[11].mxu0  ;;  %v11539_v16 = vld [vmem:[%s15551_s5 + $0x130] ss:$8 sps:$4 sm:$0xff]   ;;  %v11547_v24 = vld [vmem:[%s15551_s5 + $0x154] ss:$8 sps:$4 sm:$0xff]  }
 0x54d   :  { %v6733_v31 = vmax.f32 %v10256_v14, 0.0  ;;  %v10258_v17 = vadd.f32 %v6401_v30, %v4004_v22  ;;  %v11544_v22 = vld [vmem:[%s15551_s5 + $0x144] ss:$8 sps:$4 sm:$0xff]   ;;  %v11548_v28 = vld [vmem:[%s15551_s5 + $0x160] ss:$8 sps:$4 sm:$0xff]  }
 0x54e   :  { %6738 = vst [vmem:[#allocation5] sm:$0xff] %v6732_v29  ;;  %v6735_v33 = vmax.f32 %v10257_v59, 0.0  ;;  %v11550_v14 = vld [vmem:[%s15551_s5 + $0x164] ss:$8 sps:$4 sm:$0xff]   ;;  %v11553_v29 = vld [vmem:[%s15551_s5 + $0x174] ss:$8 sps:$4 sm:$0xff]  }
 0x54f   :  { %6739 = vst [vmem:[#allocation5 + $0x8] sm:$0xff] %v6733_v31  ;;  %v6736_v35 = vmax.f32 %v10258_v17, 0.0  ;;  %v11551_v59 = vld [vmem:[%s15551_s5 + $0x170] ss:$8 sps:$4 sm:$0xff]   ;;  %v11556_v30 = vld [vmem:[%s15551_s5 + $0x184] ss:$8 sps:$4 sm:$0xff]  }
 0x550   :  { %6741 = vst [vmem:[#allocation5 + $0x18] sm:$0xf] %v6735_v33  ;;  %v11554_v31 = vld [vmem:[%s15551_s5 + $0x180] ss:$8 sps:$4 sm:$0xff]   ;;  %v11559_v17 = vld [vmem:[%s15551_s5 + $0x194] ss:$8 sps:$4 sm:$0xff]  }
 0x551   :  { %6742 = vst [vmem:[#allocation5 + $0x20] sm:$0xf] %v6736_v35  ;;  %v11557_v33 = vld [vmem:[%s15551_s5 + $0x190] ss:$8 sps:$4 sm:$0xff]   ;;  %v11562_v35 = vld [vmem:[%s15551_s5 + $0x1a4] ss:$8 sps:$4 sm:$0xff]  }
 0x555   :  { %v6744_v36 = vld [vmem:[#allocation5] sm:$0xf]  ;;  %v6780_v39 = vld [vmem:[#allocation5] sm:$0xc0] }
 0x556   :  { %v6750_v11 = vld [vmem:[#allocation5] sm:$0x1e]  ;;  %6747 = vst [vmem:[#allocation6] sm:$0xf] %v6744_v36  ;;  %v6808_v32 = vld [vmem:[#allocation5] sm:$0x80] }
 0x557   :  { %v6765_v37 = vld [vmem:[#allocation5] sm:$0x3c]  ;;  %v6756_v1 = vrot.slane %v6750_v11, 1  ;;  %v6745_v40 = vld [vmem:[#allocation5 + $0x8] sm:$0xf]  ;;  %v6793_v52 = vrot.slane %v6780_v39, 2 }
 0x558   :  { %v6771_v5 = vrot.slane %v6765_v37, 2  ;;  %v6751_v15 = vld [vmem:[#allocation5 + $0x8] sm:$0x1e]  ;;  %6748 = vst [vmem:[#allocation6 + $0x8] sm:$0xf] %v6745_v40  ;;  %v6821_v41 = vrot.slane %v6808_v32, 3 }
 0x559   :  { %6762 = vst [vmem:[#allocation6 + $0x18] sm:$0xf] %v6756_v1  ;;  %v6757_v18 = vrot.slane %v6751_v15, 1  ;;  %v6766_v21 = vld [vmem:[#allocation5 + $0x8] sm:$0x3c] }
 0x55a   :  { %6777 = vst [vmem:[#allocation6 + $0x30] sm:$0xf] %v6771_v5  ;;  %v6781_v20 = vld [vmem:[#allocation5 + $0x8] sm:$0xc0]  ;;  %v6772_v43 = vrot.slane %v6766_v21, 2 }
 0x55b   :  { %v6809_v57 = vld [vmem:[#allocation5 + $0x8] sm:$0x80]  ;;  %v6783_v34 = vld [vmem:[#allocation5 + $0x18] sm:$0x3]  ;;  %6763 = vst [vmem:[#allocation6 + $0x20] sm:$0xf] %v6757_v18 }
 0x55c   :  { %v6796_v2 = vrot.slane %v6781_v20, 2  ;;  %v6794_v48 = vrot.slane %v6783_v34, 2  ;;  %v6811_v44 = vld [vmem:[#allocation5 + $0x18] sm:$0x7]  ;;  %6778 = vst [vmem:[#allocation6 + $0x38] sm:$0xf] %v6772_v43 }
 0x55d   :  { %v6836_v13 = vld [vmem:[#allocation5 + $0x18] sm:$0xf]  ;;  %v6822_v19 = vrot.slane %v6811_v44, 3  ;;  %v6784_v49 = vld [vmem:[#allocation5 + $0x20] sm:$0x3]  ;;  %v6824_v53 = vrot.slane %v6809_v57, 3 }
 0x55e   :  { %v6842_v46 = vrot.slane %v6836_v13, 4  ;;  %v6812_v54 = vld [vmem:[#allocation5 + $0x20] sm:$0x7]  ;;  %v6795_v58 = vsel %vm6792_vm1, %v6793_v52, %v6794_v48  ;;  %v6797_v56 = vrot.slane %v6784_v49, 2  ;;  %v11565_v11 = vld [vmem:[%s15551_s5 + $0x1b4] ss:$8 sps:$4 sm:$0xff]  }
 0x55f   :  { %v6825_v0 = vrot.slane %v6812_v54, 3  ;;  %v6837_v7 = vld [vmem:[#allocation5 + $0x20] sm:$0xf]  ;;  %6805 = vst [vmem:[#allocation6] sm:$0xf0] %v6795_v58  ;;  %v6823_v27 = vsel %vm6820_vm2, %v6821_v41, %v6822_v19  ;;  %v6856_v41 = vld [vmem:[#allocation6 + $0x28] sm:$0xff] }
 0x560   :  { %6848 = vst [vmem:[#allocation6 + $0x30] sm:$0xf0] %v6842_v46  ;;  %v6843_v50 = vrot.slane %v6837_v7, 4  ;;  %v6798_v60 = vsel %vm6792_vm1, %v6796_v2, %v6797_v56  ;;  %6833 = vst [vmem:[#allocation6 + $0x18] sm:$0xf0] %v6823_v27  ;;  %v6853_v20 = vld [vmem:[#allocation6 + $0x10] sm:$0xff]  ;;  %v6865_v2 = vpack.c.bf16 %v6856_v41, %v6856_v41 }
 0x561   :  { %v6826_v51 = vsel %vm6820_vm2, %v6824_v53, %v6825_v0  ;;  %6806 = vst [vmem:[#allocation6 + $0x8] sm:$0xf0] %v6798_v60  ;;  %v11560_v36 = vld [vmem:[%s15551_s5 + $0x1a0] ss:$8 sps:$4 sm:$0xff]   ;;  %v11563_v37 = vld [vmem:[%s15551_s5 + $0x1b0] ss:$8 sps:$4 sm:$0xff]   ;;  %v6862_v57 = vpack.c.bf16 %v6853_v20, %v6853_v20 }
 0x562   :  { %6834 = vst [vmem:[#allocation6 + $0x20] sm:$0xf0] %v6826_v51  ;;  %6849 = vst [vmem:[#allocation6 + $0x38] sm:$0xf0] %v6843_v50  ;;  %v11568_v1 = vld [vmem:[%s15551_s5 + $0x1c4] ss:$8 sps:$4 sm:$0xff]  }
 0x563   :  { %v11566_v5 = vld [vmem:[%s15551_s5 + $0x1c0] ss:$8 sps:$4 sm:$0xff]   ;;  %v11571_v39 = vld [vmem:[%s15551_s5 + $0x1d4] ss:$8 sps:$4 sm:$0xff]   ;;  %v11569_v32 = vld [vmem:[%s15551_s5 + $0x1d0] ss:$8 sps:$4 sm:$0xff]  }
 0x564   :  { %v11574_v40 = vld [vmem:[%s15551_s5 + $0x1e4] ss:$8 sps:$4 sm:$0xff]   ;;  %v11572_v15 = vld [vmem:[%s15551_s5 + $0x1e0] ss:$8 sps:$4 sm:$0xff]   ;;  %v11577_v52 = vld [vmem:[%s15551_s5 + $0x1f4] ss:$8 sps:$4 sm:$0xff]  }
 0x565   :  { %v11575_v18 = vld [vmem:[%s15551_s5 + $0x1f0] ss:$8 sps:$4 sm:$0xff]   ;;  %v11580_v21 = vld [vmem:[%s15551_s5 + $0x204] ss:$8 sps:$4 sm:$0xff]   ;;  %v11578_v43 = vld [vmem:[%s15551_s5 + $0x200] ss:$8 sps:$4 sm:$0xff]  }
 0x566   :  { %v6851_v55 = vld [vmem:[#allocation6] sm:$0xff]  ;;  %v11586_v44 = vld [vmem:[%s15551_s5 + $0x224] ss:$8 sps:$4 sm:$0xff]   ;;  %v11584_v13 = vld [vmem:[%s15551_s5 + $0x220] ss:$8 sps:$4 sm:$0xff]  }
 0x567   :  { %v6854_v3 = vld [vmem:[#allocation6 + $0x18] sm:$0xff]  ;;  %v6860_v63 = vpack.c.bf16 %v6851_v55, %v6851_v55  ;;  %v11583_v34 = vld [vmem:[%s15551_s5 + $0x214] ss:$8 sps:$4 sm:$0xff]   ;;  %v11581_v48 = vld [vmem:[%s15551_s5 + $0x210] ss:$8 sps:$4 sm:$0xff]  }
 0x568   :  { %v6852_v61 = vld [vmem:[#allocation6 + $0x8] sm:$0xff]  ;;  %v6863_v25 = vpack.c.bf16 %v6854_v3, %v6854_v3  ;;  %v11592_v49 = vld [vmem:[%s15551_s5 + $0x244] ss:$8 sps:$4 sm:$0xff]   ;;  %v11590_v54 = vld [vmem:[%s15551_s5 + $0x240] ss:$8 sps:$4 sm:$0xff]  }
 0x569   :  { %v6861_v62 = vpack.c.bf16 %v6852_v61, %v6852_v61  ;;  %v11589_v19 = vld [vmem:[%s15551_s5 + $0x234] ss:$8 sps:$4 sm:$0xff]   ;;  %v11587_v46 = vld [vmem:[%s15551_s5 + $0x230] ss:$8 sps:$4 sm:$0xff]   ;;  %v11598_v56 = vld [vmem:[%s15551_s5 + $0x264] ss:$8 sps:$4 sm:$0xff]  }
 0x56a   :  { %v11595_v53 = vld [vmem:[%s15551_s5 + $0x254] ss:$8 sps:$4 sm:$0xff]   ;;  %v11593_v58 = vld [vmem:[%s15551_s5 + $0x250] ss:$8 sps:$4 sm:$0xff]   ;;  %v11596_v0 = vld [vmem:[%s15551_s5 + $0x260] ss:$8 sps:$4 sm:$0xff]  }
 0x56b   :  { %7777 = vmatprep.mubr.bf16.mxu1 %v6861_v62  ;;  %v11601_v7 = vld [vmem:[%s15551_s5 + $0x274] ss:$8 sps:$4 sm:$0xff]   ;;  %v11599_v50 = vld [vmem:[%s15551_s5 + $0x270] ss:$8 sps:$4 sm:$0xff]   ;;  %v11604_v27 = vld [vmem:[%s15551_s5 + $0x284] ss:$8 sps:$4 sm:$0xff]  }
 0x56c   :  { %7778 = vmatmul.mubr.bf16.vlgmr.msra.gmra.mrb[48].mxu1 %v6860_v63  ;;  %v11602_v51 = vld [vmem:[%s15551_s5 + $0x280] ss:$8 sps:$4 sm:$0xff]   ;;  %v11607_v60 = vld [vmem:[%s15551_s5 + $0x294] ss:$8 sps:$4 sm:$0xff]   ;;  %v11700_v61 = vld [vmem:[%s15553_s7 + $0x4] ss:$8 sps:$4 sm:$0xff]  }
 0x56d   :  { %7787 = vmatpush1.bf16.msra.mxu1 %v11530_v42  ;;  %7818 = vmatprep.mubr.bf16.mxu1 %v6863_v25  ;;  %v11698_v55 = vld [vmem:[%s15553_s7] ss:$8 sps:$4 sm:$0xff]   ;;  %v11605_v3 = vld [vmem:[%s15551_s5 + $0x290] ss:$8 sps:$4 sm:$0xff]   ;;  %v11703_v62 = vld [vmem:[%s15553_s7 + $0x14] ss:$8 sps:$4 sm:$0xff]  }
 0x56e   :  { %7788 = vmatprep.subr.bf16.mxu1 %v11535_v8  ;;  %v11610_v42 = vld [vmem:[%s15551_s5 + $0x2a4] ss:$8 sps:$4 sm:$0xff]   ;;  %8822 = vmatprep.subr.bf16.mxu0 %v11700_v61  ;;  %v11701_v63 = vld [vmem:[%s15553_s7 + $0x10] ss:$8 sps:$4 sm:$0xff]   ;;  %v11608_v25 = vld [vmem:[%s15551_s5 + $0x2a0] ss:$8 sps:$4 sm:$0xff]  }
 0x56f   :  { %8823 = vmatpush1.bf16.msra.mxu0 %v11698_v55  ;;  %v11706_v8 = vld [vmem:[%s15553_s7 + $0x24] ss:$8 sps:$4 sm:$0xff]   ;;  %v11629_v20 = vld [vmem:[%s15551_s5 + $0x310] ss:$8 sps:$4 sm:$0xff]   ;;  %v11662_v55 = vld [vmem:[%s15551_s5 + $0x3c0] ss:$8 sps:$4 sm:$0xff]  }
 0x570   :  { %8824 = vmatprep.subr.bf16.mxu0 %v11703_v62  ;;  %v11634_v41 = vld [vmem:[%s15551_s5 + $0x324] ss:$8 sps:$4 sm:$0xff]   ;;  %v11667_v61 = vld [vmem:[%s15551_s5 + $0x3d4] ss:$8 sps:$4 sm:$0xff]  }
 0x571   :  { %7789 = vmatpush1.bf16.msra.mxu1 %v11533_v10  ;;  %v11613_v10 = vld [vmem:[%s15551_s5 + $0x2b4] ss:$8 sps:$4 sm:$0xff]   ;;  %v11670_v62 = vld [vmem:[%s15551_s5 + $0x3e4] ss:$8 sps:$4 sm:$0xff]  }
 0x572   :  { %7790 = vmatprep.subr.bf16.mxu1 %v11538_v45  ;;  %v11704_v45 = vld [vmem:[%s15553_s7 + $0x20] ss:$8 sps:$4 sm:$0xff]  }
 0x573   :  { %8825 = vmatpush1.bf16.msra.mxu0 %v11701_v63  ;;  %v11673_v63 = vld [vmem:[%s15551_s5 + $0x3f4] ss:$8 sps:$4 sm:$0xff]  }
 0x574   :  { %8826 = vmatprep.subr.bf16.mxu0 %v11706_v8  ;;  %v11671_v8 = vld [vmem:[%s15551_s5 + $0x3f0] ss:$8 sps:$4 sm:$0xff]  }
 0x575   :  { %7791 = vmatpush1.bf16.msra.mxu1 %v11536_v47  ;;  %v11709_v47 = vld [vmem:[%s15553_s7 + $0x34] ss:$8 sps:$4 sm:$0xff]  }
 0x576   :  { %7792 = vmatprep.subr.bf16.mxu1 %v11541_v12  ;;  %v11611_v12 = vld [vmem:[%s15551_s5 + $0x2b0] ss:$8 sps:$4 sm:$0xff]  }
 0x577   :  { %8827 = vmatpush1.bf16.msra.mxu0 %v11704_v45  ;;  %v11674_v45 = vld [vmem:[%s15551_s5 + $0x400] ss:$8 sps:$4 sm:$0xff]  }
 0x578   :  { %8828 = vmatprep.subr.bf16.mxu0 %v11709_v47 }
 0x579   :  { %7793 = vmatpush1.bf16.msra.mxu1 %v11539_v16  ;;  %v11616_v16 = vld [vmem:[%s15551_s5 + $0x2c4] ss:$8 sps:$4 sm:$0xff]  }
 0x57a   :  { %7794 = vmatprep.subr.bf16.mxu1 %v11544_v22  ;;  %v11707_v22 = vld [vmem:[%s15553_s7 + $0x30] ss:$8 sps:$4 sm:$0xff]  }
 0x57b   :  { %8829 = vmatpush1.bf16.msra.mxu0 %v11707_v22  ;;  %v11917_v22 = vmov 0  }
 0x57d   :  { %7795 = vmatpush1.bf16.msra.mxu1 %v11542_v23  ;;  %v11712_v23 = vld [vmem:[%s15553_s7 + $0x44] ss:$8 sps:$4 sm:$0xff]  }
 0x57e   :  { %7796 = vmatprep.subr.bf16.mxu1 %v11547_v24  ;;  %v11614_v24 = vld [vmem:[%s15551_s5 + $0x2c0] ss:$8 sps:$4 sm:$0xff]   ;;  %8830 = vmatprep.subr.bf16.mxu0 %v11712_v23  ;;  %v11682_v23 = vld [vmem:[%s15551_s5 + $0x424] ss:$8 sps:$4 sm:$0xff]  }
 0x581   :  { %7797 = vmatpush1.bf16.msra.mxu1 %v11545_v26  ;;  %v11619_v26 = vld [vmem:[%s15551_s5 + $0x2d4] ss:$8 sps:$4 sm:$0xff]  }
 0x582   :  { %7798 = vmatprep.subr.bf16.mxu1 %v11550_v14  ;;  %v11710_v14 = vld [vmem:[%s15553_s7 + $0x40] ss:$8 sps:$4 sm:$0xff]  }
 0x583   :  { %8831 = vmatpush1.bf16.msra.mxu0 %v11710_v14  ;;  %v11683_v14 = vld [vmem:[%s15551_s5 + $0x430] ss:$8 sps:$4 sm:$0xff]  }
 0x585   :  { %7799 = vmatpush1.bf16.msra.mxu1 %v11548_v28  ;;  %v11715_v28 = vld [vmem:[%s15553_s7 + $0x54] ss:$8 sps:$4 sm:$0xff]  }
 0x586   :  { %7800 = vmatprep.subr.bf16.mxu1 %v11553_v29  ;;  %v11617_v29 = vld [vmem:[%s15551_s5 + $0x2d0] ss:$8 sps:$4 sm:$0xff]   ;;  %8832 = vmatprep.subr.bf16.mxu0 %v11715_v28  ;;  %v11688_v28 = vld [vmem:[%s15551_s5 + $0x444] ss:$8 sps:$4 sm:$0xff]  }
 0x589   :  { %7801 = vmatpush1.bf16.msra.mxu1 %v11551_v59  ;;  %v11622_v59 = vld [vmem:[%s15551_s5 + $0x2e4] ss:$8 sps:$4 sm:$0xff]  }
 0x58a   :  { %7802 = vmatprep.subr.bf16.mxu1 %v11556_v30  ;;  %v11713_v30 = vld [vmem:[%s15553_s7 + $0x50] ss:$8 sps:$4 sm:$0xff]  }
 0x58b   :  { %8833 = vmatpush1.bf16.msra.mxu0 %v11713_v30  ;;  %v11689_v30 = vld [vmem:[%s15551_s5 + $0x450] ss:$8 sps:$4 sm:$0xff]  }
 0x58d   :  { %7803 = vmatpush1.bf16.msra.mxu1 %v11554_v31  ;;  %v11718_v31 = vld [vmem:[%s15553_s7 + $0x64] ss:$8 sps:$4 sm:$0xff]  }
 0x58e   :  { %7804 = vmatprep.subr.bf16.mxu1 %v11559_v17  ;;  %v11620_v17 = vld [vmem:[%s15551_s5 + $0x2e0] ss:$8 sps:$4 sm:$0xff]   ;;  %8834 = vmatprep.subr.bf16.mxu0 %v11718_v31  ;;  %v11694_v31 = vld [vmem:[%s15551_s5 + $0x464] ss:$8 sps:$4 sm:$0xff]  }
 0x591   :  { %7805 = vmatpush1.bf16.msra.mxu1 %v11557_v33  ;;  %v11625_v33 = vld [vmem:[%s15551_s5 + $0x2f4] ss:$8 sps:$4 sm:$0xff]  }
 0x592   :  { %7806 = vmatprep.subr.bf16.mxu1 %v11562_v35  ;;  %v11716_v35 = vld [vmem:[%s15553_s7 + $0x60] ss:$8 sps:$4 sm:$0xff]  }
 0x593   :  { %8835 = vmatpush1.bf16.msra.mxu0 %v11716_v35  ;;  %v11695_v35 = vld [vmem:[%s15551_s5 + $0x470] ss:$8 sps:$4 sm:$0xff]  }
 0x595   :  { %7807 = vmatpush1.bf16.msra.mxu1 %v11560_v36  ;;  %v11721_v36 = vld [vmem:[%s15553_s7 + $0x74] ss:$8 sps:$4 sm:$0xff]  }
 0x596   :  { %7808 = vmatprep.subr.bf16.mxu1 %v11565_v11  ;;  %v11623_v11 = vld [vmem:[%s15551_s5 + $0x2f0] ss:$8 sps:$4 sm:$0xff]   ;;  %8836 = vmatprep.subr.bf16.mxu0 %v11721_v36 }
 0x597   :  { %v6859_v36 = vld [vmem:[#allocation6 + $0x40] sm:$0xff] }
 0x599   :  { %7809 = vmatpush1.bf16.msra.mxu1 %v11563_v37  ;;  %v11628_v37 = vld [vmem:[%s15551_s5 + $0x304] ss:$8 sps:$4 sm:$0xff]  }
 0x59a   :  { %7810 = vmatprep.subr.bf16.mxu1 %v11568_v1  ;;  %v6855_v1 = vld [vmem:[#allocation6 + $0x20] sm:$0xff] }
 0x59d   :  { %7811 = vmatpush1.bf16.msra.mxu1 %v11566_v5  ;;  %v11719_v5 = vld [vmem:[%s15553_s7 + $0x70] ss:$8 sps:$4 sm:$0xff]  }
 0x59e   :  { %7812 = vmatprep.subr.bf16.mxu1 %v11571_v39  ;;  %v6858_v39 = vld [vmem:[#allocation6 + $0x38] sm:$0xff]  ;;  %8837 = vmatpush1.bf16.msra.mxu0 %v11719_v5 }
 0x59f   :  { %v11730_v5 = vld [vmem:[%s15553_s7 + $0xa4] ss:$8 sps:$4 sm:$0xff]  }
 0x5a1   :  { %7813 = vmatpush1.bf16.msra.mxu1 %v11569_v32  ;;  %v11724_v32 = vld [vmem:[%s15553_s7 + $0x84] ss:$8 sps:$4 sm:$0xff]  }
 0x5a2   :  { %7814 = vmatprep.subr.bf16.mxu1 %v11574_v40  ;;  %v11626_v40 = vld [vmem:[%s15551_s5 + $0x300] ss:$8 sps:$4 sm:$0xff]   ;;  %8838 = vmatprep.subr.bf16.mxu0 %v11724_v32  ;;  %v11733_v32 = vld [vmem:[%s15553_s7 + $0xb4] ss:$8 sps:$4 sm:$0xff]  }
 0x5a5   :  { %7815 = vmatpush1.bf16.msra.mxu1 %v11572_v15  ;;  %v6864_v15 = vpack.c.bf16 %v6855_v1, %v6855_v1  ;;  %v11725_v1 = vld [vmem:[%s15553_s7 + $0x90] ss:$8 sps:$4 sm:$0xff]  }
 0x5a6   :  { %7816 = vmatprep.subr.bf16.mxu1 %v11577_v52  ;;  %v11631_v52 = vld [vmem:[%s15551_s5 + $0x314] ss:$8 sps:$4 sm:$0xff]  }
 0x5a9   :  { %7817 = vmatpush1.bf16.msra.mxu1 %v11575_v18  ;;  %v6867_v18 = vpack.c.bf16 %v6858_v39, %v6858_v39  ;;  %v11728_v39 = vld [vmem:[%s15553_s7 + $0xa0] ss:$8 sps:$4 sm:$0xff]  }
 0x5aa   :  { %7827 = vmatprep.subr.bf16.mxu1 %v11580_v21  ;;  %v11722_v21 = vld [vmem:[%s15553_s7 + $0x80] ss:$8 sps:$4 sm:$0xff]  }
 0x5ab   :  { %8839 = vmatpush1.bf16.msra.mxu0 %v11722_v21  ;;  %v11739_v21 = vld [vmem:[%s15553_s7 + $0xd4] ss:$8 sps:$4 sm:$0xff]  }
 0x5ac   :  { %7819 = vmatmul.mubr.bf16.vlgmr.msra.gmra.mrb[48].mxu1 %v6862_v57  ;;  %v11637_v57 = vld [vmem:[%s15551_s5 + $0x334] ss:$8 sps:$4 sm:$0xff]  }
 0x5ad   :  { %7828 = vmatpush1.bf16.msra.mxu1 %v11578_v43  ;;  %7859 = vmatprep.mubr.bf16.mxu1 %v6865_v2  ;;  %v11632_v43 = vld [vmem:[%s15551_s5 + $0x320] ss:$8 sps:$4 sm:$0xff]   ;;  %v11640_v2 = vld [vmem:[%s15551_s5 + $0x344] ss:$8 sps:$4 sm:$0xff]  }
 0x5ae   :  { %7829 = vmatprep.subr.bf16.mxu1 %v11583_v34  ;;  %v11635_v34 = vld [vmem:[%s15551_s5 + $0x330] ss:$8 sps:$4 sm:$0xff]  }
 0x5b1   :  { %7830 = vmatpush1.bf16.msra.mxu1 %v11581_v48  ;;  %v11638_v48 = vld [vmem:[%s15551_s5 + $0x340] ss:$8 sps:$4 sm:$0xff]  }
 0x5b2   :  { %7831 = vmatprep.subr.bf16.mxu1 %v11586_v44  ;;  %v11643_v44 = vld [vmem:[%s15551_s5 + $0x354] ss:$8 sps:$4 sm:$0xff]  }
 0x5b5   :  { %7832 = vmatpush1.bf16.msra.mxu1 %v11584_v13  ;;  %v11641_v13 = vld [vmem:[%s15551_s5 + $0x350] ss:$8 sps:$4 sm:$0xff]  }
 0x5b6   :  { %7833 = vmatprep.subr.bf16.mxu1 %v11589_v19  ;;  %v11646_v19 = vld [vmem:[%s15551_s5 + $0x364] ss:$8 sps:$4 sm:$0xff]  }
 0x5b9   :  { %7834 = vmatpush1.bf16.msra.mxu1 %v11587_v46  ;;  %v11644_v46 = vld [vmem:[%s15551_s5 + $0x360] ss:$8 sps:$4 sm:$0xff]  }
 0x5ba   :  { %7835 = vmatprep.subr.bf16.mxu1 %v11592_v49  ;;  %v11649_v49 = vld [vmem:[%s15551_s5 + $0x374] ss:$8 sps:$4 sm:$0xff]  }
 0x5bd   :  { %7836 = vmatpush1.bf16.msra.mxu1 %v11590_v54  ;;  %v11647_v54 = vld [vmem:[%s15551_s5 + $0x370] ss:$8 sps:$4 sm:$0xff]  }
 0x5be   :  { %7837 = vmatprep.subr.bf16.mxu1 %v11595_v53  ;;  %v11652_v53 = vld [vmem:[%s15551_s5 + $0x384] ss:$8 sps:$4 sm:$0xff]  }
 0x5c1   :  { %7838 = vmatpush1.bf16.msra.mxu1 %v11593_v58  ;;  %v11650_v58 = vld [vmem:[%s15551_s5 + $0x380] ss:$8 sps:$4 sm:$0xff]  }
 0x5c2   :  { %7839 = vmatprep.subr.bf16.mxu1 %v11598_v56  ;;  %v11655_v56 = vld [vmem:[%s15551_s5 + $0x394] ss:$8 sps:$4 sm:$0xff]  }
 0x5c5   :  { %7840 = vmatpush1.bf16.msra.mxu1 %v11596_v0  ;;  %v11653_v0 = vld [vmem:[%s15551_s5 + $0x390] ss:$8 sps:$4 sm:$0xff]  }
 0x5c6   :  { %7841 = vmatprep.subr.bf16.mxu1 %v11601_v7  ;;  %v11658_v7 = vld [vmem:[%s15551_s5 + $0x3a4] ss:$8 sps:$4 sm:$0xff]  }
 0x5c9   :  { %7842 = vmatpush1.bf16.msra.mxu1 %v11599_v50  ;;  %v11656_v50 = vld [vmem:[%s15551_s5 + $0x3a0] ss:$8 sps:$4 sm:$0xff]  }
 0x5ca   :  { %7843 = vmatprep.subr.bf16.mxu1 %v11604_v27  ;;  %v11661_v27 = vld [vmem:[%s15551_s5 + $0x3b4] ss:$8 sps:$4 sm:$0xff]  }
 0x5cd   :  { %7844 = vmatpush1.bf16.msra.mxu1 %v11602_v51  ;;  %v11659_v51 = vld [vmem:[%s15551_s5 + $0x3b0] ss:$8 sps:$4 sm:$0xff]  }
 0x5ce   :  { %7845 = vmatprep.subr.bf16.mxu1 %v11607_v60  ;;  %v11664_v60 = vld [vmem:[%s15551_s5 + $0x3c4] ss:$8 sps:$4 sm:$0xff]  }
 0x5d1   :  { %7846 = vmatpush1.bf16.msra.mxu1 %v11605_v3  ;;  %v11665_v3 = vld [vmem:[%s15551_s5 + $0x3d0] ss:$8 sps:$4 sm:$0xff]  }
 0x5d2   :  { %7847 = vmatprep.subr.bf16.mxu1 %v11610_v42  ;;  %v11668_v42 = vld [vmem:[%s15551_s5 + $0x3e0] ss:$8 sps:$4 sm:$0xff]  }
 0x5d5   :  { %7848 = vmatpush1.bf16.msra.mxu1 %v11608_v25  ;;  %v11676_v25 = vld [vmem:[%s15551_s5 + $0x404] ss:$8 sps:$4 sm:$0xff]  }
 0x5d6   :  { %7849 = vmatprep.subr.bf16.mxu1 %v11613_v10  ;;  %v6857_v10 = vld [vmem:[#allocation6 + $0x30] sm:$0xff] }
 0x5d7   :  { %v6866_v47 = vpack.c.bf16 %v6857_v10, %v6857_v10 }
 0x5d9   :  { %7850 = vmatpush1.bf16.msra.mxu1 %v11611_v12  ;;  %v11679_v12 = vld [vmem:[%s15551_s5 + $0x414] ss:$8 sps:$4 sm:$0xff]  }
 0x5da   :  { %7851 = vmatprep.subr.bf16.mxu1 %v11616_v16  ;;  %v11677_v16 = vld [vmem:[%s15551_s5 + $0x410] ss:$8 sps:$4 sm:$0xff]  }
 0x5dd   :  { %7852 = vmatpush1.bf16.msra.mxu1 %v11614_v24  ;;  %v11680_v24 = vld [vmem:[%s15551_s5 + $0x420] ss:$8 sps:$4 sm:$0xff]  }
 0x5de   :  { %7853 = vmatprep.subr.bf16.mxu1 %v11619_v26  ;;  %v11685_v26 = vld [vmem:[%s15551_s5 + $0x434] ss:$8 sps:$4 sm:$0xff]  }
 0x5e1   :  { %7854 = vmatpush1.bf16.msra.mxu1 %v11617_v29  ;;  %v11686_v29 = vld [vmem:[%s15551_s5 + $0x440] ss:$8 sps:$4 sm:$0xff]  }
 0x5e2   :  { %7855 = vmatprep.subr.bf16.mxu1 %v11622_v59  ;;  %v11691_v59 = vld [vmem:[%s15551_s5 + $0x454] ss:$8 sps:$4 sm:$0xff]  }
 0x5e5   :  { %7856 = vmatpush1.bf16.msra.mxu1 %v11620_v17  ;;  %v11692_v17 = vld [vmem:[%s15551_s5 + $0x460] ss:$8 sps:$4 sm:$0xff]  }
 0x5e6   :  { %7857 = vmatprep.subr.bf16.mxu1 %v11625_v33  ;;  %v11697_v33 = vld [vmem:[%s15551_s5 + $0x474] ss:$8 sps:$4 sm:$0xff]  }
 0x5e9   :  { %7858 = vmatpush1.bf16.msra.mxu1 %v11623_v11  ;;  %v6868_v11 = vpack.c.bf16 %v6859_v36, %v6859_v36  ;;  %v11765_v36 = vld [vmem:[%s15553_s7 + $0x160] ss:$8 sps:$4 sm:$0xff]  }
 0x5ea   :  { %7868 = vmatprep.subr.bf16.mxu1 %v11628_v37  ;;  %v11727_v37 = vld [vmem:[%s15553_s7 + $0x94] ss:$8 sps:$4 sm:$0xff]  }
 0x5eb   :  { %8840 = vmatprep.subr.bf16.mxu0 %v11727_v37  ;;  %v11768_v37 = vld [vmem:[%s15553_s7 + $0x170] ss:$8 sps:$4 sm:$0xff]  }
 0x5ec   :  { %7860 = vmatmul.mubr.bf16.vlgmr.msra.gmra.mrb[48].mxu1 %v6864_v15  ;;  %8841 = vmatpush1.bf16.msra.mxu0 %v11725_v1  ;;  %v11736_v15 = vld [vmem:[%s15553_s7 + $0xc4] ss:$8 sps:$4 sm:$0xff]  }
 0x5ed   :  { %7869 = vmatpush1.bf16.msra.mxu1 %v11626_v40  ;;  %7900 = vmatprep.mubr.bf16.mxu1 %v6867_v18  ;;  %v11731_v40 = vld [vmem:[%s15553_s7 + $0xb0] ss:$8 sps:$4 sm:$0xff]   ;;  %v11773_v1 = vld [vmem:[%s15553_s7 + $0x184] ss:$8 sps:$4 sm:$0xff]  }
 0x5ee   :  { %7870 = vmatprep.subr.bf16.mxu1 %v11631_v52  ;;  %8842 = vmatprep.subr.bf16.mxu0 %v11730_v5  ;;  %v11734_v52 = vld [vmem:[%s15553_s7 + $0xc0] ss:$8 sps:$4 sm:$0xff]   ;;  %v11737_v18 = vld [vmem:[%s15553_s7 + $0xd0] ss:$8 sps:$4 sm:$0xff]  }
 0x5ef   :  { %v11771_v5 = vld [vmem:[%s15553_s7 + $0x180] ss:$8 sps:$4 sm:$0xff]  }
 0x5f0   :  { %8843 = vmatpush1.bf16.msra.mxu0 %v11728_v39  ;;  %v11776_v39 = vld [vmem:[%s15553_s7 + $0x194] ss:$8 sps:$4 sm:$0xff]  }
 0x5f1   :  { %7871 = vmatpush1.bf16.msra.mxu1 %v11629_v20  ;;  %8844 = vmatprep.subr.bf16.mxu0 %v11733_v32  ;;  %v11742_v20 = vld [vmem:[%s15553_s7 + $0xe4] ss:$8 sps:$4 sm:$0xff]   ;;  %v11774_v32 = vld [vmem:[%s15553_s7 + $0x190] ss:$8 sps:$4 sm:$0xff]  }
 0x5f2   :  { %7872 = vmatprep.subr.bf16.mxu1 %v11634_v41  ;;  %v11740_v41 = vld [vmem:[%s15553_s7 + $0xe0] ss:$8 sps:$4 sm:$0xff]  }
 0x5f4   :  { %8845 = vmatpush1.bf16.msra.mxu0 %v11731_v40  ;;  %v11779_v40 = vld [vmem:[%s15553_s7 + $0x1a4] ss:$8 sps:$4 sm:$0xff]  }
 0x5f5   :  { %7873 = vmatpush1.bf16.msra.mxu1 %v11632_v43  ;;  %8846 = vmatprep.subr.bf16.mxu0 %v11736_v15  ;;  %v11745_v43 = vld [vmem:[%s15553_s7 + $0xf4] ss:$8 sps:$4 sm:$0xff]   ;;  %v11777_v15 = vld [vmem:[%s15553_s7 + $0x1a0] ss:$8 sps:$4 sm:$0xff]  }
 0x5f6   :  { %7874 = vmatprep.subr.bf16.mxu1 %v11637_v57  ;;  %v11743_v57 = vld [vmem:[%s15553_s7 + $0xf0] ss:$8 sps:$4 sm:$0xff]  }
 0x5f8   :  { %8847 = vmatpush1.bf16.msra.mxu0 %v11734_v52  ;;  %v11782_v52 = vld [vmem:[%s15553_s7 + $0x1b4] ss:$8 sps:$4 sm:$0xff]  }
 0x5f9   :  { %7875 = vmatpush1.bf16.msra.mxu1 %v11635_v34  ;;  %8848 = vmatprep.subr.bf16.mxu0 %v11739_v21  ;;  %v11748_v34 = vld [vmem:[%s15553_s7 + $0x104] ss:$8 sps:$4 sm:$0xff]  }
 0x5fa   :  { %7876 = vmatprep.subr.bf16.mxu1 %v11640_v2  ;;  %v7013_v2 = vld [vmem:[%s15552_s6] sm:$0x3]  ;;  %v11785_v21 = vld [vmem:[%s15553_s7 + $0x1c4] ss:$8 sps:$4 sm:$0xff]  }
 0x5fc   :  { %8849 = vmatpush1.bf16.msra.mxu0 %v11737_v18  ;;  %v11780_v18 = vld [vmem:[%s15553_s7 + $0x1b0] ss:$8 sps:$4 sm:$0xff]  }
 0x5fd   :  { %7877 = vmatpush1.bf16.msra.mxu1 %v11638_v48  ;;  %8850 = vmatprep.subr.bf16.mxu0 %v11742_v20  ;;  %v7018_v48 = vrot.slane %v7013_v2, %v13430_v38  ;;  %v11783_v20 = vld [vmem:[%s15553_s7 + $0x1c0] ss:$8 sps:$4 sm:$0xff]  }
 0x5fe   :  { %7878 = vmatprep.subr.bf16.mxu1 %v11643_v44  ;;  %v7022_v44 = vrot.slane %v7013_v2, %v13433_v9  ;;  %v11789_v2 = vld [vmem:[%s15553_s7 + $0x1e0] ss:$8 sps:$4 sm:$0xff]  }
 0x600   :  { %8851 = vmatpush1.bf16.msra.mxu0 %v11740_v41  ;;  %v11788_v41 = vld [vmem:[%s15553_s7 + $0x1d4] ss:$8 sps:$4 sm:$0xff]  }
 0x601   :  { %7879 = vmatpush1.bf16.msra.mxu1 %v11641_v13  ;;  %8852 = vmatprep.subr.bf16.mxu0 %v11745_v43  ;;  %v11786_v43 = vld [vmem:[%s15553_s7 + $0x1d0] ss:$8 sps:$4 sm:$0xff]  }
 0x602   :  { %7880 = vmatprep.subr.bf16.mxu1 %v11646_v19 }
 0x604   :  { %8853 = vmatpush1.bf16.msra.mxu0 %v11743_v57  ;;  %v11791_v57 = vld [vmem:[%s15553_s7 + $0x1e4] ss:$8 sps:$4 sm:$0xff]  }
 0x605   :  { %7881 = vmatpush1.bf16.msra.mxu1 %v11644_v46  ;;  %8863 = vmatprep.subr.bf16.mxu0 %v11748_v34 }
 0x606   :  { %7882 = vmatprep.subr.bf16.mxu1 %v11649_v49 }
 0x609   :  { %7883 = vmatpush1.bf16.msra.mxu1 %v11647_v54 }
 0x60a   :  { %7884 = vmatprep.subr.bf16.mxu1 %v11652_v53 }
 0x60d   :  { %7885 = vmatpush1.bf16.msra.mxu1 %v11650_v58 }
 0x60e   :  { %7886 = vmatprep.subr.bf16.mxu1 %v11655_v56 }
 0x611   :  { %7887 = vmatpush1.bf16.msra.mxu1 %v11653_v0  ;;  %v11803_v0 = vld [vmem:[%s15553_s7 + $0x224] ss:$8 sps:$4 sm:$0xff]  }
 0x612   :  { %7888 = vmatprep.subr.bf16.mxu1 %v11658_v7  ;;  %v11918_v7 = vmov 1983009808  }
 0x615   :  { %7889 = vmatpush1.bf16.msra.mxu1 %v11656_v50  ;;  %v7994_v50 = vunpack.c.l.s4 %v11918_v7  ;;  %v11801_v7 = vld [vmem:[%s15553_s7 + $0x220] ss:$8 sps:$4 sm:$0xff]  }
 0x616   :  { %7890 = vmatprep.subr.bf16.mxu1 %v11661_v27 }
 0x619   :  { %7891 = vmatpush1.bf16.msra.mxu1 %v11659_v51 }
 0x61a   :  { %7892 = vmatprep.subr.bf16.mxu1 %v11664_v60 }
 0x61d   :  { %7893 = vmatpush1.bf16.msra.mxu1 %v11662_v55 }
 0x61e   :  { %7894 = vmatprep.subr.bf16.mxu1 %v11667_v61 }
 0x621   :  { %7895 = vmatpush1.bf16.msra.mxu1 %v11665_v3 }
 0x622   :  { %7896 = vmatprep.subr.bf16.mxu1 %v11670_v62 }
 0x625   :  { %7897 = vmatpush1.bf16.msra.mxu1 %v11668_v42  ;;  %v7995_v42 = vunpack.c.0.s8 %v7994_v50  ;;  %v11806_v50 = vld [vmem:[%s15553_s7 + $0x234] ss:$8 sps:$4 sm:$0xff]  }
 0x626   :  { %7898 = vmatprep.subr.bf16.mxu1 %v11673_v63 }
 0x627   :  { %v15215_v63 = vsub.s32 %v7995_v42, %v13416_v4  ;;  %v11752_v4 = vld [vmem:[%s15553_s7 + $0x114] ss:$8 sps:$4 sm:$0xff]   ;;  %v11816_v42 = vld [vmem:[%s15553_s7 + $0x270] ss:$8 sps:$4 sm:$0xff]  }
 0x629   :  { %7899 = vmatpush1.bf16.msra.mxu1 %v11671_v8 }
 0x62a   :  { %7909 = vmatprep.subr.bf16.mxu1 %v11676_v25 }
 0x62c   :  { %7901 = vmatmul.mubr.bf16.vlgmr.msra.gmra.mrb[48].mxu1 %v6866_v47 }
 0x62d   :  { %7910 = vmatpush1.bf16.msra.mxu1 %v11674_v45  ;;  %7941 = vmatprep.mubr.bf16.mxu1 %v11917_v22 }
 0x62e   :  { %7911 = vmatprep.subr.bf16.mxu1 %v11679_v12 }
 0x631   :  { %7912 = vmatpush1.bf16.msra.mxu1 %v11677_v16  ;;  %v11746_v16 = vld [vmem:[%s15553_s7 + $0x100] ss:$8 sps:$4 sm:$0xff]  }
 0x632   :  { %7913 = vmatprep.subr.bf16.mxu1 %v11682_v23 }
 0x635   :  { %7914 = vmatpush1.bf16.msra.mxu1 %v11680_v24 }
 0x636   :  { %7915 = vmatprep.subr.bf16.mxu1 %v11685_v26  ;;  %v11750_v26 = vld [vmem:[%s15553_s7 + $0x110] ss:$8 sps:$4 sm:$0xff]  }
 0x639   :  { %7916 = vmatpush1.bf16.msra.mxu1 %v11683_v14  ;;  %v11755_v14 = vld [vmem:[%s15553_s7 + $0x124] ss:$8 sps:$4 sm:$0xff]  }
 0x63a   :  { %7917 = vmatprep.subr.bf16.mxu1 %v11688_v28  ;;  %v11753_v28 = vld [vmem:[%s15553_s7 + $0x120] ss:$8 sps:$4 sm:$0xff]  }
 0x63d   :  { %7918 = vmatpush1.bf16.msra.mxu1 %v11686_v29  ;;  %v11758_v29 = vld [vmem:[%s15553_s7 + $0x134] ss:$8 sps:$4 sm:$0xff]  }
 0x63e   :  { %7919 = vmatprep.subr.bf16.mxu1 %v11691_v59  ;;  %v11756_v59 = vld [vmem:[%s15553_s7 + $0x130] ss:$8 sps:$4 sm:$0xff]  }
 0x641   :  { %7920 = vmatpush1.bf16.msra.mxu1 %v11689_v30  ;;  %v11761_v30 = vld [vmem:[%s15553_s7 + $0x144] ss:$8 sps:$4 sm:$0xff]  }
 0x642   :  { %7921 = vmatprep.subr.bf16.mxu1 %v11694_v31  ;;  %v11759_v31 = vld [vmem:[%s15553_s7 + $0x140] ss:$8 sps:$4 sm:$0xff]  }
 0x645   :  { %7922 = vmatpush1.bf16.msra.mxu1 %v11692_v17  ;;  %v11764_v17 = vld [vmem:[%s15553_s7 + $0x154] ss:$8 sps:$4 sm:$0xff]  }
 0x646   :  { %7923 = vmatprep.subr.bf16.mxu1 %v11697_v33  ;;  %v11762_v33 = vld [vmem:[%s15553_s7 + $0x150] ss:$8 sps:$4 sm:$0xff]  }
 0x649   :  { %7924 = vmatpush1.bf16.msra.mxu1 %v11695_v35  ;;  %v11767_v35 = vld [vmem:[%s15553_s7 + $0x164] ss:$8 sps:$4 sm:$0xff]  }
 0x64c   :  { %7942 = vmatmul.mubr.bf16.vlgmr.msra.gmra.mrb[48].mxu1 %v6868_v11  ;;  %v11770_v11 = vld [vmem:[%s15553_s7 + $0x174] ss:$8 sps:$4 sm:$0xff]  }
 0x71f   :  { %v7943_v13 = vpop.f32.mrb[48].mxu1 }
 0x720   :  { %v10259_v19 = vadd.f32 %v7943_v13, %v7018_v48  ;;  %v7945_v46 = vpop.f32.mrb[49].mxu1  ;;  %v11794_v48 = vld [vmem:[%s15553_s7 + $0x1f4] ss:$8 sps:$4 sm:$0xff]   ;;  %v11792_v13 = vld [vmem:[%s15553_s7 + $0x1f0] ss:$8 sps:$4 sm:$0xff]  }
 0x721   :  { %v10260_v49 = vadd.f32 %v7945_v46, %v7022_v44  ;;  %v7947_v54 = vpop.f32.mrb[50].mxu1 }
 0x722   :  { %v7950_v53 = vmax.f32 %v10259_v19, 0.0  ;;  %v7948_v58 = vpop.f32.mrb[51].mxu1  ;;  %v11797_v19 = vld [vmem:[%s15553_s7 + $0x204] ss:$8 sps:$4 sm:$0xff]  }
 0x723   :  { %v7951_v56 = vmax.f32 %v10260_v49, 0.0  ;;  %v11795_v49 = vld [vmem:[%s15553_s7 + $0x200] ss:$8 sps:$4 sm:$0xff]  }
 0x724   :  { %7952 = vst [vmem:[#allocation7] sm:$0xff] %v7950_v53  ;;  %v11800_v53 = vld [vmem:[%s15553_s7 + $0x214] ss:$8 sps:$4 sm:$0xff]  }
 0x725   :  { %7953 = vst [vmem:[#allocation7 + $0x8] sm:$0xff] %v7951_v56  ;;  %v11798_v56 = vld [vmem:[%s15553_s7 + $0x210] ss:$8 sps:$4 sm:$0xff]  }
 0x72c   :  { %v7954_v27 = vld [vmem:[#allocation7] ss:$8 sm:$0x3]  ;;  %v7961_v51 = vld [vmem:[#allocation7 + $0x1] ss:$8 sm:$0x3] }
 0x72d   :  { %7959 = vst.msk [vmem:[#allocation8] ss:$2 sm:$0x3] %vm15194_vm3, %v7954_v27  ;;  %7963 = vst.msk [vmem:[#allocation8 + $0x4] ss:$2 sm:$0x3] %vm15194_vm3, %v7961_v51 }
 0x72e   :  { %v7965_v60 = vld [vmem:[#allocation7 + $0x2] ss:$8 sm:$0x3]  ;;  %v7969_v55 = vld [vmem:[#allocation7 + $0x3] ss:$8 sm:$0x3] }
 0x72f   :  { %7967 = vst.msk [vmem:[#allocation8 + $0x8] ss:$2 sm:$0x3] %vm15194_vm3, %v7965_v60  ;;  %7971 = vst.msk [vmem:[#allocation8 + $0xc] ss:$2 sm:$0x3] %vm15194_vm3, %v7969_v55 }
 0x730   :  { %v7973_v6 = vld [vmem:[#allocation7 + $0x4] ss:$8 sm:$0x3]  ;;  %v7977_v61 = vld [vmem:[#allocation7 + $0x5] ss:$8 sm:$0x3] }
 0x731   :  { %7975 = vst.msk [vmem:[#allocation8 + $0x1] ss:$2 sm:$0x3] %vm15194_vm3, %v7973_v6  ;;  %7979 = vst.msk [vmem:[#allocation8 + $0x5] ss:$2 sm:$0x3] %vm15194_vm3, %v7977_v61 }
 0x732   :  { %v7981_v3 = vld [vmem:[#allocation7 + $0x6] ss:$8 sm:$0x3]  ;;  %v7985_v62 = vld [vmem:[#allocation7 + $0x7] ss:$8 sm:$0x3] }
 0x733   :  { %7983 = vst.msk [vmem:[#allocation8 + $0x9] ss:$2 sm:$0x3] %vm15194_vm3, %v7981_v3  ;;  %7987 = vst.msk [vmem:[#allocation8 + $0xd] ss:$2 sm:$0x3] %vm15194_vm3, %v7985_v62 }
 0x734   :  { %v11804_v27 = vld [vmem:[%s15553_s7 + $0x230] ss:$8 sps:$4 sm:$0xff]   ;;  %v11809_v51 = vld [vmem:[%s15553_s7 + $0x244] ss:$8 sps:$4 sm:$0xff]   ;;  %v11807_v60 = vld [vmem:[%s15553_s7 + $0x240] ss:$8 sps:$4 sm:$0xff]  }
 0x735   :  { %v11812_v55 = vld [vmem:[%s15553_s7 + $0x254] ss:$8 sps:$4 sm:$0xff]   ;;  %v11810_v6 = vld [vmem:[%s15553_s7 + $0x250] ss:$8 sps:$4 sm:$0xff]   ;;  %v11815_v61 = vld [vmem:[%s15553_s7 + $0x264] ss:$8 sps:$4 sm:$0xff]  }
 0x736   :  { %v11813_v3 = vld [vmem:[%s15553_s7 + $0x260] ss:$8 sps:$4 sm:$0xff]   ;;  %v11818_v62 = vld [vmem:[%s15553_s7 + $0x274] ss:$8 sps:$4 sm:$0xff]  }
 0x738   :  { %v7988_v8 = vld [vmem:[#allocation8] sm:$0xff] }
 0x739   :  { %v7999_v25 = vrot.slane %v7988_v8, %v15215_v63  ;;  %v7992_v10 = vcombine.high %v7988_v8, %v7988_v8  ;;  %v11821_v8 = vld [vmem:[%s15553_s7 + $0x284] ss:$8 sps:$4 sm:$0xff]  }
 0x73a   :  { %v15307_v34 = vld [vmem:[#allocation8 + $0x8] sm:$0xff] }
 0x73b   :  { %v8007_v45 = vcombine.high %v7999_v25, %v7999_v25  ;;  %v15219_v47 = vrot.slane %v7992_v10, %v15215_v63  ;;  %v8034_v23 = vpack.c.bf16 %v7999_v25, %v7999_v25  ;;  %v15317_v44 = vrot.slane %v15307_v34, %v15215_v63  ;;  %v11819_v25 = vld [vmem:[%s15553_s7 + $0x280] ss:$8 sps:$4 sm:$0xff]   ;;  %v11824_v10 = vld [vmem:[%s15553_s7 + $0x294] ss:$8 sps:$4 sm:$0xff]  }
 0x73d   :  { %v8035_v12 = vpack.c.bf16 %v8007_v45, %v8007_v45  ;;  %v8008_v22 = vcombine.high %v15219_v47, %v15219_v47  ;;  %v8024_v46 = vcombine.high %v15317_v44, %v15317_v44  ;;  %v8036_v54 = vpack.c.bf16 %v15219_v47, %v15219_v47  ;;  %v11822_v45 = vld [vmem:[%s15553_s7 + $0x290] ss:$8 sps:$4 sm:$0xff]   ;;  %v11827_v47 = vld [vmem:[%s15553_s7 + $0x2a4] ss:$8 sps:$4 sm:$0xff]  }
 0x73f   :  { %8854 = vmatprep.mubr.bf16.mxu0 %v8035_v12  ;;  %v8037_v24 = vpack.c.bf16 %v8008_v22, %v8008_v22  ;;  %v8039_v58 = vpack.c.bf16 %v8024_v46, %v8024_v46  ;;  %v11825_v12 = vld [vmem:[%s15553_s7 + $0x2a0] ss:$8 sps:$4 sm:$0xff]   ;;  %v11828_v22 = vld [vmem:[%s15553_s7 + $0x2b0] ss:$8 sps:$4 sm:$0xff]  }
 0x740   :  { %8855 = vmatmul.mubr.bf16.vlgmr.msra.gmra.mrb[12].mxu0 %v8034_v23  ;;  %v11833_v23 = vld [vmem:[%s15553_s7 + $0x2c4] ss:$8 sps:$4 sm:$0xff]   ;;  %v11877_v46 = vld [vmem:[%s15553_s7 + $0x3b0] ss:$8 sps:$4 sm:$0xff]  }
 0x741   :  { %8864 = vmatpush1.bf16.msra.mxu0 %v11746_v16  ;;  %8895 = vmatprep.mubr.bf16.mxu0 %v8037_v24  ;;  %v11830_v16 = vld [vmem:[%s15553_s7 + $0x2b4] ss:$8 sps:$4 sm:$0xff]  }
 0x742   :  { %8865 = vmatprep.subr.bf16.mxu0 %v11752_v4  ;;  %v11831_v4 = vld [vmem:[%s15553_s7 + $0x2c0] ss:$8 sps:$4 sm:$0xff]   ;;  %v11836_v24 = vld [vmem:[%s15553_s7 + $0x2d4] ss:$8 sps:$4 sm:$0xff]  }
 0x745   :  { %8866 = vmatpush1.bf16.msra.mxu0 %v11750_v26  ;;  %v11834_v26 = vld [vmem:[%s15553_s7 + $0x2d0] ss:$8 sps:$4 sm:$0xff]  }
 0x746   :  { %8867 = vmatprep.subr.bf16.mxu0 %v11755_v14  ;;  %v11839_v14 = vld [vmem:[%s15553_s7 + $0x2e4] ss:$8 sps:$4 sm:$0xff]  }
 0x749   :  { %8868 = vmatpush1.bf16.msra.mxu0 %v11753_v28  ;;  %v8009_v28 = vcombine.high %v15307_v34, %v15307_v34  ;;  %v11868_v34 = vld [vmem:[%s15553_s7 + $0x380] ss:$8 sps:$4 sm:$0xff]  }
 0x74a   :  { %8869 = vmatprep.subr.bf16.mxu0 %v11758_v29  ;;  %v11837_v29 = vld [vmem:[%s15553_s7 + $0x2e0] ss:$8 sps:$4 sm:$0xff]  }
 0x74d   :  { %8870 = vmatpush1.bf16.msra.mxu0 %v11756_v59  ;;  %v11842_v59 = vld [vmem:[%s15553_s7 + $0x2f4] ss:$8 sps:$4 sm:$0xff]  }
 0x74e   :  { %8871 = vmatprep.subr.bf16.mxu0 %v11761_v30  ;;  %v15422_v30 = vrot.slane %v8009_v28, %v15215_v63  ;;  %v8038_v63 = vpack.c.bf16 %v15317_v44, %v15317_v44  ;;  %v11876_v44 = vld [vmem:[%s15553_s7 + $0x3a4] ss:$8 sps:$4 sm:$0xff]  }
 0x751   :  { %8872 = vmatpush1.bf16.msra.mxu0 %v11759_v31  ;;  %v11840_v31 = vld [vmem:[%s15553_s7 + $0x2f0] ss:$8 sps:$4 sm:$0xff]  }
 0x752   :  { %8873 = vmatprep.subr.bf16.mxu0 %v11764_v17  ;;  %v11845_v17 = vld [vmem:[%s15553_s7 + $0x304] ss:$8 sps:$4 sm:$0xff]  }
 0x755   :  { %8874 = vmatpush1.bf16.msra.mxu0 %v11762_v33  ;;  %v8025_v33 = vcombine.high %v15422_v30, %v15422_v30 }
 0x756   :  { %8875 = vmatprep.subr.bf16.mxu0 %v11767_v35  ;;  %v11843_v35 = vld [vmem:[%s15553_s7 + $0x300] ss:$8 sps:$4 sm:$0xff]  }
 0x759   :  { %8876 = vmatpush1.bf16.msra.mxu0 %v11765_v36  ;;  %v11849_v36 = vld [vmem:[%s15553_s7 + $0x314] ss:$8 sps:$4 sm:$0xff]  }
 0x75a   :  { %8877 = vmatprep.subr.bf16.mxu0 %v11770_v11  ;;  %v8041_v11 = vpack.c.bf16 %v8025_v33, %v8025_v33 }
 0x75d   :  { %8878 = vmatpush1.bf16.msra.mxu0 %v11768_v37  ;;  %v11847_v37 = vld [vmem:[%s15553_s7 + $0x310] ss:$8 sps:$4 sm:$0xff]  }
 0x75e   :  { %8879 = vmatprep.subr.bf16.mxu0 %v11773_v1  ;;  %v11852_v1 = vld [vmem:[%s15553_s7 + $0x324] ss:$8 sps:$4 sm:$0xff]  }
 0x761   :  { %8880 = vmatpush1.bf16.msra.mxu0 %v11771_v5  ;;  %v11850_v5 = vld [vmem:[%s15553_s7 + $0x320] ss:$8 sps:$4 sm:$0xff]  }
 0x762   :  { %8881 = vmatprep.subr.bf16.mxu0 %v11776_v39  ;;  %v11855_v39 = vld [vmem:[%s15553_s7 + $0x334] ss:$8 sps:$4 sm:$0xff]  }
 0x765   :  { %8882 = vmatpush1.bf16.msra.mxu0 %v11774_v32  ;;  %v11853_v32 = vld [vmem:[%s15553_s7 + $0x330] ss:$8 sps:$4 sm:$0xff]  }
 0x766   :  { %8883 = vmatprep.subr.bf16.mxu0 %v11779_v40  ;;  %v11858_v40 = vld [vmem:[%s15553_s7 + $0x344] ss:$8 sps:$4 sm:$0xff]  }
 0x769   :  { %8884 = vmatpush1.bf16.msra.mxu0 %v11777_v15  ;;  %v11856_v15 = vld [vmem:[%s15553_s7 + $0x340] ss:$8 sps:$4 sm:$0xff]  }
 0x76a   :  { %8885 = vmatprep.subr.bf16.mxu0 %v11782_v52  ;;  %v11861_v52 = vld [vmem:[%s15553_s7 + $0x354] ss:$8 sps:$4 sm:$0xff]  }
 0x76d   :  { %8886 = vmatpush1.bf16.msra.mxu0 %v11780_v18  ;;  %v11859_v18 = vld [vmem:[%s15553_s7 + $0x350] ss:$8 sps:$4 sm:$0xff]  }
 0x76e   :  { %8887 = vmatprep.subr.bf16.mxu0 %v11785_v21  ;;  %v11864_v21 = vld [vmem:[%s15553_s7 + $0x364] ss:$8 sps:$4 sm:$0xff]  }
 0x771   :  { %8888 = vmatpush1.bf16.msra.mxu0 %v11783_v20  ;;  %v11862_v20 = vld [vmem:[%s15553_s7 + $0x360] ss:$8 sps:$4 sm:$0xff]  }
 0x772   :  { %8889 = vmatprep.subr.bf16.mxu0 %v11788_v41  ;;  %v11867_v41 = vld [vmem:[%s15553_s7 + $0x374] ss:$8 sps:$4 sm:$0xff]  }
 0x775   :  { %8890 = vmatpush1.bf16.msra.mxu0 %v11786_v43  ;;  %v11865_v43 = vld [vmem:[%s15553_s7 + $0x370] ss:$8 sps:$4 sm:$0xff]  }
 0x776   :  { %8891 = vmatprep.subr.bf16.mxu0 %v11791_v57  ;;  %v11870_v57 = vld [vmem:[%s15553_s7 + $0x384] ss:$8 sps:$4 sm:$0xff]  }
 0x779   :  { %8892 = vmatpush1.bf16.msra.mxu0 %v11789_v2  ;;  %v11873_v2 = vld [vmem:[%s15553_s7 + $0x394] ss:$8 sps:$4 sm:$0xff]  }
 0x77a   :  { %8893 = vmatprep.subr.bf16.mxu0 %v11794_v48  ;;  %v11871_v48 = vld [vmem:[%s15553_s7 + $0x390] ss:$8 sps:$4 sm:$0xff]  }
 0x77d   :  { %8894 = vmatpush1.bf16.msra.mxu0 %v11792_v13  ;;  %v11874_v13 = vld [vmem:[%s15553_s7 + $0x3a0] ss:$8 sps:$4 sm:$0xff]  }
 0x77e   :  { %8904 = vmatprep.subr.bf16.mxu0 %v11797_v19  ;;  %v11879_v19 = vld [vmem:[%s15553_s7 + $0x3b4] ss:$8 sps:$4 sm:$0xff]  }
 0x780   :  { %8896 = vmatmul.mubr.bf16.vlgmr.msra.gmra.mrb[12].mxu0 %v8036_v54  ;;  %v11880_v54 = vld [vmem:[%s15553_s7 + $0x3c0] ss:$8 sps:$4 sm:$0xff]  }
 0x781   :  { %8905 = vmatpush1.bf16.msra.mxu0 %v11795_v49  ;;  %8936 = vmatprep.mubr.bf16.mxu0 %v8039_v58  ;;  %v11882_v49 = vld [vmem:[%s15553_s7 + $0x3c4] ss:$8 sps:$4 sm:$0xff]   ;;  %v11883_v58 = vld [vmem:[%s15553_s7 + $0x3d0] ss:$8 sps:$4 sm:$0xff]  }
 0x782   :  { %8906 = vmatprep.subr.bf16.mxu0 %v11800_v53  ;;  %v11885_v53 = vld [vmem:[%s15553_s7 + $0x3d4] ss:$8 sps:$4 sm:$0xff]  }
 0x785   :  { %8907 = vmatpush1.bf16.msra.mxu0 %v11798_v56  ;;  %v11888_v56 = vld [vmem:[%s15553_s7 + $0x3e4] ss:$8 sps:$4 sm:$0xff]  }
 0x786   :  { %8908 = vmatprep.subr.bf16.mxu0 %v11803_v0  ;;  %v11886_v0 = vld [vmem:[%s15553_s7 + $0x3e0] ss:$8 sps:$4 sm:$0xff]  }
 0x789   :  { %8909 = vmatpush1.bf16.msra.mxu0 %v11801_v7  ;;  %v11891_v7 = vld [vmem:[%s15553_s7 + $0x3f4] ss:$8 sps:$4 sm:$0xff]  }
 0x78a   :  { %8910 = vmatprep.subr.bf16.mxu0 %v11806_v50  ;;  %v11889_v50 = vld [vmem:[%s15553_s7 + $0x3f0] ss:$8 sps:$4 sm:$0xff]   ;;  %s11919_s7 = smov [#allocation9]  }
 0x78b   :  { %s9006_s15 = sshll.u32 %s11919_s7, 4  ;;  %s9007_s15 = int_to_ptr.vmem [resolvable:$true] %s9006_s15 }
 0x78c   :  { %s11893_s1 = scalar_lea.vmem %s9007_s15, 64  ;;  %p11898_p1 = scmp.lt.s32.totalorder %s9007_s15, %s9007_s15 }
 0x78d   :  { %8911 = vmatpush1.bf16.msra.mxu0 %v11804_v27  ;;  %v8040_v27 = vpack.c.bf16 %v15422_v30, %v15422_v30  ;;  %p11894_p0 = scmp.ne.s32.totalorder %s9007_s15, %s11893_s1  ;;  %p11899_p2 = scmp.lt.s32.totalorder %s11893_s1, %s11893_s1 }
 0x78e   :  { %8912 = vmatprep.subr.bf16.mxu0 %v11809_v51  ;;  %v8170_v51 = vld [vmem:[%s15554_s8] sm:$0x3] }
 0x78f   :  { %p11900_p3 = por %p11899_p2, %p11898_p1 }
 0x791   :  { %8913 = vmatpush1.bf16.msra.mxu0 %v11807_v60  ;;  %v8175_v60 = vrot.slane %v8170_v51, %v13430_v38  ;;  %p11901_p4 = pnand %p11900_p3, %p11894_p0 }
 0x792   :  { %8914 = vmatprep.subr.bf16.mxu0 %v11812_v55  ;;  %v8179_v55 = vrot.slane %v8170_v51, %v13433_v9 }
 0x795   :  { %8915 = vmatpush1.bf16.msra.mxu0 %v11810_v6 }
 0x796   :  { %8916 = vmatprep.subr.bf16.mxu0 %v11815_v61 }
 0x799   :  { %8917 = vmatpush1.bf16.msra.mxu0 %v11813_v3 }
 0x79a   :  { %8918 = vmatprep.subr.bf16.mxu0 %v11818_v62 }
 0x79d   :  { %8919 = vmatpush1.bf16.msra.mxu0 %v11816_v42 }
 0x79e   :  { %8920 = vmatprep.subr.bf16.mxu0 %v11821_v8 }
 0x7a1   :  { %8921 = vmatpush1.bf16.msra.mxu0 %v11819_v25 }
 0x7a2   :  { %8922 = vmatprep.subr.bf16.mxu0 %v11824_v10 }
 0x7a5   :  { %8923 = vmatpush1.bf16.msra.mxu0 %v11822_v45 }
 0x7a6   :  { %8924 = vmatprep.subr.bf16.mxu0 %v11827_v47 }
 0x7a9   :  { %8925 = vmatpush1.bf16.msra.mxu0 %v11825_v12 }
 0x7aa   :  { %8926 = vmatprep.subr.bf16.mxu0 %v11830_v16 }
 0x7ad   :  { %8927 = vmatpush1.bf16.msra.mxu0 %v11828_v22 }
 0x7ae   :  { %8928 = vmatprep.subr.bf16.mxu0 %v11833_v23 }
 0x7b1   :  { %8929 = vmatpush1.bf16.msra.mxu0 %v11831_v4 }
 0x7b2   :  { %8930 = vmatprep.subr.bf16.mxu0 %v11836_v24 }
 0x7b5   :  { %8931 = vmatpush1.bf16.msra.mxu0 %v11834_v26 }
 0x7b6   :  { %8932 = vmatprep.subr.bf16.mxu0 %v11839_v14 }
 0x7b9   :  { %8933 = vmatpush1.bf16.msra.mxu0 %v11837_v29 }
 0x7ba   :  { %8934 = vmatprep.subr.bf16.mxu0 %v11842_v59 }
 0x7bd   :  { %8935 = vmatpush1.bf16.msra.mxu0 %v11840_v31 }
 0x7be   :  { %8945 = vmatprep.subr.bf16.mxu0 %v11845_v17 }
 0x7c0   :  { %8937 = vmatmul.mubr.bf16.vlgmr.msra.gmra.mrb[12].mxu0 %v8038_v63 }
 0x7c1   :  { %8946 = vmatpush1.bf16.msra.mxu0 %v11843_v35  ;;  %8977 = vmatprep.mubr.bf16.mxu0 %v8041_v11 }
 0x7c2   :  { %8947 = vmatprep.subr.bf16.mxu0 %v11849_v36 }
 0x7c5   :  { %8948 = vmatpush1.bf16.msra.mxu0 %v11847_v37 }
 0x7c6   :  { %8949 = vmatprep.subr.bf16.mxu0 %v11852_v1 }
 0x7c9   :  { %8950 = vmatpush1.bf16.msra.mxu0 %v11850_v5 }
 0x7ca   :  { %8951 = vmatprep.subr.bf16.mxu0 %v11855_v39 }
 0x7cd   :  { %8952 = vmatpush1.bf16.msra.mxu0 %v11853_v32 }
 0x7ce   :  { %8953 = vmatprep.subr.bf16.mxu0 %v11858_v40 }
 0x7d1   :  { %8954 = vmatpush1.bf16.msra.mxu0 %v11856_v15 }
 0x7d2   :  { %8955 = vmatprep.subr.bf16.mxu0 %v11861_v52 }
 0x7d5   :  { %8956 = vmatpush1.bf16.msra.mxu0 %v11859_v18 }
 0x7d6   :  { %8957 = vmatprep.subr.bf16.mxu0 %v11864_v21 }
 0x7d9   :  { %8958 = vmatpush1.bf16.msra.mxu0 %v11862_v20 }
 0x7da   :  { %8959 = vmatprep.subr.bf16.mxu0 %v11867_v41 }
 0x7dd   :  { %8960 = vmatpush1.bf16.msra.mxu0 %v11865_v43 }
 0x7de   :  { %8961 = vmatprep.subr.bf16.mxu0 %v11870_v57 }
 0x7e1   :  { %8962 = vmatpush1.bf16.msra.mxu0 %v11868_v34 }
 0x7e2   :  { %8963 = vmatprep.subr.bf16.mxu0 %v11873_v2 }
 0x7e5   :  { %8964 = vmatpush1.bf16.msra.mxu0 %v11871_v48 }
 0x7e6   :  { %8965 = vmatprep.subr.bf16.mxu0 %v11876_v44 }
 0x7e9   :  { %8966 = vmatpush1.bf16.msra.mxu0 %v11874_v13 }
 0x7ea   :  { %8967 = vmatprep.subr.bf16.mxu0 %v11879_v19 }
 0x7ed   :  { %8968 = vmatpush1.bf16.msra.mxu0 %v11877_v46 }
 0x7ee   :  { %8969 = vmatprep.subr.bf16.mxu0 %v11882_v49 }
 0x7f1   :  { %8970 = vmatpush1.bf16.msra.mxu0 %v11880_v54 }
 0x7f2   :  { %8971 = vmatprep.subr.bf16.mxu0 %v11885_v53 }
 0x7f5   :  { %8972 = vmatpush1.bf16.msra.mxu0 %v11883_v58 }
 0x7f6   :  { %8973 = vmatprep.subr.bf16.mxu0 %v11888_v56 }
 0x7f9   :  { %8974 = vmatpush1.bf16.msra.mxu0 %v11886_v0 }
 0x7fa   :  { %8975 = vmatprep.subr.bf16.mxu0 %v11891_v7 }
 0x7fd   :  { %8976 = vmatpush1.bf16.msra.mxu0 %v11889_v50 }
 0x800   :  { %8978 = vmatmul.mubr.bf16.vlgmr.msra.gmra.mrb[12].mxu0 %v8040_v27 }
 0x8d3   :  { %v8979_v6 = vpop.f32.mrb[12].mxu0 }
 0x8d4   :  { %v10261_v61 = vadd.f32 %v8979_v6, %v8175_v60  ;;  %v8981_v3 = vpop.f32.mrb[13].mxu0 }
 0x8d5   :  { %v10262_v62 = vadd.f32 %v8981_v3, %v8179_v55  ;;  %v8983_v42 = vpop.f32.mrb[14].mxu0 }
 0x8d6   :  { %v8986_v8 = vmax.f32 %v10261_v61, 0.0  ;;  %v8984_v25 = vpop.f32.mrb[15].mxu0 }
 0x8d7   :  { %v8987_v10 = vmax.f32 %v10262_v62, 0.0 }
 0x8d9   :  { %v8990_v45 = vcombine.low %v8986_v8, %v8987_v10 }
 0x8db   :  { %10054 = vst.sshfl [vmem:[#allocation9] sm:$0x33 pattern:$0x76325410] %v8990_v45 }
 0x8dc   :  { %11904 = shalt.err (!%p11901_p4)
}
 0x8dd   :  { %s11905_s17 = scalar_lea.hbm %s15555_s9, 64 }
 0x8de   :  { %p11906_p5 = scmp.ne.s32.totalorder %s15555_s9, %s11905_s17  ;;  %p11909_p6 = scmp.lt.u32.totalorder %s11905_s17, %s15555_s9 }
 0x8e0   :  { %p11911_p7 = pnand %p11909_p6, %p11906_p5 }
 0x8e2   :  { %11914 = shalt.err (!%p11911_p7)
}
 0x8e3   :  { %9009 = dma.vmem_to_hbm [thread:$0]  %s9007_s15, 64, %s15555_s9, [#allocation10]  }
 0x8e4   :  { %11915 = dma.done.wait [#allocation10], 64  }
 0x8e5   :  { %11916 = vsyncadd [#allocation10], 4294967232 }
 0x8e6   :  { %9013 = vsyncpa [#allocation10], 1 }

</bundles_post_ra>
